<compile_context>
chip_gen: v5e
topology: v5e:2x2
jax: 0.10.0
libtpu: 0.0.40
codegen_flags: <defaults>
</compile_context>

<pallas_src>
import math
import functools

import jax
import jax.numpy as jnp
from jax.experimental import pallas as pl
from jax.experimental.pallas import tpu as pltpu


def _pick_tile(n, target):
    """Largest tile <= target that divides n and is a multiple of 8 (else n)."""
    if target is None or n <= target:
        return n
    for t in (target, 512, 256, 128, 64, 32, 16, 8):
        if 0 < t <= n and n % t == 0 and t % 8 == 0:
            return t
    return n


def _vmem_cap_bytes():
    try:
        return int(pltpu.get_tpu_info().vmem_capacity_bytes)
    except Exception:
        return 64 << 20          # assume the smallest (v7x) if the query fails


def _scoped_vmem_limit(need_bytes):
    """Scoped-VMEM cap sized from the computed per-step footprint (+25%
    headroom), never below 32 MiB and never above ~85% of physical VMEM
    (the latter matters on v7x's 64 MiB)."""
    cap = _vmem_cap_bytes()
    return int(min(cap * 0.85, max(32 << 20, need_bytes * 1.25)))


# --------------------------------------------------------------------------
# Stage 1: fused QKV projection + interleaved rotary, tiled over (batch, seq)
# --------------------------------------------------------------------------
def _qkv_rotary_kernel(x_ref, w_ref, cos_ref, sin_ref, q_ref, kv_ref, *,
                       d_model):
    """One (batch, seq-tile) grid step.

    x_ref  : (1, ts, d_model)      hidden_states tile (compute dtype)
    w_ref  : (d_model, 3*d_model)  [Wq/sqrt(D) | Wk | Wv] (compute dtype)
    cos_ref: (ts, d_model)         interleaved cos, tiled over heads (f32)
    sin_ref: (ts, d_model)         signed sin: -sin at even, +sin at odd (f32)
    q_ref  : (1, ts, d_model)      rotated (pre-scaled) Q
    kv_ref : (1, ts, 2*d_model)    rotated [K | V]
    """
    qkv = jnp.dot(x_ref[0], w_ref[...],
                  preferred_element_type=jnp.float32)        # (ts, 3*d_model) f32
    cos = cos_ref[...]
    sin = sin_ref[...]
    even = jax.lax.broadcasted_iota(jnp.int32, cos.shape, 1) % 2 == 0

    def rotate(t):
        # Interleaved RoPE:
        #   out[2i]   = t[2i]  *cos_i - t[2i+1]*sin_i
        #   out[2i+1] = t[2i+1]*cos_i + t[2i]  *sin_i
        # Pair partner via two XLU lane rolls + a parity select; the sign is
        # pre-folded into the signed sin table.  Wrap-around lanes are never
        # selected where they would be wrong (D even => lane 0 is even and
        # takes t[j+1], lane d_model-1 is odd and takes t[j-1]).
        t_next = pltpu.roll(t, d_model - 1, axis=1)          # t[j+1]
        t_prev = pltpu.roll(t, 1, axis=1)                    # t[j-1]
        return t * cos + jnp.where(even, t_next, t_prev) * sin

    q_ref[0] = rotate(qkv[:, :d_model]).astype(q_ref.dtype)
    kv_ref[0, :, :d_model] = rotate(qkv[:, d_model:2 * d_model]).astype(kv_ref.dtype)
    kv_ref[0, :, d_model:] = rotate(qkv[:, 2 * d_model:]).astype(kv_ref.dtype)


# --------------------------------------------------------------------------
# Stage 2: multi-head attention over rotated Q / [K|V], tiled over (batch, q)
# --------------------------------------------------------------------------
def _attn_kernel(q_ref, kv_ref, o_ref, *, nhead, head_dim, bf16_softmax):
    """One (batch, q-tile) grid step.

    q_ref : (1, tq, d_model)   rotated, pre-scaled Q rows (compute dtype)
    kv_ref: (1, S, 2*d_model)  rotated [K | V] for this batch (compute dtype)
    o_ref : (1, tq, d_model)   head-merged context (lane dense)
    """
    d_model = nhead * head_dim
    cdt = q_ref.dtype

    # nhead is small and static: a static unroll keeps every lane offset a
    # compile-time constant (no dynamic-lane slicing / relayout when D < 128)
    # and the per-head o_ref store ends each head's (tq, S) live range, so
    # there is no trailing concatenate and no nhead-wide live temporaries.
    for h in range(nhead):
        lo = h * head_dim
        q_h = q_ref[0, :, lo:lo + head_dim]                        # (tq, D)
        k_h = kv_ref[0, :, lo:lo + head_dim]                       # (S, D)
        v_h = kv_ref[0, :, d_model + lo:d_model + lo + head_dim]   # (S, D)

        # QK^T: contract the last dims directly (no materialized k.T).
        s = jax.lax.dot_general(q_h, k_h, (((1,), (1,)), ((), ())),
                                preferred_element_type=jnp.float32)  # (tq, S)
        m = jnp.max(s, axis=-1, keepdims=True)
        if bf16_softmax:
            # bf16 EUP exp + approx reciprocal (v6e/v7x): keeps the single
            # EUP slot from capping the MXU when head_dim is small.
            e = jnp.exp((s - m).astype(jnp.bfloat16))
            denom = jnp.sum(e, axis=-1, keepdims=True, dtype=jnp.float32)
            p = e * pl.reciprocal(denom, approx=True).astype(e.dtype)
        else:
            e = jnp.exp(s - m)
            p = e * pl.reciprocal(jnp.sum(e, axis=-1, keepdims=True))
        ctx = jnp.dot(p.astype(cdt), v_h,
                      preferred_element_type=jnp.float32)            # (tq, D)
        o_ref[0, :, lo:lo + head_dim] = ctx.astype(o_ref.dtype)


def roformer_self_attention(hidden_states, wq, wk, wv, sin, cos, nhead,
                            q_tile=None, bf16_softmax=None):
    """RoFormerSelfAttention forward (self-attention path, dropout = 0).

    hidden_states: (B, S, d_model); wq/wk/wv: (d_model, d_model), applied as
    x @ W (torch Linear weight transposed); sin/cos: (S, D//2), D = d_model//nhead.
    Returns the head-merged context layer, shape (B, S, d_model).
    """
    B, S, d_model = hidden_states.shape
    assert d_model % nhead == 0
    D = d_model // nhead
    assert D % 2 == 0, "rotary head dim must be even"
    cdt = hidden_states.dtype
    isz = jnp.dtype(cdt).itemsize
    if bf16_softmax is None:
        # dtype-driven default; on v5e (no bf16 EUP) pass bf16_softmax=False.
        bf16_softmax = (hidden_states.dtype == jnp.bfloat16)

    # Fused QKV weights; fold 1/sqrt(D) into Wq (rotary is linear, so scaling
    # before rotary == scaling the scores).
    w_qkv = jnp.concatenate(
        [wq.astype(jnp.float32) * (1.0 / math.sqrt(D)),
         wk.astype(jnp.float32),
         wv.astype(jnp.float32)], axis=1).astype(cdt)        # (d_model, 3*d_model)

    # Interleaved rotary tables tiled over heads: ONE cos table + ONE signed
    # sin table (sign & pair parity folded in).  f32 for accuracy; they are
    # streamed in (ts, d_model) blocks into stage 1 only.
    sin_all = jnp.tile(jnp.repeat(sin.astype(jnp.float32), 2, axis=-1), (1, nhead))
    cos_all = jnp.tile(jnp.repeat(cos.astype(jnp.float32), 2, axis=-1), (1, nhead))
    even = (jnp.arange(d_model) % 2 == 0)[None, :]
    sin_signed = jnp.where(even, -sin_all, sin_all)          # (S, d_model)

    vmem_cap = _vmem_cap_bytes()
    if q_tile is None:
        # Bigger tiles amortize the ~0.35us/step overhead; v5e/v6e (128 MiB
        # VMEM) can afford 512, v7x (64 MiB) stays at 256.
        q_tile = 512 if vmem_cap >= (100 << 20) else 256
    tq = _pick_tile(S, q_tile)
    ts = _pick_tile(S, 512)

    # ---------------- stage 1: fused QKV projection + rotary ----------------
    proj_need = (2 * ts * d_model * isz            # x tile (double-buffered)
                 + d_model * 3 * d_model * isz     # w_qkv (single-buffered)
                 + 2 * 2 * ts * d_model * 4        # cos + signed sin tables
                 + 2 * ts * 3 * d_model * isz      # q_rot + kv_rot outputs
                 + 4 * ts * 3 * d_model * 4)       # f32 temporaries
    w_shape = (d_model, 3 * d_model)
    w_map = lambda b, s: (0, 0)

    def _project(w_spec):
        return pl.pallas_call(
            functools.partial(_qkv_rotary_kernel, d_model=d_model),
            out_shape=(jax.ShapeDtypeStruct((B, S, d_model), cdt),
                       jax.ShapeDtypeStruct((B, S, 2 * d_model), cdt)),
            grid=(B, S // ts),
            in_specs=[
                pl.BlockSpec((1, ts, d_model), lambda b, s: (b, s, 0)),
                w_spec,
                pl.BlockSpec((ts, d_model), lambda b, s: (s, 0)),
                pl.BlockSpec((ts, d_model), lambda b, s: (s, 0)),
            ],
            out_specs=(pl.BlockSpec((1, ts, d_model), lambda b, s: (b, s, 0)),
                       pl.BlockSpec((1, ts, 2 * d_model), lambda b, s: (b, s, 0))),
            compiler_params=pltpu.CompilerParams(
                dimension_semantics=("parallel", "parallel"),
                vmem_limit_bytes=_scoped_vmem_limit(proj_need)),
        )(hidden_states, w_qkv, cos_all, sin_signed)

    try:
        # w_qkv's block index never changes -> single-buffer it (double
        # buffering a grid-invariant input only doubles its VMEM footprint).
        q_rot, kv_rot = _project(
            pl.BlockSpec(w_shape, w_map, pipeline_mode=pl.Buffered(1)))
    except Exception:
        # pipeline_mode / Buffered not plumbed through pallas_call in this
        # JAX version; fall back to the default (double-buffered) spec.
        q_rot, kv_rot = _project(pl.BlockSpec(w_shape, w_map))

    # ---------------- stage 2: multi-head attention --------------------------
    # TODO(synk): kv-tile grid axis + online (flash-style) softmax for long S
    #             so the full-S [K|V] block and (tq, S) scores are not
    #             VMEM-resident (mandatory on v7x's 64 MiB for S >= 2k).
    attn_need = (2 * tq * d_model * isz            # q tile
                 + 2 * S * 2 * d_model * isz       # full-S rotated [K|V]
                 + 2 * tq * d_model * isz          # output tile
                 + 3 * tq * S * 4                  # score / exp temporaries
                 + tq * d_model * 4)               # per-head context
    out = pl.pallas_call(
        functools.partial(_attn_kernel, nhead=nhead, head_dim=D,
                          bf16_softmax=bf16_softmax),
        out_shape=jax.ShapeDtypeStruct((B, S, d_model), cdt),
        grid=(B, S // tq),
        in_specs=[
            pl.BlockSpec((1, tq, d_model), lambda b, q: (b, q, 0)),
            pl.BlockSpec((1, S, 2 * d_model), lambda b, q: (b, 0, 0)),
        ],
        out_specs=pl.BlockSpec((1, tq, d_model), lambda b, q: (b, q, 0)),
        compiler_params=pltpu.CompilerParams(
            # No scratch carried across grid steps any more -> both axes are
            # independent and megacore-splittable.
            dimension_semantics=("parallel", "parallel"),
            vmem_limit_bytes=_scoped_vmem_limit(attn_need)),
    )(q_rot, kv_rot)
    return out


def _reference(hidden_states, wq, wk, wv, sin, cos, nhead):
    """Pure-JAX mirror of the PyTorch forward (self-attention path, p_drop=0).
    Note: matching the module, rotary is applied to Q, K *and* V."""
    B, S, d_model = hidden_states.shape
    D = d_model // nhead

    def heads(x):  # (B,S,d_model) -> (B,H,S,D)
        return jnp.transpose(x.reshape(B, S, nhead, D), (0, 2, 1, 3))

    def rotary(x):  # x: (B,H,S,D), sin/cos: (S, D//2)
        x1, x2 = x[..., 0::2], x[..., 1::2]
        out = jnp.stack([x1 * cos - x2 * sin, x2 * cos + x1 * sin], axis=-1)
        return out.reshape(x.shape)

    q = rotary(heads(hidden_states @ wq))
    k = rotary(heads(hidden_states @ wk))
    v = rotary(heads(hidden_states @ wv))
    scores = jnp.einsum('bhqd,bhkd->bhqk', q, k) / math.sqrt(D)
    probs = jax.nn.softmax(scores, axis=-1)
    ctx = jnp.einsum('bhqk,bhkd->bhqd', probs, v)
    return jnp.transpose(ctx, (0, 2, 1, 3)).reshape(B, S, d_model)


if __name__ == "__main__":
    # Keep the pure-JAX reference einsums in full f32 so the comparison below
    # measures kernel error, not reference (bf16-pass) error.
    jax.config.update("jax_default_matmul_precision", "highest")

    B, S, d_model, nhead = 2, 64, 128, 4
    D = d_model // nhead

    key = jax.random.PRNGKey(0)
    k_x, k_q, k_k, k_v = jax.random.split(key, 4)
    hidden_states = jax.random.normal(k_x, (B, S, d_model), jnp.float32)
    w_scale = 1.0 / math.sqrt(d_model)
    wq = jax.random.normal(k_q, (d_model, d_model), jnp.float32) * w_scale
    wk = jax.random.normal(k_k, (d_model, d_model), jnp.float32) * w_scale
    wv = jax.random.normal(k_v, (d_model, d_model), jnp.float32) * w_scale

    # Standard RoFormer sinusoidal tables, shape (S, D//2).
    pos = jnp.arange(S, dtype=jnp.float32)[:, None]
    inv_freq = 1.0 / (10000.0 ** (jnp.arange(0, D, 2, dtype=jnp.float32) / D))
    sin = jnp.sin(pos * inv_freq[None, :])
    cos = jnp.cos(pos * inv_freq[None, :])

    # f32 run: tight correctness check against the pure-JAX reference.
    out = roformer_self_attention(hidden_states, wq, wk, wv, sin, cos, nhead)
    out = jax.block_until_ready(out)
    ref = _reference(hidden_states, wq, wk, wv, sin, cos, nhead)
    assert out.shape == (B, S, d_model)
    err = float(jnp.max(jnp.abs(out - ref)))
    assert err < 2e-3, f"f32 max abs err {err}"

    # bf16 run: intended production dtype (bf16 MXU operands, bf16 EUP exp,
    # approx reciprocal); sanity-check it stays close to the f32 reference.
    out_bf16 = roformer_self_attention(
        hidden_states.astype(jnp.bfloat16), wq.astype(jnp.bfloat16),
        wk.astype(jnp.bfloat16), wv.astype(jnp.bfloat16), sin, cos, nhead)
    out_bf16 = jax.block_until_ready(out_bf16)
    err_bf16 = float(jnp.max(jnp.abs(out_bf16.astype(jnp.float32) - ref)))
    assert err_bf16 < 2e-1, f"bf16 max abs err {err_bf16}"

    print("KERNEL_OK")
</pallas_src>

<mosaic_0001>
module attributes {stable_mosaic.version = 11 : i64} {
  func.func @_qkv_rotary_kernel(%arg0: i32, %arg1: i32, %arg2: memref<1x64x128xf32, #tpu.memory_space<vmem>>, %arg3: memref<128x384xf32, #tpu.memory_space<vmem>>, %arg4: memref<64x128xf32, #tpu.memory_space<vmem>>, %arg5: memref<64x128xf32, #tpu.memory_space<vmem>>, %arg6: memref<1x64x128xf32, #tpu.memory_space<vmem>>, %arg7: memref<1x64x256xf32, #tpu.memory_space<vmem>>) attributes {dimension_semantics = [#tpu.dimension_semantics<parallel>, #tpu.dimension_semantics<parallel>], iteration_bounds = array<i64: 2, 1>, scalar_prefetch = 0 : i64, scratch_operands = 0 : i64, tpu.core_type = #tpu.core_type<tc>, window_params = [{transform_indices = @transform_0, window_bounds = array<i64: 1, 64, 128>}, {pipeline_mode = #tpu.pipeline_mode<synchronous>, transform_indices = @transform_1, window_bounds = array<i64: 128, 384>}, {transform_indices = @transform_2, window_bounds = array<i64: 64, 128>}, {transform_indices = @transform_3, window_bounds = array<i64: 64, 128>}, {transform_indices = @transform_4, window_bounds = array<i64: 1, 64, 128>}, {transform_indices = @transform_5, window_bounds = array<i64: 1, 64, 256>}]} {
    %c0 = arith.constant 0 : index
    %c0_0 = arith.constant 0 : index
    %c0_1 = arith.constant 0 : index
    %0 = vector.load %arg2[%c0, %c0_0, %c0_1] : memref<1x64x128xf32, #tpu.memory_space<vmem>>, vector<1x64x128xf32>
    %1 = vector.shape_cast %0 : vector<1x64x128xf32> to vector<64x128xf32>
    %c0_2 = arith.constant 0 : index
    %c0_3 = arith.constant 0 : index
    %2 = vector.load %arg3[%c0_2, %c0_3] : memref<128x384xf32, #tpu.memory_space<vmem>>, vector<128x384xf32>
    %cst = arith.constant dense<0.000000e+00> : vector<64x384xf32>
    %3 = tpu.matmul %1, %2, %cst {dimension_numbers = #tpu.dot_dimension_numbers<[1], [0], [0], [1], [0, 0, 1, 1], [], []>, precision = #tpu.contract_precision<fp32>} : vector<64x128xf32>, vector<128x384xf32>, vector<64x384xf32> -> vector<64x384xf32>
    %c0_4 = arith.constant 0 : index
    %c0_5 = arith.constant 0 : index
    %4 = vector.load %arg4[%c0_4, %c0_5] : memref<64x128xf32, #tpu.memory_space<vmem>>, vector<64x128xf32>
    %c0_6 = arith.constant 0 : index
    %c0_7 = arith.constant 0 : index
    %5 = vector.load %arg5[%c0_6, %c0_7] : memref<64x128xf32, #tpu.memory_space<vmem>>, vector<64x128xf32>
    %6 = tpu.iota {dimensions = array<i32: 1>} : vector<64x128xi32>
    %c2_i32 = arith.constant 2 : i32
    %c0_i32 = arith.constant 0 : i32
    %7 = arith.cmpi eq, %c2_i32, %c0_i32 : i32
    %c1_i32 = arith.constant 1 : i32
    %8 = arith.select %7, %c1_i32, %c2_i32 : i32
    %9 = vector.broadcast %8 : i32 to vector<64x128xi32>
    %10 = arith.remsi %6, %9 : vector<64x128xi32>
    %c0_i32_8 = arith.constant 0 : i32
    %11 = vector.broadcast %c0_i32_8 : i32 to vector<64x128xi32>
    %12 = arith.cmpi ne, %10, %11 : vector<64x128xi32>
    %c0_i32_9 = arith.constant 0 : i32
    %13 = vector.broadcast %c0_i32_9 : i32 to vector<64x128xi32>
    %14 = arith.cmpi slt, %10, %13 : vector<64x128xi32>
    %c0_i32_10 = arith.constant 0 : i32
    %15 = arith.cmpi slt, %8, %c0_i32_10 : i32
    %16 = vector.broadcast %15 : i1 to vector<64x128xi1>
    %17 = vector.broadcast %16 : vector<64x128xi1> to vector<64x128xi1>
    %18 = arith.xori %14, %17 : vector<64x128xi1>
    %19 = arith.andi %18, %12 : vector<64x128xi1>
    %20 = vector.broadcast %8 : i32 to vector<64x128xi32>
    %21 = arith.addi %10, %20 : vector<64x128xi32>
    %22 = arith.select %19, %21, %10 : vector<64x128xi1>, vector<64x128xi32>
    %c0_i32_11 = arith.constant 0 : i32
    %23 = vector.broadcast %c0_i32_11 : i32 to vector<64x128xi32>
    %24 = arith.cmpi eq, %22, %23 : vector<64x128xi32>
    %25 = vector.extract_strided_slice %3 {offsets = [0, 0], sizes = [64, 128], strides = [1, 1]} : vector<64x384xf32> to vector<64x128xf32>
    %c127_i32 = arith.constant 127 : i32
    %26 = tpu.dynamic_rotate %25 by %c127_i32 dim 1 : vector<64x128xf32>, i32 -> vector<64x128xf32>
    %c1_i32_12 = arith.constant 1 : i32
    %27 = tpu.dynamic_rotate %25 by %c1_i32_12 dim 1 : vector<64x128xf32>, i32 -> vector<64x128xf32>
    %28 = arith.mulf %25, %4 : vector<64x128xf32>
    %29 = arith.select %24, %26, %27 : vector<64x128xi1>, vector<64x128xf32>
    %30 = arith.mulf %29, %5 : vector<64x128xf32>
    %31 = arith.addf %28, %30 : vector<64x128xf32>
    %c0_13 = arith.constant 0 : index
    %c0_14 = arith.constant 0 : index
    %c0_15 = arith.constant 0 : index
    %32 = vector.load %arg6[%c0_13, %c0_14, %c0_15] : memref<1x64x128xf32, #tpu.memory_space<vmem>>, vector<1x64x128xf32>
    %33 = vector.shape_cast %32 : vector<1x64x128xf32> to vector<64x128xf32>
    %34 = vector.shape_cast %31 : vector<64x128xf32> to vector<1x64x128xf32>
    tpu.vector_store %arg6[%c0_13, %c0_14, %c0_15], %34 {strides = array<i32>} : memref<1x64x128xf32, #tpu.memory_space<vmem>>, vector<1x64x128xf32>,
    %35 = vector.extract_strided_slice %3 {offsets = [0, 128], sizes = [64, 128], strides = [1, 1]} : vector<64x384xf32> to vector<64x128xf32>
    %c127_i32_16 = arith.constant 127 : i32
    %36 = tpu.dynamic_rotate %35 by %c127_i32_16 dim 1 : vector<64x128xf32>, i32 -> vector<64x128xf32>
    %c1_i32_17 = arith.constant 1 : i32
    %37 = tpu.dynamic_rotate %35 by %c1_i32_17 dim 1 : vector<64x128xf32>, i32 -> vector<64x128xf32>
    %38 = arith.mulf %35, %4 : vector<64x128xf32>
    %39 = arith.select %24, %36, %37 : vector<64x128xi1>, vector<64x128xf32>
    %40 = arith.mulf %39, %5 : vector<64x128xf32>
    %41 = arith.addf %38, %40 : vector<64x128xf32>
    %c0_18 = arith.constant 0 : index
    %c0_19 = arith.constant 0 : index
    %c0_20 = arith.constant 0 : index
    %42 = vector.load %arg7[%c0_18, %c0_19, %c0_20] : memref<1x64x256xf32, #tpu.memory_space<vmem>>, vector<1x64x128xf32>
    %43 = vector.shape_cast %42 : vector<1x64x128xf32> to vector<64x128xf32>
    %44 = vector.shape_cast %41 : vector<64x128xf32> to vector<1x64x128xf32>
    tpu.vector_store %arg7[%c0_18, %c0_19, %c0_20], %44 {strides = array<i32>} : memref<1x64x256xf32, #tpu.memory_space<vmem>>, vector<1x64x128xf32>,
    %45 = vector.extract_strided_slice %3 {offsets = [0, 256], sizes = [64, 128], strides = [1, 1]} : vector<64x384xf32> to vector<64x128xf32>
    %c127_i32_21 = arith.constant 127 : i32
    %46 = tpu.dynamic_rotate %45 by %c127_i32_21 dim 1 : vector<64x128xf32>, i32 -> vector<64x128xf32>
    %c1_i32_22 = arith.constant 1 : i32
    %47 = tpu.dynamic_rotate %45 by %c1_i32_22 dim 1 : vector<64x128xf32>, i32 -> vector<64x128xf32>
    %48 = arith.mulf %45, %4 : vector<64x128xf32>
    %49 = arith.select %24, %46, %47 : vector<64x128xi1>, vector<64x128xf32>
    %50 = arith.mulf %49, %5 : vector<64x128xf32>
    %51 = arith.addf %48, %50 : vector<64x128xf32>
    %c0_23 = arith.constant 0 : index
    %c0_24 = arith.constant 0 : index
    %c128 = arith.constant 128 : index
    %52 = vector.load %arg7[%c0_23, %c0_24, %c128] : memref<1x64x256xf32, #tpu.memory_space<vmem>>, vector<1x64x128xf32>
    %53 = vector.shape_cast %52 : vector<1x64x128xf32> to vector<64x128xf32>
    %54 = vector.shape_cast %51 : vector<64x128xf32> to vector<1x64x128xf32>
    tpu.vector_store %arg7[%c0_23, %c0_24, %c128], %54 {strides = array<i32>} : memref<1x64x256xf32, #tpu.memory_space<vmem>>, vector<1x64x128xf32>,
    return
  }
  func.func @transform_0(%arg0: i32, %arg1: i32) -> (i32, i32, i32) {
    %c0_i32 = arith.constant 0 : i32
    %c0_i32_0 = arith.constant 0 : i32
    return %arg0, %arg1, %c0_i32 : i32, i32, i32
  }
  func.func @transform_1(%arg0: i32, %arg1: i32) -> (i32, i32) {
    %c0_i32 = arith.constant 0 : i32
    %c0_i32_0 = arith.constant 0 : i32
    %c0_i32_1 = arith.constant 0 : i32
    return %c0_i32, %c0_i32_0 : i32, i32
  }
  func.func @transform_2(%arg0: i32, %arg1: i32) -> (i32, i32) {
    %c0_i32 = arith.constant 0 : i32
    %c0_i32_0 = arith.constant 0 : i32
    return %arg1, %c0_i32 : i32, i32
  }
  func.func @transform_3(%arg0: i32, %arg1: i32) -> (i32, i32) {
    %c0_i32 = arith.constant 0 : i32
    %c0_i32_0 = arith.constant 0 : i32
    return %arg1, %c0_i32 : i32, i32
  }
  func.func @transform_4(%arg0: i32, %arg1: i32) -> (i32, i32, i32) {
    %c0_i32 = arith.constant 0 : i32
    %c0_i32_0 = arith.constant 0 : i32
    return %arg0, %arg1, %c0_i32 : i32, i32, i32
  }
  func.func @transform_5(%arg0: i32, %arg1: i32) -> (i32, i32, i32) {
    %c0_i32 = arith.constant 0 : i32
    %c0_i32_0 = arith.constant 0 : i32
    return %arg0, %arg1, %c0_i32 : i32, i32, i32
  }
}

module attributes {stable_mosaic.version = 11 : i64} {
  func.func @_qkv_rotary_kernel(%arg0: i32, %arg1: i32, %arg2: memref<1x64x128xf32, #tpu.memory_space<vmem>>, %arg3: memref<128x384xf32, #tpu.memory_space<vmem>>, %arg4: memref<64x128xf32, #tpu.memory_space<vmem>>, %arg5: memref<64x128xf32, #tpu.memory_space<vmem>>, %arg6: memref<1x64x128xf32, #tpu.memory_space<vmem>>, %arg7: memref<1x64x256xf32, #tpu.memory_space<vmem>>) attributes {dimension_semantics = [#tpu.dimension_semantics<parallel>, #tpu.dimension_semantics<parallel>], iteration_bounds = array<i64: 2, 1>, scalar_prefetch = 0 : i64, scratch_operands = 0 : i64, tpu.core_type = #tpu.core_type<tc>, window_params = [{transform_indices = @transform_0, window_bounds = array<i64: 1, 64, 128>}, {pipeline_mode = #tpu.pipeline_mode<synchronous>, transform_indices = @transform_1, window_bounds = array<i64: 128, 384>}, {transform_indices = @transform_2, window_bounds = array<i64: 64, 128>}, {transform_indices = @transform_3, window_bounds = array<i64: 64, 128>}, {transform_indices = @transform_4, window_bounds = array<i64: 1, 64, 128>}, {transform_indices = @transform_5, window_bounds = array<i64: 1, 64, 256>}]} {
    %c0 = arith.constant 0 : index
    %c0_0 = arith.constant 0 : index
    %c0_1 = arith.constant 0 : index
    %0 = vector.load %arg2[%c0, %c0_0, %c0_1] : memref<1x64x128xf32, #tpu.memory_space<vmem>>, vector<1x64x128xf32>
    %1 = vector.shape_cast %0 : vector<1x64x128xf32> to vector<64x128xf32>
    %c0_2 = arith.constant 0 : index
    %c0_3 = arith.constant 0 : index
    %2 = vector.load %arg3[%c0_2, %c0_3] : memref<128x384xf32, #tpu.memory_space<vmem>>, vector<128x384xf32>
    %cst = arith.constant dense<0.000000e+00> : vector<64x384xf32>
    %3 = tpu.matmul %1, %2, %cst {dimension_numbers = #tpu.dot_dimension_numbers<[1], [0], [0], [1], [0, 0, 1, 1], [], []>, precision = #tpu.contract_precision<fp32>} : vector<64x128xf32>, vector<128x384xf32>, vector<64x384xf32> -> vector<64x384xf32>
    %c0_4 = arith.constant 0 : index
    %c0_5 = arith.constant 0 : index
    %4 = vector.load %arg4[%c0_4, %c0_5] : memref<64x128xf32, #tpu.memory_space<vmem>>, vector<64x128xf32>
    %c0_6 = arith.constant 0 : index
    %c0_7 = arith.constant 0 : index
    %5 = vector.load %arg5[%c0_6, %c0_7] : memref<64x128xf32, #tpu.memory_space<vmem>>, vector<64x128xf32>
    %6 = tpu.iota {dimensions = array<i32: 1>} : vector<64x128xi32>
    %c2_i32 = arith.constant 2 : i32
    %c0_i32 = arith.constant 0 : i32
    %7 = arith.cmpi eq, %c2_i32, %c0_i32 : i32
    %c1_i32 = arith.constant 1 : i32
    %8 = arith.select %7, %c1_i32, %c2_i32 : i32
    %9 = vector.broadcast %8 : i32 to vector<64x128xi32>
    %10 = arith.remsi %6, %9 : vector<64x128xi32>
    %c0_i32_8 = arith.constant 0 : i32
    %11 = vector.broadcast %c0_i32_8 : i32 to vector<64x128xi32>
    %12 = arith.cmpi ne, %10, %11 : vector<64x128xi32>
    %c0_i32_9 = arith.constant 0 : i32
    %13 = vector.broadcast %c0_i32_9 : i32 to vector<64x128xi32>
    %14 = arith.cmpi slt, %10, %13 : vector<64x128xi32>
    %c0_i32_10 = arith.constant 0 : i32
    %15 = arith.cmpi slt, %8, %c0_i32_10 : i32
    %16 = vector.broadcast %15 : i1 to vector<64x128xi1>
    %17 = vector.broadcast %16 : vector<64x128xi1> to vector<64x128xi1>
    %18 = arith.xori %14, %17 : vector<64x128xi1>
    %19 = arith.andi %18, %12 : vector<64x128xi1>
    %20 = vector.broadcast %8 : i32 to vector<64x128xi32>
    %21 = arith.addi %10, %20 : vector<64x128xi32>
    %22 = arith.select %19, %21, %10 : vector<64x128xi1>, vector<64x128xi32>
    %c0_i32_11 = arith.constant 0 : i32
    %23 = vector.broadcast %c0_i32_11 : i32 to vector<64x128xi32>
    %24 = arith.cmpi eq, %22, %23 : vector<64x128xi32>
    %25 = vector.extract_strided_slice %3 {offsets = [0, 0], sizes = [64, 128], strides = [1, 1]} : vector<64x384xf32> to vector<64x128xf32>
    %c127_i32 = arith.constant 127 : i32
    %26 = tpu.dynamic_rotate %25 by %c127_i32 dim 1 : vector<64x128xf32>, i32 -> vector<64x128xf32>
    %c1_i32_12 = arith.constant 1 : i32
    %27 = tpu.dynamic_rotate %25 by %c1_i32_12 dim 1 : vector<64x128xf32>, i32 -> vector<64x128xf32>
    %28 = arith.mulf %25, %4 : vector<64x128xf32>
    %29 = arith.select %24, %26, %27 : vector<64x128xi1>, vector<64x128xf32>
    %30 = arith.mulf %29, %5 : vector<64x128xf32>
    %31 = arith.addf %28, %30 : vector<64x128xf32>
    %c0_13 = arith.constant 0 : index
    %c0_14 = arith.constant 0 : index
    %c0_15 = arith.constant 0 : index
    %32 = vector.load %arg6[%c0_13, %c0_14, %c0_15] : memref<1x64x128xf32, #tpu.memory_space<vmem>>, vector<1x64x128xf32>
    %33 = vector.shape_cast %32 : vector<1x64x128xf32> to vector<64x128xf32>
    %34 = vector.shape_cast %31 : vector<64x128xf32> to vector<1x64x128xf32>
    tpu.vector_store %arg6[%c0_13, %c0_14, %c0_15], %34 {strides = array<i32>} : memref<1x64x128xf32, #tpu.memory_space<vmem>>, vector<1x64x128xf32>,
    %35 = vector.extract_strided_slice %3 {offsets = [0, 128], sizes = [64, 128], strides = [1, 1]} : vector<64x384xf32> to vector<64x128xf32>
    %c127_i32_16 = arith.constant 127 : i32
    %36 = tpu.dynamic_rotate %35 by %c127_i32_16 dim 1 : vector<64x128xf32>, i32 -> vector<64x128xf32>
    %c1_i32_17 = arith.constant 1 : i32
    %37 = tpu.dynamic_rotate %35 by %c1_i32_17 dim 1 : vector<64x128xf32>, i32 -> vector<64x128xf32>
    %38 = arith.mulf %35, %4 : vector<64x128xf32>
    %39 = arith.select %24, %36, %37 : vector<64x128xi1>, vector<64x128xf32>
    %40 = arith.mulf %39, %5 : vector<64x128xf32>
    %41 = arith.addf %38, %40 : vector<64x128xf32>
    %c0_18 = arith.constant 0 : index
    %c0_19 = arith.constant 0 : index
    %c0_20 = arith.constant 0 : index
    %42 = vector.load %arg7[%c0_18, %c0_19, %c0_20] : memref<1x64x256xf32, #tpu.memory_space<vmem>>, vector<1x64x128xf32>
    %43 = vector.shape_cast %42 : vector<1x64x128xf32> to vector<64x128xf32>
    %44 = vector.shape_cast %41 : vector<64x128xf32> to vector<1x64x128xf32>
    tpu.vector_store %arg7[%c0_18, %c0_19, %c0_20], %44 {strides = array<i32>} : memref<1x64x256xf32, #tpu.memory_space<vmem>>, vector<1x64x128xf32>,
    %45 = vector.extract_strided_slice %3 {offsets = [0, 256], sizes = [64, 128], strides = [1, 1]} : vector<64x384xf32> to vector<64x128xf32>
    %c127_i32_21 = arith.constant 127 : i32
    %46 = tpu.dynamic_rotate %45 by %c127_i32_21 dim 1 : vector<64x128xf32>, i32 -> vector<64x128xf32>
    %c1_i32_22 = arith.constant 1 : i32
    %47 = tpu.dynamic_rotate %45 by %c1_i32_22 dim 1 : vector<64x128xf32>, i32 -> vector<64x128xf32>
    %48 = arith.mulf %45, %4 : vector<64x128xf32>
    %49 = arith.select %24, %46, %47 : vector<64x128xi1>, vector<64x128xf32>
    %50 = arith.mulf %49, %5 : vector<64x128xf32>
    %51 = arith.addf %48, %50 : vector<64x128xf32>
    %c0_23 = arith.constant 0 : index
    %c0_24 = arith.constant 0 : index
    %c128 = arith.constant 128 : index
    %52 = vector.load %arg7[%c0_23, %c0_24, %c128] : memref<1x64x256xf32, #tpu.memory_space<vmem>>, vector<1x64x128xf32>
    %53 = vector.shape_cast %52 : vector<1x64x128xf32> to vector<64x128xf32>
    %54 = vector.shape_cast %51 : vector<64x128xf32> to vector<1x64x128xf32>
    tpu.vector_store %arg7[%c0_23, %c0_24, %c128], %54 {strides = array<i32>} : memref<1x64x256xf32, #tpu.memory_space<vmem>>, vector<1x64x128xf32>,
    return
  }
  func.func @transform_0(%arg0: i32, %arg1: i32) -> (i32, i32, i32) {
    %c0_i32 = arith.constant 0 : i32
    %c0_i32_0 = arith.constant 0 : i32
    return %arg0, %arg1, %c0_i32 : i32, i32, i32
  }
  func.func @transform_1(%arg0: i32, %arg1: i32) -> (i32, i32) {
    %c0_i32 = arith.constant 0 : i32
    %c0_i32_0 = arith.constant 0 : i32
    %c0_i32_1 = arith.constant 0 : i32
    return %c0_i32, %c0_i32_0 : i32, i32
  }
  func.func @transform_2(%arg0: i32, %arg1: i32) -> (i32, i32) {
    %c0_i32 = arith.constant 0 : i32
    %c0_i32_0 = arith.constant 0 : i32
    return %arg1, %c0_i32 : i32, i32
  }
  func.func @transform_3(%arg0: i32, %arg1: i32) -> (i32, i32) {
    %c0_i32 = arith.constant 0 : i32
    %c0_i32_0 = arith.constant 0 : i32
    return %arg1, %c0_i32 : i32, i32
  }
  func.func @transform_4(%arg0: i32, %arg1: i32) -> (i32, i32, i32) {
    %c0_i32 = arith.constant 0 : i32
    %c0_i32_0 = arith.constant 0 : i32
    return %arg0, %arg1, %c0_i32 : i32, i32, i32
  }
  func.func @transform_5(%arg0: i32, %arg1: i32) -> (i32, i32, i32) {
    %c0_i32 = arith.constant 0 : i32
    %c0_i32_0 = arith.constant 0 : i32
    return %arg0, %arg1, %c0_i32 : i32, i32, i32
  }
}

</mosaic_0001>

<bundles_post_ra>
// kernel: tpu_custom_call.1
= control target key start
LH: loop header
LB: loop body
LE: loop exit
PB: predicated region body
PF: predicated region fallthrough
CT: control target
= control target key end

     0   :  { %s4680_s0 = inlined_call_operand.hbm [shape: f32[2,64,128], index: 0, kind: input, shape index: {}]   ;;  %s4681_s1 = inlined_call_operand.hbm [shape: f32[128,384], index: 1, kind: input, shape index: {}]   ;;  %s4682_s2 = inlined_call_operand.hbm [shape: f32[64,128], index: 2, kind: input, shape index: {}]   ;;  %s4683_s3 = inlined_call_operand.hbm [shape: f32[64,128], index: 3, kind: input, shape index: {}]   ;;  %s4684_s4 = inlined_call_operand.hbm [shape: f32[2,64,128], index: 4, kind: output, shape index: {0}]   ;;  %s4685_s5 = inlined_call_operand.hbm [shape: f32[2,64,256], index: 5, kind: output, shape index: {1}]  }
   0x1   :  { %4745 = sst [smem:[#allocation32_spill]] %s4681_s1 }
   0x2   :  { %4746 = sst [smem:[#allocation33_spill]] %s4682_s2 }
   0x3   :  { %4747 = sst [smem:[#allocation34_spill]] %s4683_s3 }
   0x4   :  { %11 = vsyncpa [#allocation3], 0 }
   0x5   :  { %13 = vsyncpa [#allocation3 + $0x1], 0 }
   0x6   :  { %14 = vsyncpa [#allocation6], 0 }
   0x7   :  { %15 = vsyncpa [#allocation9], 0 }
   0x8   :  { %16 = vsyncpa [#allocation4], 0 }
   0x9   :  { %18 = vsyncpa [#allocation4 + $0x1], 0 }
   0xa   :  { %19 = vsyncpa [#allocation12], 0 }
   0xb   :  { %21 = vsyncpa [#allocation12 + $0x1], 0  ;;  %s2978_s18 = smov 0   ;;  %s2980_s19 = smov 0  }
   0xc   :  { %s2982_s20 = smov 0   ;;  %s2984_s21 = smov 0  }
   0xd   :  { %s2986_s22 = smov 0   ;;  %s2988_s23 = smov 0  }
   0xe LB: > { %s2523_s24 = sadd.s32 4294967295, %s2933_s23   ;;  %s2524_s25 = sadd.s32 4294967294, %s2933_s23   ;;  %s2933_s23 = sphi %s2988_s23, %s27_s23   ;;  %s2929_s22 = sphi %s2986_s22, %s4848_s22   ;;  %s2925_s21 = sphi %s2984_s21, %s4847_s21   ;;  %s2921_s20 = sphi %s2982_s20, %s4846_s20   ;;  %s2917_s19 = sphi %s2980_s19, %s4845_s19   ;;  %s2913_s18 = sphi %s2978_s18, %s4844_s18  }
   0xf   : > { %p61_p0 = scmp.ne.s32.totalorder %s2917_s19, %s2913_s18  ;;  %p3012_p1 = scmp.eq.s32.totalorder %s2523_s24, 0 }
  0x10   : > { %p3016_p2 = scmp.eq.s32.totalorder %s2523_s24, 1  ;;  %p166_p3 = scmp.eq.s32.totalorder %s2524_s25, 1 }
  0x11   : > { %p3022_p4 = por %p3012_p1, %p61_p0  ;;  %p2525_p5 = scmp.ge.s32.totalorder %s2933_s23, 1 }
  0x12   : > { %p3027_p6 = por %p166_p3, %p61_p0  ;;  %p201_p7 = scmp.lt.s32.totalorder %s2933_s23, 3 }
  0x13   : > { %s4752_s1 = sld [smem:[#allocation32_spill]]  ;;  %s2935_s9 = smov [#allocation5]  }
  0x14   : > { %p3035_p8 = pnand %p2525_p5, %p201_p7  ;;  %s214_s10 = sshll.u32 %s2935_s9, 4  ;;  %s215_s10 = int_to_ptr.vmem [resolvable:$true] %s214_s10 }
  0x15   : > { %p2529_p11 = scmp.ge.s32.totalorder %s2933_s23, 2  ;;  %s4755_s2 = sld [smem:[#allocation33_spill]] }
  0x16   : > { %p2601_p9 = pneg %p3035_p8  ;;  %s2936_s15 = smov 384  }
  0x17   : > { %s2937_s16 = smov 24   ;;  %s2938_s17 = smov [#allocation7]  }
  0x18   : > { %p3043_p10 = pnand %p2601_p9, %p3012_p1  ;;  %s231_s24 = sshll.u32 %s2938_s17, 4  ;;  %s232_s24 = int_to_ptr.vmem [resolvable:$true] %s231_s24 }
  0x19   : > { %s212_s7 = sshll.u32 %s4752_s1, 4  ;;  %s4686_s25 = smov 128   ;;  %s213_s7 = int_to_ptr.hbm [resolvable:$true] %s212_s7 }
  0x1a   : > { %2604 = dma.hbm_to_vmem [thread:$0]  (!%p3043_p10), %s213_s7, 6144, %s215_s10, [#allocation6], %s2936_s15, %s2936_s15, %s2937_s16  }
  0x1b   : > { %s229_s14 = sshll.u32 %s4755_s2, 4  ;;  %s4687_s30 = smov 8   ;;  %s230_s14 = int_to_ptr.hbm [resolvable:$true] %s229_s14 }
  0x1c   : > { %2607 = dma.hbm_to_vmem [thread:$0]  (!%p3043_p10), %s230_s14, 1024, %s232_s24, [#allocation6], %s4686_s25, %s4686_s25, %s4687_s30  }
  0x1d   : > { %s4756_s3 = sld [smem:[#allocation34_spill]]  ;;  %s2941_s7 = smov [#allocation8]  }
  0x1e   : > { %s248_s10 = sshll.u32 %s2941_s7, 4  ;;  %s48_s13 = sadd.s32 1, %s2921_s20  ;;  %s249_s10 = int_to_ptr.vmem [resolvable:$true] %s248_s10 }
  0x1f   : > { %s39_s15 = sadd.s32 1, %s2929_s22  ;;  %p55_p12 = scmp.ne.s32.totalorder %s2921_s20, %s2917_s19 }
  0x20   : > { %p41_p13 = scmp.ge.s32.totalorder %s39_s15, 2  ;;  %p56_p0 = scmp.eq.s32.totalorder %s2933_s23, 0 }
  0x21   : > { %p3073_p3 = por %p3016_p2, %p55_p12  ;;  %p2625_p5 = scmp.lt.s32.totalorder %s2933_s23, 2 }
  0x22   : > { %s4850_s15 = smov (%p41_p13, %s39_s15), 0  ;;  %p3080_p7 = por %p56_p0, %p55_p12 }
  0x23   : > { %s246_s12 = sshll.u32 %s4756_s3, 4  ;;  %s262_s16 = sand.u32 1, %s2921_s20   ;;  %s247_s12 = int_to_ptr.hbm [resolvable:$true] %s246_s12 }
  0x24   : > { %2610 = dma.hbm_to_vmem [thread:$0]  (!%p3043_p10), %s247_s12, 1024, %s249_s10, [#allocation9], %s4686_s25, %s4686_s25, %s4687_s30  }
  0x25   : > { %s43_s17 = ssub.s32 %s2929_s22, %s4850_s15  ;;  %s2530_s24 = sshll.u32 %s262_s16, 6 }
  0x26   : > { %p46_p9 = scmp.eq.s32.totalorder %s43_s17, 0  ;;  %s2548_s6 = sshll.u32 %s2929_s22, 6 }
  0x27   : > { %s273_s7 = scalar_lea.hbm %s4680_s0, %s2548_s6  ;;  %s266_s10 = scalar_lea.vmem [#allocation2], %s2530_s24 }
  0x28   : > { %s3089_s27 = scalar_select %p46_p9, %s2921_s20, %s48_s13  }
  0x29   : > { %s276_s25 = sshll.u32 %s266_s10, 4  ;;  %s274_s30 = sshll.u32 %s273_s7, 4  ;;  %s277_s25 = int_to_ptr.vmem [resolvable:$true] %s276_s25  ;;  %s275_s30 = int_to_ptr.hbm [resolvable:$true] %s274_s30 }
  0x2a   : > { %p2612_p2 = pnand %p2625_p5, %p3080_p7  ;;  %s263_s1 = scalar_lea.sflag [#allocation3], %s262_s16 }
  0x2b   : > { %s4759_s2 = smov 8   ;;  %s4760_s3 = smov 128  }
  0x2c   : > { %2614 = dma.hbm_to_vmem [thread:$0]  (!%p2612_p2), %s275_s30, 1024, %s277_s25, %s263_s1, %s4760_s3, %s4760_s3, %s4759_s2  }
  0x2d   : > { %288 = sbr.rel (%p3035_p8) target bundleno = 654 (0x28e), region = 36 }
  0x32   : > { %s3104_s13 = sand.u32 1, %s2917_s19  }
  0x33   : > { %s2534_s17 = sshll.u32 %s3104_s13, 6  ;;  %s291_s24 = scalar_lea.sflag [#allocation3], %s3104_s13 }
  0x34   : > { %s3110_s11 = scalar_lea.vmem [#allocation2], %s2534_s17 }
  0x35   : > { %2892 = dma.done.wait (%p3022_p4), %s291_s24, 1024  }
  0x36   : > { %2894 = vsyncadd (%p3022_p4), %s291_s24, 4294966272 }
  0x37   : > { %2896 = dma.done.wait (%p3012_p1), [#allocation6], 7168  }
  0x38   : > { %2898 = vsyncadd (%p3012_p1), [#allocation6], 4294960128 }
  0x39   : > { %2900 = dma.done.wait (%p3012_p1), [#allocation9], 1024  }
  0x3a   : > { %2902 = vsyncadd (%p3012_p1), [#allocation9], 4294966272  ;;  %v400_v0 = vld [vmem:[#allocation5 + $0x168] sm:$0xff]  ;;  %v397_v1 = vld [vmem:[#allocation5 + $0x150] sm:$0xff]  ;;  %s2942_s1 = smov 1   ;;  %s2943_s2 = smov 127  }
  0x3b   : > { %v394_v2 = vld [vmem:[#allocation5 + $0x138] sm:$0xff]  ;;  %v3124_v3 = vand.u32 4294901760, %v400_v0  ;;  %v3126_v4 = vand.u32 4294901760, %v397_v1  ;;  %v391_v6 = vld [vmem:[#allocation5 + $0x120] sm:$0xff]  ;;  %v388_v7 = vld [vmem:[#allocation5 + $0x108] sm:$0xff]  ;;  %s4283_s3 = scalar_lea.vmem [#allocation10], %s2534_s17 }
  0x3c   : > { %v3128_v5 = vand.u32 4294901760, %v394_v2  ;;  %v385_v8 = vld [vmem:[#allocation5 + $0xf0] sm:$0xff]  ;;  %v3130_v9 = vand.u32 4294901760, %v391_v6  ;;  %v3132_v10 = vand.u32 4294901760, %v388_v7  ;;  %v382_v12 = vld [vmem:[#allocation5 + $0xd8] sm:$0xff]  ;;  %v379_v13 = vld [vmem:[#allocation5 + $0xc0] sm:$0xff] }
  0x3d   : > { %v3134_v11 = vand.u32 4294901760, %v385_v8  ;;  %2551 = vmatpush.msra.mxu2 %v3124_v3  ;;  %v3138_v14 = vsub.f32 %v400_v0, %v3124_v3  ;;  %v3141_v15 = vsub.f32 %v397_v1, %v3126_v4  ;;  %404 = vmatpush.msra.mxu0 %v3124_v3  ;;  %v376_v17 = vld [vmem:[#allocation5 + $0xa8] sm:$0xff]  ;;  %v3147_v18 = vand.u32 4294901760, %v382_v12  ;;  %v373_v25 = vld [vmem:[#allocation5 + $0x90] sm:$0xff]  ;;  %v370_v33 = vld [vmem:[#allocation5 + $0x78] sm:$0xff]  ;;  %s2539_s26 = sshll.u32 %s3104_s13, 7 }
  0x3e   : > { %v3144_v16 = vsub.f32 %v394_v2, %v3128_v5  ;;  %v3150_v19 = vsub.f32 %v391_v6, %v3130_v9  ;;  %v3153_v20 = vsub.f32 %v388_v7, %v3132_v10  ;;  %v3159_v24 = vand.u32 4294901760, %v379_v13  ;;  %v367_v42 = vld [vmem:[#allocation5 + $0x60] sm:$0xff]  ;;  %v364_v49 = vld [vmem:[#allocation5 + $0x48] sm:$0xff]  ;;  %v361_v55 = vld [vmem:[#allocation5 + $0x30] sm:$0xff]  ;;  %s4524_s28 = scalar_lea.vmem [#allocation11], %s2539_s26  ;;  %s2549_s8 = sshll.u32 %s2925_s21, 6 }
  0x3f   : > { %2552 = vmatpush.msra.mxu2 %v3126_v4  ;;  %v502_v21 = vand.u32 4294901760, %v3138_v14  ;;  %v508_v22 = vand.u32 4294901760, %v3141_v15  ;;  %406 = vmatpush.msra.mxu0 %v3126_v4  ;;  %v3163_v27 = vand.u32 4294901760, %v376_v17  ;;  %v3166_v28 = vsub.f32 %v385_v8, %v3134_v11  ;;  %v351_v47 = vld [vmem:[%s3110_s11 + $0x20] sm:$0xff]  ;;  %v358_v62 = vld [vmem:[#allocation5 + $0x18] sm:$0xff]  ;;  %s2343_s16 = scalar_lea.hbm %s4684_s4, %s2549_s8  ;;  %s2344_s6 = sshll.u32 %s4283_s3, 4  ;;  %s2345_s6 = int_to_ptr.vmem [resolvable:$true] %s2344_s6 }
  0x40   : > { %v514_v23 = vand.u32 4294901760, %v3144_v16  ;;  %v520_v26 = vand.u32 4294901760, %v3150_v19  ;;  %v526_v32 = vand.u32 4294901760, %v3153_v20  ;;  %v3183_v35 = vand.u32 4294901760, %v373_v25  ;;  %v355_v2 = vld [vmem:[#allocation5] sm:$0xff]  ;;  %s2346_s9 = sshll.u32 %s2343_s16, 4  ;;  %s2347_s9 = int_to_ptr.hbm [resolvable:$true] %s2346_s9 }
  0x41   : > { %2553 = vmatpush.msra.mxu2 %v3128_v5  ;;  %v503_v29 = vsub.f32 %v3138_v14, %v502_v21  ;;  %v509_v30 = vsub.f32 %v3141_v15, %v508_v22  ;;  %408 = vmatpush.msra.mxu0 %v3128_v5  ;;  %v3186_v36 = vsub.f32 %v382_v12, %v3147_v18  ;;  %v532_v39 = vand.u32 4294901760, %v3166_v28  ;;  %v347_v12 = vld [vmem:[%s3110_s11] sm:$0xff]  ;;  %s2325_s12 = scalar_lea.sflag [#allocation4], %s3104_s13  ;;  %s2825_s7 = sshra.s32 %s2347_s9, 4  ;;  %s2826_s7 = int_to_ptr.hbm [resolvable:$true] %s2825_s7 }
  0x42   : > { %v515_v31 = vsub.f32 %v3144_v16, %v514_v23  ;;  %v521_v34 = vsub.f32 %v3150_v19, %v520_v26  ;;  %v3192_v40 = vsub.f32 %v379_v13, %v3159_v24  ;;  %v3194_v41 = vand.u32 4294901760, %v370_v33  ;;  %s2827_s10 = scalar_lea.hbm %s2826_s7, 64  ;;  %p2832_p10 = scmp.lt.s32.totalorder %s2826_s7, %s4684_s4 }
  0x43   : > { %2554 = vmatpush.msra.mxu2 %v3130_v9  ;;  %v504_v37 = vand.u32 4294901760, %v503_v29  ;;  %v510_v38 = vand.u32 4294901760, %v509_v30  ;;  %410 = vmatpush.msra.mxu0 %v3130_v9  ;;  %v527_v44 = vsub.f32 %v3153_v20, %v526_v32  ;;  %v4696_v45 = vand.u32 4294901760, %v3186_v36  ;;  %v352_v30 = vld [vmem:[%s3110_s11 + $0x28] sm:$0xff]  ;;  %p2828_p1 = scmp.ne.s32.totalorder %s2826_s7, %s2827_s10 }
  0x44   : > { %v516_v43 = vand.u32 4294901760, %v515_v31  ;;  %v3202_v46 = vsub.f32 %v376_v17, %v3163_v27  ;;  %v4694_v48 = vand.u32 4294901760, %v3192_v40  ;;  %v522_v50 = vand.u32 4294901760, %v521_v34 }
  0x45   : > { %2555 = vmatpush.msra.mxu2 %v3132_v10  ;;  %2567 = vmatpush.msra.mxu3 %v504_v37  ;;  %v533_v51 = vsub.f32 %v3166_v28, %v532_v39  ;;  %v3211_v52 = vand.u32 4294901760, %v367_v42  ;;  %v3214_v53 = vsub.f32 %v373_v25, %v3183_v35  ;;  %v3218_v56 = vand.u32 4294901760, %v351_v47  ;;  %p2829_p4 = pnand %p2828_p1, %p3073_p3 }
  0x46   : > { %505 = vmatpush.msra.mxu1 %v504_v37  ;;  %412 = vmatpush.msra.mxu0 %v3132_v10  ;;  %v4692_v54 = vand.u32 4294901760, %v3202_v46  ;;  %v528_v57 = vand.u32 4294901760, %v527_v44  ;;  %v539_v58 = vsub.f32 %v3186_v36, %v4696_v45  ;;  %v3224_v59 = vand.u32 4294901760, %v364_v49 }
  0x47   : > { %2556 = vmatpush.msra.mxu2 %v3134_v11  ;;  %2568 = vmatpush.msra.mxu3 %v510_v38  ;;  %v3227_v60 = vsub.f32 %v370_v33, %v3194_v41  ;;  %v545_v61 = vsub.f32 %v3192_v40, %v4694_v48  ;;  %v534_v63 = vand.u32 4294901760, %v533_v51  ;;  %v3234_v0 = vand.u32 4294901760, %v361_v55  ;;  %p2830_p8 = pneg %p2829_p4 }
  0x48   : > { %511 = vmatpush.msra.mxu1 %v510_v38  ;;  %414 = vmatpush.msra.mxu0 %v3134_v11  ;;  %v4690_v1 = vand.u32 4294901760, %v3214_v53  ;;  %v3238_v6 = vsub.f32 %v367_v42, %v3211_v52  ;;  %v551_v7 = vsub.f32 %v3202_v46, %v4692_v54  ;;  %v3245_v8 = vsub.f32 %v351_v47, %v3218_v56 }
  0x49   : > { %2557 = vmatpush.msra.mxu2 %v3147_v18  ;;  %2569 = vmatpush.msra.mxu3 %v516_v43  ;;  %v540_v13 = vand.u32 4294901760, %v539_v58  ;;  %v3249_v17 = vand.u32 4294901760, %v358_v62  ;;  %v4689_v25 = vand.u32 4294901760, %v3227_v60  ;;  %v3253_v29 = vsub.f32 %v364_v49, %v3224_v59 }
  0x4a   : > { %517 = vmatpush.msra.mxu1 %v516_v43  ;;  %416 = vmatpush.msra.mxu0 %v3147_v18  ;;  %v546_v31 = vand.u32 4294901760, %v545_v61  ;;  %v3256_v33 = vand.u32 4294901760, %v355_v2  ;;  %v557_v34 = vsub.f32 %v3214_v53, %v4690_v1  ;;  %v4688_v37 = vand.u32 4294901760, %v3238_v6 }
  0x4b   : > { %2558 = vmatpush.msra.mxu2 %v3159_v24  ;;  %2570 = vmatpush.msra.mxu3 %v522_v50  ;;  %v3265_v38 = vsub.f32 %v361_v55, %v3234_v0  ;;  %v3267_v42 = vand.u32 4294901760, %v347_v12  ;;  %v552_v43 = vand.u32 4294901760, %v551_v7  ;;  %v3270_v44 = vand.u32 4294901760, %v3245_v8 }
  0x4c   : > { %523 = vmatpush.msra.mxu1 %v522_v50  ;;  %418 = vmatpush.msra.mxu0 %v3159_v24  ;;  %v3273_v47 = vand.u32 4294901760, %v352_v30  ;;  %v563_v49 = vsub.f32 %v3227_v60, %v4689_v25  ;;  %v4691_v50 = vand.u32 4294901760, %v3253_v29  ;;  %v3281_v51 = vsub.f32 %v358_v62, %v3249_v17  ;;  %v348_v25 = vld [vmem:[%s3110_s11 + $0x8] sm:$0xff] }
  0x4d   : > { %2559 = vmatpush.msra.mxu2 %v3163_v27  ;;  %2571 = vmatpush.msra.mxu3 %v528_v57  ;;  %v3284_v55 = vsub.f32 %v347_v12, %v3267_v42  ;;  %v569_v58 = vsub.f32 %v3238_v6, %v4688_v37  ;;  %v4693_v61 = vand.u32 4294901760, %v3265_v38  ;;  %v3293_v62 = vsub.f32 %v355_v2, %v3256_v33 }
  0x4e   : > { %529 = vmatpush.msra.mxu1 %v528_v57  ;;  %420 = vmatpush.msra.mxu0 %v3163_v27  ;;  %v558_v57 = vand.u32 4294901760, %v557_v34  ;;  %v3299_v7 = vsub.f32 %v352_v30, %v3273_v47  ;;  %v575_v2 = vsub.f32 %v3253_v29, %v4691_v50  ;;  %v353_v34 = vld [vmem:[%s3110_s11 + $0x30] sm:$0xff] }
  0x4f   : > { %2560 = vmatpush.msra.mxu2 %v3183_v35  ;;  %2572 = vmatpush.msra.mxu3 %v534_v63  ;;  %4761 = vst [vmem:[#allocation18_spill] sm:$0xff] %v3284_v55  ;;  %v3302_v12 = vand.u32 4294901760, %v3284_v55  ;;  %v570_v30 = vand.u32 4294901760, %v569_v58  ;;  %v581_v37 = vsub.f32 %v3265_v38, %v4693_v61  ;;  %v3325_v54 = vand.u32 4294901760, %v353_v34 }
  0x50   : > { %535 = vmatpush.msra.mxu1 %v534_v63  ;;  %422 = vmatpush.msra.mxu0 %v3183_v35  ;;  %v470_v63 = vsub.f32 %v3245_v8, %v3270_v44  ;;  %v3320_v50 = vand.u32 4294901760, %v3299_v7  ;;  %v576_v58 = vand.u32 4294901760, %v575_v2 }
  0x51   : > { %2561 = vmatpush.msra.mxu2 %v3194_v41  ;;  %2573 = vmatpush.msra.mxu3 %v540_v13  ;;  %4762 = vst [vmem:[#allocation19_spill] sm:$0xff] %v3302_v12  ;;  %v582_v61 = vand.u32 4294901760, %v581_v37  ;;  %v354_v37 = vld [vmem:[%s3110_s11 + $0x38] sm:$0xff] }
  0x52   : > { %541 = vmatpush.msra.mxu1 %v540_v13  ;;  %424 = vmatpush.msra.mxu0 %v3194_v41  ;;  %v564_v13 = vand.u32 4294901760, %v563_v49  ;;  %v4697_v49 = vand.u32 4294901760, %v3293_v62  ;;  %v3317_v1 = vand.u32 4294901760, %v470_v63  ;;  %v478_v2 = vsub.f32 %v3299_v7, %v3320_v50 }
  0x53   : > { %2562 = vmatpush.msra.mxu2 %v3211_v52  ;;  %2574 = vmatpush.msra.mxu3 %v546_v31 }
  0x54   : > { %547 = vmatpush.msra.mxu1 %v546_v31  ;;  %426 = vmatpush.msra.mxu0 %v3211_v52  ;;  %v4695_v31 = vand.u32 4294901760, %v3281_v51  ;;  %4763 = vst [vmem:[#allocation20_spill] sm:$0xff] %v3317_v1  ;;  %v593_v48 = vsub.f32 %v3293_v62, %v4697_v49 }
  0x55   : > { %2563 = vmatpush.msra.mxu2 %v3224_v59  ;;  %2575 = vmatpush.msra.mxu3 %v552_v43 }
  0x56   : > { %553 = vmatpush.msra.mxu1 %v552_v43  ;;  %428 = vmatpush.msra.mxu0 %v3224_v59  ;;  %v438_v43 = vsub.f32 %v3284_v55, %v3302_v12  ;;  %v587_v63 = vsub.f32 %v3281_v51, %v4695_v31 }
  0x57   : > { %2564 = vmatpush.msra.mxu2 %v3234_v0  ;;  %2576 = vmatpush.msra.mxu3 %v558_v57 }
  0x58   : > { %559 = vmatpush.msra.mxu1 %v558_v57  ;;  %430 = vmatpush.msra.mxu0 %v3234_v0  ;;  %v3332_v57 = vand.u32 4294901760, %v348_v25  ;;  %v3341_v31 = vand.u32 4294901760, %v438_v43  ;;  %v588_v45 = vand.u32 4294901760, %v587_v63  ;;  %v3353_v43 = vand.u32 4294901760, %v478_v2 }
  0x59   : > { %2565 = vmatpush.msra.mxu2 %v3249_v17  ;;  %2577 = vmatpush.msra.mxu3 %v564_v13  ;;  %v3359_v63 = vand.u32 4294901760, %v354_v37 }
  0x5a   : > { %565 = vmatpush.msra.mxu1 %v564_v13  ;;  %432 = vmatpush.msra.mxu0 %v3249_v17  ;;  %v3344_v13 = vsub.f32 %v353_v34, %v3325_v54  ;;  %v3350_v49 = vsub.f32 %v348_v25, %v3332_v57  ;;  %4765 = vst [vmem:[#allocation22_spill] sm:$0xff] %v3353_v43 }
  0x5b   : > { %2566 = vmatpush.msra.mxu2 %v3256_v33  ;;  %2578 = vmatpush.msra.mxu3 %v570_v30 }
  0x5c   : > { %472 = vmatmul.f32.vlgmr.msra.gmra.mxu2 %v3317_v1  ;;  %571 = vmatpush.msra.mxu1 %v570_v30  ;;  %4764 = vst [vmem:[#allocation21_spill] sm:$0xff] %v3350_v49  ;;  %v594_v30 = vand.u32 4294901760, %v593_v48  ;;  %v3357_v34 = vand.u32 4294901760, %v3344_v13  ;;  %v3365_v48 = vand.u32 4294901760, %v3350_v49  ;;  %v356_v1 = vld [vmem:[#allocation5 + $0x8] sm:$0xff] }
  0x5d   : > { %2579 = vmatpush.msra.mxu3 %v576_v58  ;;  %631 = vmatpush.msrb.mxu2 %v3138_v14 }
  0x5e   : > { %577 = vmatpush.msra.mxu1 %v576_v58  ;;  %434 = vmatpush.msra.mxu0 %v3256_v33  ;;  %4766 = vst [vmem:[#allocation23_spill] sm:$0xff] %v3365_v48  ;;  %v486_v25 = vsub.f32 %v3344_v13, %v3357_v34  ;;  %v446_v14 = vsub.f32 %v3350_v49, %v3365_v48 }
  0x5f   : > { %2580 = vmatpush.msra.mxu3 %v582_v61  ;;  %634 = vmatpush.msrb.mxu2 %v3141_v15 }
  0x60   : > { %583 = vmatpush.msra.mxu1 %v582_v61  ;;  %440 = vmatmul.f32.vlgmr.msra.gmra.mxu0 %v3341_v31  ;;  %v3373_v61 = vsub.f32 %v354_v37, %v3359_v63  ;;  %v3386_v58 = vand.u32 4294901760, %v486_v25 }
  0x61   : > { %2581 = vmatpush.msra.mxu3 %v588_v45  ;;  %637 = vmatpush.msrb.mxu2 %v3144_v16 }
  0x62   : > { %589 = vmatpush.msra.mxu1 %v588_v45  ;;  %802 = vmatpush.msrb.mxu0 %v502_v21  ;;  %4767 = vst [vmem:[#allocation24_spill] sm:$0xff] %v3373_v61  ;;  %v349_v45 = vld [vmem:[%s3110_s11 + $0x10] sm:$0xff]  ;;  %v3392_v15 = vand.u32 4294901760, %v3373_v61 }
  0x63   : > { %2582 = vmatpush.msra.mxu3 %v594_v30  ;;  %640 = vmatpush.msrb.mxu2 %v3150_v19  ;;  %v3384_v21 = vand.u32 4294901760, %v349_v45  ;;  %4768 = vst [vmem:[#allocation25_spill] sm:$0xff] %v3386_v58 }
  0x64   : > { %480 = vmatmul.f32.gmra.mxu2 %v3353_v43  ;;  %613 = vmatmul.f32.vlgmr.msra.gmra.mxu3 %v3218_v56 }
  0x65   : > { %719 = vmatpush.msrb.mxu3 %v3124_v3  ;;  %643 = vmatpush.msrb.mxu2 %v3153_v20  ;;  %v3404_v16 = vsub.f32 %v349_v45, %v3384_v21  ;;  %v398_v20 = vld [vmem:[#allocation5 + $0x158] sm:$0xff] }
  0x66   : > { %595 = vmatpush.msra.mxu1 %v594_v30  ;;  %806 = vmatpush.msrb.mxu0 %v508_v22  ;;  %v3399_v22 = vand.u32 4294901760, %v446_v14  ;;  %v4774_v14 = vand.u32 4294901760, %v3192_v40 }
  0x67   : > { %721 = vmatpush.msrb.mxu3 %v3126_v4  ;;  %646 = vmatpush.msrb.mxu2 %v3166_v28  ;;  %4769 = vst [vmem:[#allocation26_spill] sm:$0xff] %v3404_v16  ;;  %v3418_v19 = vand.u32 4294901760, %v3404_v16  ;;  %v3447_v28 = vand.u32 4294901760, %v398_v20 }
  0x68   : > { %597 = vmatmul.f32.vlgmr.msra.gmra.mxu1 %v3267_v42  ;;  %810 = vmatpush.msrb.mxu0 %v514_v23  ;;  %v494_v23 = vsub.f32 %v3373_v61, %v3392_v15 }
  0x69   : > { %723 = vmatpush.msrb.mxu3 %v3128_v5  ;;  %649 = vmatpush.msrb.mxu2 %v3186_v36  ;;  %4770 = vst [vmem:[#allocation27_spill] sm:$0xff] %v3418_v19 }
  0x6a   : > { %897 = vmatpush.msrb.mxu1 %v3124_v3  ;;  %814 = vmatpush.msrb.mxu0 %v520_v26  ;;  %v350_v3 = vld [vmem:[%s3110_s11 + $0x18] sm:$0xff]  ;;  %v3421_v26 = vand.u32 4294901760, %v494_v23  ;;  %s2831_s11 = scalar_lea.hbm %s4684_s4, 128 }
  0x6b   : > { %725 = vmatpush.msrb.mxu3 %v3130_v9  ;;  %652 = vmatpush.msrb.mxu2 %v3192_v40  ;;  %v3425_v2 = vand.u32 4294901760, %v350_v3  ;;  %p2833_p12 = scmp.lt.s32.totalorder %s2831_s11, %s2827_s10 }
  0x6c   : > { %488 = vmatmul.f32.gmra.mxu2 %v3386_v58  ;;  %617 = vmatmul.f32.gmra.mxu3 %v3273_v47  ;;  %4771 = vst [vmem:[#allocation28_spill] sm:$0xff] %v3421_v26 }
  0x6d   : > { %727 = vmatpush.msrb.mxu3 %v3132_v10  ;;  %655 = vmatpush.msrb.mxu2 %v3202_v46  ;;  %v3441_v37 = vsub.f32 %v350_v3, %v3425_v2  ;;  %p2834_p13 = por %p2833_p12, %p2832_p10 }
  0x6e   : > { %899 = vmatpush.msrb.mxu1 %v3126_v4  ;;  %448 = vmatmul.f32.gmra.mxu0 %v3399_v22  ;;  %v401_v4 = vld [vmem:[#allocation5 + $0x170] sm:$0xff] }
  0x6f   : > { %729 = vmatpush.msrb.mxu3 %v3134_v11  ;;  %658 = vmatpush.msrb.mxu2 %v3214_v53  ;;  %4772 = vst [vmem:[#allocation29_spill] sm:$0xff] %v3441_v37  ;;  %v3460_v45 = vand.u32 4294901760, %v3441_v37  ;;  %p2835_p0 = pnand %p2834_p13, %p2830_p8 }
  0x70   : > { %901 = vmatpush.msrb.mxu1 %v3128_v5  ;;  %818 = vmatpush.msrb.mxu0 %v526_v32  ;;  %v454_v5 = vsub.f32 %v3404_v16, %v3418_v19  ;;  %v3438_v32 = vand.u32 4294901760, %v401_v4 }
  0x71   : > { %731 = vmatpush.msrb.mxu3 %v3147_v18  ;;  %661 = vmatpush.msrb.mxu2 %v3227_v60  ;;  %v462_v40 = vsub.f32 %v3441_v37, %v3460_v45 }
  0x72   : > { %903 = vmatpush.msrb.mxu1 %v3130_v9  ;;  %822 = vmatpush.msrb.mxu0 %v532_v39  ;;  %v395_v9 = vld [vmem:[#allocation5 + $0x140] sm:$0xff]  ;;  %v4773_v39 = vand.u32 4294901760, %v3186_v36  ;;  %v3452_v30 = vand.u32 4294901760, %v454_v5  ;;  %v3457_v25 = vsub.f32 %v401_v4, %v3438_v32  ;;  %v3470_v36 = vsub.f32 %v398_v20, %v3447_v28  ;;  %v386_v5 = vld [vmem:[#allocation5 + $0xf8] sm:$0xff] }
  0x73   : > { %733 = vmatpush.msrb.mxu3 %v3159_v24  ;;  %664 = vmatpush.msrb.mxu2 %v3238_v6  ;;  %v4775_v20 = vand.u32 4294901760, %v3202_v46  ;;  %v3508_v46 = vand.u32 4294901760, %v386_v5 }
  0x74   : > { %496 = vmatmul.f32.gmra.mxu2 %v3421_v26  ;;  %601 = vmatmul.f32.gmra.mxu1 %v3332_v57  ;;  %v4700_v23 = vand.u32 4294901760, %v3457_v25  ;;  %v4777_v26 = vand.u32 4294901760, %v3214_v53  ;;  %v380_v53 = vld [vmem:[#allocation5 + $0xc8] sm:$0xff] }
  0x75   : > { %621 = vmatmul.f32.gmra.mxu3 %v3325_v54  ;;  %667 = vmatpush.msrb.mxu2 %v3253_v29 }
  0x76   : > { %735 = vmatpush.msrb.mxu3 %v3163_v27  ;;  %905 = vmatpush.msrb.mxu1 %v3132_v10  ;;  %v3462_v10 = vand.u32 4294901760, %v395_v9 }
  0x77   : > { %670 = vmatpush.msrb.mxu2 %v3265_v38  ;;  %826 = vmatpush.msrb.mxu0 %v4773_v39  ;;  %v3496_v39 = vand.u32 4294901760, %v462_v40  ;;  %v4778_v40 = vand.u32 4294901760, %v3470_v36 }
  0x78   : > { %737 = vmatpush.msrb.mxu3 %v3183_v35  ;;  %907 = vmatpush.msrb.mxu1 %v3134_v11  ;;  %v392_v11 = vld [vmem:[#allocation5 + $0x128] sm:$0xff]  ;;  %v3480_v3 = vsub.f32 %v395_v9, %v3462_v10 }
  0x79   : > { %673 = vmatpush.msrb.mxu2 %v3281_v51  ;;  %830 = vmatpush.msrb.mxu0 %v4774_v14  ;;  %v3484_v4 = vand.u32 4294901760, %v392_v11  ;;  %4776 = vst [vmem:[#allocation30_spill] sm:$0xff] %v3496_v39  ;;  %v1061_v14 = vsub.f32 %v3457_v25, %v4700_v23  ;;  %v1067_v23 = vsub.f32 %v3470_v36, %v4778_v40  ;;  %v3537_v40 = vand.u32 4294901760, %v380_v53 }
  0x7a   : > { %739 = vmatpush.msrb.mxu3 %v3194_v41  ;;  %909 = vmatpush.msrb.mxu1 %v3147_v18  ;;  %v389_v18 = vld [vmem:[#allocation5 + $0x110] sm:$0xff] }
  0x7b   : > { %676 = vmatpush.msrb.mxu2 %v3293_v62  ;;  %456 = vmatmul.f32.gmra.mxu0 %v3452_v30  ;;  %v3492_v9 = vand.u32 4294901760, %v389_v18 }
  0x7c   : > { %741 = vmatpush.msrb.mxu3 %v3211_v52  ;;  %911 = vmatpush.msrb.mxu1 %v3159_v24  ;;  %v4779_v24 = vand.u32 4294901760, %v3227_v60  ;;  %v4781_v60 = vand.u32 4294901760, %v3238_v6  ;;  %v4782_v6 = vand.u32 4294901760, %v3253_v29 }
  0x7d   : > { %605 = vmatmul.f32.gmra.mxu1 %v3384_v21  ;;  %625 = vmatmul.f32.gmra.mxu3 %v3359_v63 }
  0x7e   : > { %679 = vmatmul.f32.vlgmr.msrb.gmra.mxu2 %v3284_v55  ;;  %743 = vmatpush.msrb.mxu3 %v3224_v59 }
  0x7f   : > { %834 = vmatpush.msrb.mxu0 %v4775_v20  ;;  %913 = vmatpush.msrb.mxu1 %v3163_v27  ;;  %v3506_v27 = vsub.f32 %v392_v11, %v3484_v4  ;;  %v383_v20 = vld [vmem:[#allocation5 + $0xe0] sm:$0xff]  ;;  %v4780_v11 = vand.u32 4294901760, %v3480_v3 }
  0x80   : > { %745 = vmatpush.msrb.mxu3 %v3234_v0  ;;  %962 = vmatpush.msra.mxu2 %v3438_v32  ;;  %v3526_v43 = vand.u32 4294901760, %v383_v20 }
  0x81   : > { %838 = vmatpush.msrb.mxu0 %v4777_v26  ;;  %915 = vmatpush.msrb.mxu1 %v3183_v35  ;;  %v3519_v35 = vsub.f32 %v389_v18, %v3492_v9  ;;  %v1062_v26 = vand.u32 4294901760, %v1061_v14  ;;  %v1073_v58 = vsub.f32 %v3480_v3, %v4780_v11  ;;  %v3533_v18 = vsub.f32 %v386_v5, %v3508_v46 }
  0x82   : > { %747 = vmatpush.msrb.mxu3 %v3249_v17  ;;  %964 = vmatpush.msra.mxu2 %v3447_v28  ;;  %v1068_v14 = vand.u32 4294901760, %v1067_v23  ;;  %v3545_v11 = vsub.f32 %v383_v20, %v3526_v43  ;;  %v4783_v23 = vand.u32 4294901760, %v3265_v38  ;;  %v4784_v29 = vand.u32 4294901760, %v3506_v27 }
  0x83   : > { %842 = vmatpush.msrb.mxu0 %v4779_v24  ;;  %917 = vmatpush.msrb.mxu1 %v3194_v41  ;;  %v377_v24 = vld [vmem:[#allocation5 + $0xb0] sm:$0xff]  ;;  %v1074_v5 = vand.u32 4294901760, %v1073_v58  ;;  %v374_v41 = vld [vmem:[#allocation5 + $0x98] sm:$0xff]  ;;  %v4785_v20 = vand.u32 4294901760, %v3281_v51 }
  0x84   : > { %749 = vmatpush.msrb.mxu3 %v3256_v33  ;;  %464 = vmatmul.f32.gmra.mxu0 %v3496_v39  ;;  %v3560_v58 = vand.u32 4294901760, %v374_v41 }
  0x85   : > { %846 = vmatpush.msrb.mxu0 %v4781_v60  ;;  %919 = vmatpush.msrb.mxu1 %v3211_v52  ;;  %v4707_v52 = vand.u32 4294901760, %v3519_v35  ;;  %v3547_v60 = vand.u32 4294901760, %v377_v24 }
  0x86   : > { %609 = vmatmul.f32.gmra.mxu1 %v3425_v2  ;;  %684 = vmatmul.f32.gmra.mxu2 %v3350_v49 }
  0x87   : > { %753 = vmatmul.f32.vlgmr.msrb.gmra.mxu3 %v3302_v12  ;;  %850 = vmatpush.msrb.mxu0 %v4782_v6  ;;  %v1079_v6 = vsub.f32 %v3506_v27, %v4784_v29  ;;  %v1085_v38 = vsub.f32 %v3519_v35, %v4707_v52 }
  0x88   : > { %1063 = vmatpush.msra.mxu3 %v1062_v26  ;;  %921 = vmatpush.msrb.mxu1 %v3224_v59  ;;  %v4705_v26 = vand.u32 4294901760, %v3533_v18  ;;  %v3558_v59 = vsub.f32 %v380_v53, %v3537_v40  ;;  %v3571_v53 = vsub.f32 %v377_v24, %v3547_v60 }
  0x89   : > { %854 = vmatpush.msrb.mxu0 %v4783_v23  ;;  %966 = vmatpush.msra.mxu2 %v3462_v10  ;;  %v371_v23 = vld [vmem:[#allocation5 + $0x80] sm:$0xff]  ;;  %v1080_v51 = vand.u32 4294901760, %v1079_v6 }
  0x8a   : > { %923 = vmatpush.msrb.mxu1 %v3234_v0  ;;  %1069 = vmatpush.msra.mxu3 %v1068_v14  ;;  %v4706_v0 = vand.u32 4294901760, %v3545_v11  ;;  %v4786_v14 = vand.u32 4294901760, %v3293_v62  ;;  %v1091_v29 = vsub.f32 %v3533_v18, %v4705_v26  ;;  %v3585_v24 = vand.u32 4294901760, %v371_v23  ;;  %v365_v26 = vld [vmem:[#allocation5 + $0x50] sm:$0xff] }
  0x8b   : > { %858 = vmatpush.msrb.mxu0 %v4785_v20  ;;  %968 = vmatpush.msra.mxu2 %v3484_v4  ;;  %v1086_v62 = vand.u32 4294901760, %v1085_v38  ;;  %v4711_v6 = vand.u32 4294901760, %v3571_v53  ;;  %v368_v20 = vld [vmem:[#allocation5 + $0x68] sm:$0xff] }
  0x8c   : > { %925 = vmatpush.msrb.mxu1 %v3249_v17  ;;  %1075 = vmatpush.msra.mxu3 %v1074_v5  ;;  %v4710_v17 = vand.u32 4294901760, %v3558_v59  ;;  %v3583_v5 = vsub.f32 %v374_v41, %v3560_v58  ;;  %v1092_v41 = vand.u32 4294901760, %v1091_v29  ;;  %v3605_v52 = vsub.f32 %v371_v23, %v3585_v24 }
  0x8d   : > { %862 = vmatpush.msrb.mxu0 %v4786_v14  ;;  %970 = vmatpush.msra.mxu2 %v3492_v9  ;;  %v3596_v14 = vand.u32 4294901760, %v368_v20  ;;  %v1109_v29 = vsub.f32 %v3571_v53, %v4711_v6 }
  0x8e   : > { %927 = vmatpush.msrb.mxu1 %v3256_v33  ;;  %689 = vmatmul.f32.gmra.mxu2 %v3404_v16  ;;  %v1097_v33 = vsub.f32 %v3545_v11, %v4706_v0  ;;  %v1103_v38 = vsub.f32 %v3558_v59, %v4710_v17  ;;  %v4716_v0 = vand.u32 4294901760, %v3583_v5  ;;  %v3616_v17 = vand.u32 4294901760, %v365_v26 }
  0x8f   : > { %759 = vmatmul.f32.gmra.mxu3 %v3365_v48  ;;  %864 = vmatmul.f32.vlgmr.msrb.gmra.mxu0 %v3267_v42  ;;  %v3614_v16 = vsub.f32 %v368_v20, %v3596_v14  ;;  %v1110_v20 = vand.u32 4294901760, %v1109_v29  ;;  %v4787_v29 = vand.u32 4294901760, %v3605_v52  ;;  %v3648_v48 = vand.u32 4294901760, %v356_v1 }
  0x90   : > { %929 = vmatmul.f32.vlgmr.msrb.gmra.mxu1 %v3267_v42  ;;  %1189 = vmatpush.msra.mxu0 %v3457_v25  ;;  %v1104_v23 = vand.u32 4294901760, %v1103_v38  ;;  %v3630_v6 = vsub.f32 %v365_v26, %v3616_v17  ;;  %v362_v38 = vld [vmem:[#allocation5 + $0x38] sm:$0xff] }
  0x91   : > { %1277 = vmatpush.msra.mxu1 %v3438_v32  ;;  %1081 = vmatpush.msra.mxu3 %v1080_v51  ;;  %v1098_v51 = vand.u32 4294901760, %v1097_v33  ;;  %v1121_v26 = vsub.f32 %v3605_v52, %v4787_v29 }
  0x92   : > { %1192 = vmatpush.msra.mxu0 %v3470_v36  ;;  %972 = vmatpush.msra.mxu2 %v3508_v46 }
  0x93   : > { %1279 = vmatpush.msra.mxu1 %v3447_v28  ;;  %1087 = vmatpush.msra.mxu3 %v1086_v62  ;;  %v1115_v62 = vsub.f32 %v3583_v5, %v4716_v0  ;;  %v3634_v0 = vand.u32 4294901760, %v362_v38 }
  0x94   : > { %1195 = vmatpush.msra.mxu0 %v3480_v3  ;;  %974 = vmatpush.msra.mxu2 %v3526_v43 }
  0x95   : > { %1281 = vmatpush.msra.mxu1 %v3462_v10  ;;  %1093 = vmatpush.msra.mxu3 %v1092_v41  ;;  %v4723_v41 = vand.u32 4294901760, %v3630_v6 }
  0x96   : > { %694 = vmatmul.f32.gmra.mxu2 %v3441_v37  ;;  %1198 = vmatpush.msra.mxu0 %v3506_v27  ;;  %v359_v37 = vld [vmem:[#allocation5 + $0x20] sm:$0xff] }
  0x97   : > { %765 = vmatmul.f32.gmra.mxu3 %v3418_v19  ;;  %868 = vmatmul.f32.gmra.mxu0 %v3332_v57  ;;  %v3636_v33 = vand.u32 4294901760, %v359_v37  ;;  %v3646_v19 = vsub.f32 %v362_v38, %v3634_v0  ;;  %v1122_v38 = vand.u32 4294901760, %v1121_v26  ;;  %v1133_v49 = vsub.f32 %v3630_v6, %v4723_v41 }
  0x98   : > { %933 = vmatmul.f32.gmra.mxu1 %v3332_v57  ;;  %1099 = vmatpush.msra.mxu3 %v1098_v51  ;;  %v1116_v51 = vand.u32 4294901760, %v1115_v62 }
  0x99   : > { %1283 = vmatpush.msra.mxu1 %v3484_v4  ;;  %1201 = vmatpush.msra.mxu0 %v3519_v35  ;;  %v3657_v29 = vsub.f32 %v359_v37, %v3636_v33  ;;  %v1134_v26 = vand.u32 4294901760, %v1133_v49 }
  0x9a   : > { %976 = vmatpush.msra.mxu2 %v3537_v40  ;;  %1105 = vmatpush.msra.mxu3 %v1104_v23  ;;  %v4788_v23 = vand.u32 4294901760, %v3614_v16 }
  0x9b   : > { %1285 = vmatpush.msra.mxu1 %v3492_v9  ;;  %1204 = vmatpush.msra.mxu0 %v3533_v18 }
  0x9c   : > { %978 = vmatpush.msra.mxu2 %v3547_v60  ;;  %1111 = vmatpush.msra.mxu3 %v1110_v20  ;;  %v1127_v62 = vsub.f32 %v3614_v16, %v4788_v23  ;;  %v4726_v20 = vand.u32 4294901760, %v3646_v19  ;;  %v3667_v23 = vsub.f32 %v356_v1, %v3648_v48 }
  0x9d   : > { %1287 = vmatpush.msra.mxu1 %v3508_v46  ;;  %1207 = vmatpush.msra.mxu0 %v3545_v11 }
  0x9e   : > { %699 = vmatmul.f32.gmra.mxu2 %v3245_v8  ;;  %1117 = vmatpush.msra.mxu3 %v1116_v51  ;;  %v1128_v37 = vand.u32 4294901760, %v1127_v62  ;;  %v4725_v51 = vand.u32 4294901760, %v3657_v29  ;;  %v1139_v1 = vsub.f32 %v3646_v19, %v4726_v20  ;;  %v4724_v41 = vand.u32 4294901760, %v3667_v23 }
  0x9f   : > { %771 = vmatmul.f32.gmra.mxu3 %v3460_v45  ;;  %872 = vmatmul.f32.gmra.mxu0 %v3384_v21 }
  0xa0   : > { %937 = vmatmul.f32.gmra.mxu1 %v3384_v21  ;;  %980 = vmatpush.msra.mxu2 %v3560_v58  ;;  %v1145_v62 = vsub.f32 %v3657_v29, %v4725_v51  ;;  %v1140_v49 = vand.u32 4294901760, %v1139_v1  ;;  %v402_v1 = vld [vmem:[#allocation5 + $0x178] sm:$0xff]  ;;  %v4790_v51 = vand.u32 4294901760, %v3470_v36 }
  0xa1   : > { %1289 = vmatpush.msra.mxu1 %v3526_v43  ;;  %1210 = vmatpush.msra.mxu0 %v3558_v59 }
  0xa2   : > { %982 = vmatpush.msra.mxu2 %v3585_v24  ;;  %1123 = vmatpush.msra.mxu3 %v1122_v38  ;;  %v1151_v38 = vsub.f32 %v3667_v23, %v4724_v41 }
  0xa3   : > { %1291 = vmatpush.msra.mxu1 %v3537_v40  ;;  %1213 = vmatpush.msra.mxu0 %v3571_v53 }
  0xa4   : > { %984 = vmatpush.msra.mxu2 %v3596_v14  ;;  %1129 = vmatpush.msra.mxu3 %v1128_v37  ;;  %v1146_v37 = vand.u32 4294901760, %v1145_v62  ;;  %v399_v62 = vld [vmem:[#allocation5 + $0x160] sm:$0xff] }
  0xa5   : > { %1293 = vmatpush.msra.mxu1 %v3547_v60  ;;  %1216 = vmatpush.msra.mxu0 %v3583_v5 }
  0xa6   : > { %704 = vmatmul.f32.gmra.mxu2 %v3299_v7  ;;  %1135 = vmatpush.msra.mxu3 %v1134_v26  ;;  %v1152_v26 = vand.u32 4294901760, %v1151_v38  ;;  %v3712_v38 = vand.u32 4294901760, %v399_v62 }
  0xa7   : > { %777 = vmatmul.f32.gmra.mxu3 %v3270_v44  ;;  %876 = vmatmul.f32.gmra.mxu0 %v3425_v2 }
  0xa8   : > { %941 = vmatmul.f32.gmra.mxu1 %v3425_v2  ;;  %986 = vmatpush.msra.mxu2 %v3616_v17  ;;  %v3723_v41 = vsub.f32 %v399_v62, %v3712_v38  ;;  %v393_v62 = vld [vmem:[#allocation5 + $0x130] sm:$0xff] }
  0xa9   : > { %1295 = vmatpush.msra.mxu1 %v3560_v58  ;;  %1219 = vmatpush.msra.mxu0 %v3605_v52 }
  0xaa   : > { %988 = vmatpush.msra.mxu2 %v3634_v0  ;;  %1141 = vmatpush.msra.mxu3 %v1140_v49  ;;  %v3710_v49 = vand.u32 4294901760, %v402_v1 }
  0xab   : > { %1297 = vmatpush.msra.mxu1 %v3585_v24  ;;  %1222 = vmatpush.msra.mxu0 %v3614_v16 }
  0xac   : > { %990 = vmatpush.msra.mxu2 %v3636_v33  ;;  %1147 = vmatpush.msra.mxu3 %v1146_v37  ;;  %v4789_v37 = vand.u32 4294901760, %v3457_v25  ;;  %v4740_v25 = vand.u32 4294901760, %v3723_v41 }
  0xad   : > { %1299 = vmatpush.msra.mxu1 %v3596_v14  ;;  %1225 = vmatpush.msra.mxu0 %v3630_v6 }
  0xae   : > { %709 = vmatmul.f32.gmra.mxu2 %v3344_v13  ;;  %1153 = vmatpush.msra.mxu3 %v1152_v26  ;;  %v3720_v26 = vsub.f32 %v402_v1, %v3710_v49  ;;  %v1625_v36 = vsub.f32 %v3723_v41, %v4740_v25  ;;  %v396_v1 = vld [vmem:[#allocation5 + $0x148] sm:$0xff] }
  0xaf   : > { %783 = vmatmul.f32.gmra.mxu3 %v3320_v50  ;;  %880 = vmatmul.f32.gmra.mxu0 %v3218_v56  ;;  %v3747_v20 = vand.u32 4294901760, %v396_v1 }
  0xb0   : > { %945 = vmatmul.f32.gmra.mxu1 %v3218_v56  ;;  %992 = vmatpush.msra.mxu2 %v3648_v48 }
  0xb1   : > { %1301 = vmatpush.msra.mxu1 %v3616_v17  ;;  %1228 = vmatpush.msra.mxu0 %v3646_v19 }
  0xb2   : > { %1360 = vmatpush.msrb.mxu2 %v4789_v37  ;;  %1455 = vmatpush.msrb.mxu3 %v3438_v32  ;;  %v4727_v32 = vand.u32 4294901760, %v3720_v26  ;;  %v1626_v37 = vand.u32 4294901760, %v1625_v36  ;;  %v390_v36 = vld [vmem:[#allocation5 + $0x118] sm:$0xff] }
  0xb3   : > { %1303 = vmatpush.msra.mxu1 %v3634_v0  ;;  %1231 = vmatpush.msra.mxu0 %v3657_v29 }
  0xb4   : > { %1364 = vmatpush.msrb.mxu2 %v4790_v51  ;;  %1457 = vmatpush.msrb.mxu3 %v3447_v28  ;;  %v1619_v28 = vsub.f32 %v3720_v26, %v4727_v32  ;;  %v4791_v51 = vand.u32 4294901760, %v3480_v3  ;;  %v3749_v32 = vand.u32 4294901760, %v393_v62  ;;  %v3756_v3 = vsub.f32 %v396_v1, %v3747_v20  ;;  %v387_v1 = vld [vmem:[#allocation5 + $0x100] sm:$0xff] }
  0xb5   : > { %1305 = vmatpush.msra.mxu1 %v3636_v33  ;;  %1234 = vmatpush.msra.mxu0 %v3667_v23 }
  0xb6   : > { %714 = vmatmul.f32.gmra.mxu2 %v3373_v61  ;;  %1459 = vmatpush.msrb.mxu3 %v3462_v10  ;;  %v1620_v10 = vand.u32 4294901760, %v1619_v28  ;;  %v4792_v61 = vand.u32 4294901760, %v3506_v27  ;;  %v4793_v28 = vand.u32 4294901760, %v3519_v35  ;;  %v4794_v35 = vand.u32 4294901760, %v3533_v18 }
  0xb7   : > { %789 = vmatmul.f32.gmra.mxu3 %v3357_v34  ;;  %884 = vmatmul.f32.gmra.mxu0 %v3273_v47 }
  0xb8   : > { %949 = vmatmul.f32.gmra.mxu1 %v3273_v47  ;;  %1368 = vmatpush.msrb.mxu2 %v4791_v51  ;;  %v3759_v51 = vsub.f32 %v393_v62, %v3749_v32 }
  0xb9   : > { %1307 = vmatpush.msra.mxu1 %v3648_v48  ;;  %1520 = vmatpush.msrb.mxu0 %v3710_v49 }
  0xba   : > { %1372 = vmatpush.msrb.mxu2 %v4792_v61  ;;  %1461 = vmatpush.msrb.mxu3 %v3484_v4  ;;  %v4738_v61 = vand.u32 4294901760, %v3756_v3  ;;  %v4736_v4 = vand.u32 4294901760, %v3759_v51 }
  0xbb   : > { %1621 = vmatpush.msrb.mxu1 %v1620_v10  ;;  %1522 = vmatpush.msrb.mxu0 %v3712_v38  ;;  %v3782_v10 = vand.u32 4294901760, %v390_v36 }
  0xbc   : > { %1376 = vmatpush.msrb.mxu2 %v4793_v28  ;;  %1463 = vmatpush.msrb.mxu3 %v3492_v9  ;;  %v1631_v27 = vsub.f32 %v3756_v3, %v4738_v61  ;;  %v1637_v9 = vsub.f32 %v3759_v51, %v4736_v4  ;;  %v4795_v28 = vand.u32 4294901760, %v3545_v11  ;;  %v360_v61 = vld [vmem:[#allocation5 + $0x28] sm:$0xff] }
  0xbd   : > { %1627 = vmatpush.msrb.mxu1 %v1626_v37  ;;  %1524 = vmatpush.msrb.mxu0 %v3747_v20  ;;  %v3784_v37 = vand.u32 4294901760, %v387_v1  ;;  %v3790_v18 = vsub.f32 %v390_v36, %v3782_v10  ;;  %v384_v36 = vld [vmem:[#allocation5 + $0xe8] sm:$0xff]  ;;  %v3929_v25 = vand.u32 4294901760, %v360_v61 }
  0xbe   : > { %998 = vmatmul.f32.vlgmr.msra.gmra.mxu2 %v3341_v31  ;;  %1465 = vmatpush.msrb.mxu3 %v3508_v46  ;;  %v1632_v46 = vand.u32 4294901760, %v1631_v27  ;;  %v1638_v62 = vand.u32 4294901760, %v1637_v9  ;;  %v4796_v9 = vand.u32 4294901760, %v3558_v59 }
  0xbf   : > { %795 = vmatmul.f32.gmra.mxu3 %v3392_v15  ;;  %888 = vmatmul.f32.gmra.mxu0 %v3325_v54  ;;  %v3793_v27 = vsub.f32 %v387_v1, %v3784_v37  ;;  %v381_v1 = vld [vmem:[#allocation5 + $0xd0] sm:$0xff] }
  0xc0   : > { %953 = vmatmul.f32.gmra.mxu1 %v3325_v54  ;;  %1380 = vmatpush.msrb.mxu2 %v4794_v35  ;;  %v4797_v35 = vand.u32 4294901760, %v3571_v53 }
  0xc1   : > { %1526 = vmatpush.msrb.mxu0 %v3749_v32  ;;  %1467 = vmatpush.msrb.mxu3 %v3526_v43  ;;  %v4735_v43 = vand.u32 4294901760, %v3790_v18  ;;  %v4730_v11 = vand.u32 4294901760, %v3793_v27 }
  0xc2   : > { %1384 = vmatpush.msrb.mxu2 %v4795_v28  ;;  %1633 = vmatpush.msrb.mxu1 %v1632_v46  ;;  %v3817_v28 = vand.u32 4294901760, %v381_v1 }
  0xc3   : > { %1528 = vmatpush.msrb.mxu0 %v3782_v10  ;;  %1469 = vmatpush.msrb.mxu3 %v3537_v40  ;;  %v1643_v59 = vsub.f32 %v3790_v18, %v4735_v43  ;;  %v1649_v40 = vsub.f32 %v3793_v27, %v4730_v11 }
  0xc4   : > { %1388 = vmatpush.msrb.mxu2 %v4796_v9  ;;  %1639 = vmatpush.msrb.mxu1 %v1638_v62  ;;  %v3814_v62 = vand.u32 4294901760, %v384_v36  ;;  %v4798_v9 = vand.u32 4294901760, %v3583_v5  ;;  %v3826_v53 = vsub.f32 %v381_v1, %v3817_v28 }
  0xc5   : > { %1530 = vmatpush.msrb.mxu0 %v3784_v37  ;;  %1471 = vmatpush.msrb.mxu3 %v3547_v60  ;;  %v1644_v60 = vand.u32 4294901760, %v1643_v59  ;;  %v1650_v46 = vand.u32 4294901760, %v1649_v40  ;;  %v4799_v59 = vand.u32 4294901760, %v3605_v52  ;;  %v378_v40 = vld [vmem:[#allocation5 + $0xb8] sm:$0xff] }
  0xc6   : > { %1006 = vmatmul.f32.gmra.mxu2 %v3399_v22  ;;  %v3823_v11 = vsub.f32 %v384_v36, %v3814_v62  ;;  %v4733_v5 = vand.u32 4294901760, %v3826_v53  ;;  %v375_v36 = vld [vmem:[#allocation5 + $0xa0] sm:$0xff] }
  0xc7   : > { %892 = vmatmul.f32.gmra.mxu0 %v3359_v63  ;;  %1155 = vmatmul.f32.vlgmr.msra.gmra.mxu3 %v3267_v42 }
  0xc8   : > { %957 = vmatmul.f32.gmra.mxu1 %v3359_v63  ;;  %1392 = vmatpush.msrb.mxu2 %v4797_v35  ;;  %v4800_v35 = vand.u32 4294901760, %v3614_v16 }
  0xc9   : > { %1473 = vmatpush.msrb.mxu3 %v3560_v58  ;;  %1645 = vmatpush.msrb.mxu1 %v1644_v60  ;;  %v4734_v58 = vand.u32 4294901760, %v3823_v11  ;;  %v3847_v60 = vand.u32 4294901760, %v378_v40 }
  0xca   : > { %1396 = vmatpush.msrb.mxu2 %v4798_v9  ;;  %1532 = vmatpush.msrb.mxu0 %v3814_v62  ;;  %v4801_v9 = vand.u32 4294901760, %v3630_v6 }
  0xcb   : > { %1475 = vmatpush.msrb.mxu3 %v3585_v24  ;;  %1651 = vmatpush.msrb.mxu1 %v1650_v46  ;;  %v1655_v52 = vsub.f32 %v3823_v11, %v4734_v58  ;;  %v1661_v24 = vsub.f32 %v3826_v53, %v4733_v5  ;;  %v3849_v46 = vand.u32 4294901760, %v375_v36  ;;  %v363_v5 = vld [vmem:[#allocation5 + $0x40] sm:$0xff] }
  0xcc   : > { %1400 = vmatpush.msrb.mxu2 %v4799_v59  ;;  %1534 = vmatpush.msrb.mxu0 %v3817_v28  ;;  %v3856_v59 = vsub.f32 %v378_v40, %v3847_v60  ;;  %v4804_v40 = vld [vmem:[#allocation23_spill] sm:$0xff]  ;;  %v3920_v4 = vand.u32 4294901760, %v363_v5 }
  0xcd   : > { %1477 = vmatpush.msrb.mxu3 %v3596_v14  ;;  %v1656_v14 = vand.u32 4294901760, %v1655_v52  ;;  %v1662_v1 = vand.u32 4294901760, %v1661_v24  ;;  %v3859_v16 = vsub.f32 %v375_v36, %v3849_v46  ;;  %v4802_v52 = vand.u32 4294901760, %v3646_v19  ;;  %v4803_v24 = vld [vmem:[#allocation21_spill] sm:$0xff] }
  0xce   : > { %1014 = vmatmul.f32.gmra.mxu2 %v3452_v30  ;;  %1536 = vmatpush.msrb.mxu0 %v3847_v60  ;;  %v4805_v36 = vand.u32 4294901760, %v3657_v29 }
  0xcf   : > { %1159 = vmatmul.f32.gmra.mxu3 %v3332_v57  ;;  %1237 = vmatmul.f32.vlgmr.msra.gmra.mxu0 %v3284_v55  ;;  %v4732_v6 = vand.u32 4294901760, %v3859_v16 }
  0xd0   : > { %1311 = vmatmul.f32.vlgmr.msra.gmra.mxu1 %v3302_v12  ;;  %1404 = vmatpush.msrb.mxu2 %v4800_v35  ;;  %v372_v35 = vld [vmem:[#allocation5 + $0x88] sm:$0xff] }
  0xd1   : > { %1479 = vmatpush.msrb.mxu3 %v3616_v17  ;;  %1657 = vmatpush.msrb.mxu1 %v1656_v14  ;;  %v4731_v17 = vand.u32 4294901760, %v3856_v59 }
  0xd2   : > { %1408 = vmatpush.msrb.mxu2 %v4801_v9  ;;  %1538 = vmatpush.msrb.mxu0 %v3849_v46  ;;  %v369_v9 = vld [vmem:[#allocation5 + $0x70] sm:$0xff] }
  0xd3   : > { %1481 = vmatpush.msrb.mxu3 %v3634_v0  ;;  %1663 = vmatpush.msrb.mxu1 %v1662_v1  ;;  %v1667_v19 = vsub.f32 %v3856_v59, %v4731_v17  ;;  %v1673_v0 = vsub.f32 %v3859_v16, %v4732_v6  ;;  %v3880_v1 = vand.u32 4294901760, %v372_v35  ;;  %v4806_v17 = vand.u32 4294901760, %v3667_v23  ;;  %v4807_v23 = vld [vmem:[#allocation20_spill] sm:$0xff] }
  0xd4   : > { %1412 = vmatpush.msrb.mxu2 %v4802_v52  ;;  %v3883_v52 = vand.u32 4294901760, %v369_v9 }
  0xd5   : > { %1483 = vmatpush.msrb.mxu3 %v3636_v33  ;;  %v1668_v14 = vand.u32 4294901760, %v1667_v19  ;;  %v1674_v33 = vand.u32 4294901760, %v1673_v0  ;;  %1540 = vmatpush.msrb.mxu0 %v3880_v1  ;;  %v3890_v29 = vsub.f32 %v372_v35, %v3880_v1  ;;  %v366_v0 = vld [vmem:[#allocation5 + $0x58] sm:$0xff]  ;;  %v4808_v35 = vld [vmem:[#allocation26_spill] sm:$0xff] }
  0xd6   : > { %1022 = vmatmul.f32.gmra.mxu2 %v3496_v39  ;;  %v3893_v19 = vsub.f32 %v369_v9, %v3883_v52  ;;  %v4809_v9 = vld [vmem:[#allocation27_spill] sm:$0xff]  ;;  %v4814_v39 = vand.u32 4294901760, %v3720_v26 }
  0xd7   : > { %1163 = vmatmul.f32.gmra.mxu3 %v3384_v21  ;;  %1242 = vmatmul.f32.gmra.mxu0 %v4803_v24 }
  0xd8   : > { %1317 = vmatmul.f32.gmra.mxu1 %v4804_v40  ;;  %1416 = vmatpush.msrb.mxu2 %v4805_v36 }
  0xd9   : > { %1485 = vmatpush.msrb.mxu3 %v3648_v48  ;;  %1669 = vmatpush.msrb.mxu1 %v1668_v14  ;;  %v4737_v48 = vand.u32 4294901760, %v3890_v29 }
  0xda   : > { %1420 = vmatpush.msrb.mxu2 %v4806_v17  ;;  %1542 = vmatpush.msrb.mxu0 %v3883_v52  ;;  %v4739_v17 = vand.u32 4294901760, %v3893_v19 }
  0xdb   : > { %1835 = vmatpush.msra.mxu3 %v3710_v49  ;;  %1675 = vmatpush.msrb.mxu1 %v1674_v33  ;;  %v1679_v14 = vsub.f32 %v3890_v29, %v4737_v48  ;;  %v3909_v33 = vand.u32 4294901760, %v366_v0 }
  0xdc   : > { %1747 = vmatpush.msra.mxu2 %v3720_v26  ;;  %v1685_v6 = vsub.f32 %v3893_v19, %v4739_v17 }
  0xdd   : > { %1837 = vmatpush.msra.mxu3 %v3712_v38  ;;  %v1680_v58 = vand.u32 4294901760, %v1679_v14  ;;  %1544 = vmatpush.msrb.mxu0 %v3909_v33  ;;  %v3918_v43 = vsub.f32 %v366_v0, %v3909_v33  ;;  %v3927_v14 = vsub.f32 %v363_v5, %v3920_v4  ;;  %v3931_v0 = vpop.f32.mrf.mxu0  ;;  %v3941_v5 = vsub.f32 %v360_v61, %v3929_v25 }
  0xde   : > { %1030 = vmatmul.f32.gmra.mxu2 %v4807_v23  ;;  %v1686_v48 = vand.u32 4294901760, %v1685_v6 }
  0xdf   : > { %1839 = vmatpush.msra.mxu3 %v3747_v20  ;;  %1247 = vmatmul.f32.gmra.mxu0 %v4808_v35  ;;  %v3904_v36 = vpop.f32.mrf.mxu2  ;;  %v4742_v17 = vand.u32 4294901760, %v3918_v43  ;;  %v4810_v35 = vld [vmem:[#allocation22_spill] sm:$0xff]  ;;  %v4813_v61 = vand.u32 4294901760, %v3927_v14  ;;  %v1702_v23 = vand.u32 4294901760, %v3941_v5 }
  0xe0   : > { %1167 = vmatmul.f32.gmra.mxu3 %v3425_v2  ;;  %1323 = vmatmul.f32.gmra.mxu1 %v4809_v9  ;;  %v357_v9 = vld [vmem:[#allocation5 + $0x10] sm:$0xff] }
  0xe1   : > { %1750 = vmatpush.msra.mxu2 %v3723_v41  ;;  %1841 = vmatpush.msra.mxu3 %v3749_v32  ;;  %v3943_v40 = vand.u32 4294901760, %v357_v9  ;;  %v1697_v55 = vsub.f32 %v3927_v14, %v4813_v61  ;;  %v4817_v61 = vld [vmem:[#allocation25_spill] sm:$0xff] }
  0xe2   : > { %1681 = vmatpush.msrb.mxu1 %v1680_v58  ;;  %1546 = vmatpush.msrb.mxu0 %v3920_v4  ;;  %v1691_v58 = vsub.f32 %v3918_v43, %v4742_v17 }
  0xe3   : > { %1753 = vmatpush.msra.mxu2 %v3756_v3  ;;  %1843 = vmatpush.msra.mxu3 %v3782_v10 }
  0xe4   : > { %1687 = vmatpush.msrb.mxu1 %v1686_v48  ;;  %1548 = vmatpush.msrb.mxu0 %v3929_v25  ;;  %v4811_v48 = vld [vmem:[#allocation29_spill] sm:$0xff]  ;;  %v1692_v24 = vand.u32 4294901760, %v1691_v58 }
  0xe5   : > { %1756 = vmatpush.msra.mxu2 %v3759_v51  ;;  %v3946_v12 = vpop.f32.mrf.mxu1  ;;  %1845 = vmatpush.msra.mxu3 %v3784_v37 }
  0xe6   : > { %1038 = vmatmul.f32.gmra.mxu2 %v4810_v35  ;;  %v3960_v35 = vsub.f32 %v357_v9, %v3943_v40  ;;  %1550 = vmatpush.msrb.mxu0 %v3943_v40 }
  0xe7   : > { %1252 = vmatmul.f32.gmra.mxu0 %v4811_v48  ;;  %v3951_v17 = vpop.f32.mrf.mxu2  ;;  %v3953_v6 = vpop.f32.mrf.mxu3  ;;  %1693 = vmatpush.msrb.mxu1 %v1692_v24  ;;  %v1698_v48 = vand.u32 4294901760, %v1697_v55  ;;  %v4815_v55 = vand.u32 4294901760, %v3723_v41 }
  0xe8   : > { %1171 = vmatmul.f32.gmra.mxu3 %v3218_v56  ;;  %4812 = vst [vmem:[#allocation31_spill] sm:$0xff] %v3951_v17  ;;  %1329 = vmatmul.f32.gmra.mxu1 %v3460_v45  ;;  %v1703_v17 = vsub.f32 %v3941_v5, %v1702_v23  ;;  %v1708_v58 = vand.u32 4294901760, %v3960_v35 }
  0xe9   : > { %1918 = vmatpush.msra.mxu0 %v4814_v39  ;;  %1759 = vmatpush.msra.mxu2 %v3790_v18  ;;  %v4816_v39 = vand.u32 4294901760, %v3756_v3 }
  0xea   : > { %1847 = vmatpush.msra.mxu3 %v3814_v62  ;;  %1699 = vmatpush.msrb.mxu1 %v1698_v48  ;;  %v1704_v9 = vand.u32 4294901760, %v1703_v17  ;;  %v1709_v24 = vsub.f32 %v3960_v35, %v1708_v58 }
  0xeb   : > { %1922 = vmatpush.msra.mxu0 %v4815_v55  ;;  %1762 = vmatpush.msra.mxu2 %v3793_v27  ;;  %v3982_v48 = vpop.f32.mrf.mxu0  ;;  %v4820_v55 = vand.u32 4294901760, %v3793_v27  ;;  %v4822_v27 = vand.u32 4294901760, %v3823_v11 }
  0xec   : > { %1849 = vmatpush.msra.mxu3 %v3817_v28  ;;  %1705 = vmatpush.msrb.mxu1 %v1704_v9  ;;  %v1710_v26 = vand.u32 4294901760, %v1709_v24  ;;  %v4818_v9 = vand.u32 4294901760, %v3759_v51  ;;  %v4819_v24 = vand.u32 4294901760, %v3790_v18  ;;  %v4821_v51 = vld [vmem:[#allocation28_spill] sm:$0xff] }
  0xed   : > { %1926 = vmatpush.msra.mxu0 %v4816_v39  ;;  %1765 = vmatpush.msra.mxu2 %v3823_v11  ;;  %v4824_v39 = vand.u32 4294901760, %v3856_v59 }
  0xee   : > { %1046 = vmatmul.f32.gmra.mxu2 %v4817_v61  ;;  %1851 = vmatpush.msra.mxu3 %v3847_v60 }
  0xef   : > { %1257 = vmatmul.f32.gmra.mxu0 %v3245_v8  ;;  %v3987_v41 = vpop.f32.mrf.mxu2  ;;  %v3989_v17 = vpop.f32.mrf.mxu3  ;;  %1711 = vmatpush.msrb.mxu1 %v1710_v26  ;;  %v4823_v26 = vand.u32 4294901760, %v3826_v53 }
  0xf0   : > { %1175 = vmatmul.f32.gmra.mxu3 %v3273_v47  ;;  %1335 = vmatmul.f32.gmra.mxu1 %v3270_v44 }
  0xf1   : > { %1930 = vmatpush.msra.mxu0 %v4818_v9  ;;  %v3994_v3 = vpop.f32.mrf.mxu1  ;;  %2013 = vmatpush.msra.mxu1 %v3710_v49 }
  0xf2   : > { %1768 = vmatpush.msra.mxu2 %v3826_v53  ;;  %1853 = vmatpush.msra.mxu3 %v3849_v46 }
  0xf3   : > { %1934 = vmatpush.msra.mxu0 %v4819_v24  ;;  %2015 = vmatpush.msra.mxu1 %v3712_v38 }
  0xf4   : > { %1771 = vmatpush.msra.mxu2 %v3856_v59  ;;  %1855 = vmatpush.msra.mxu3 %v3880_v1 }
  0xf5   : > { %1938 = vmatpush.msra.mxu0 %v4820_v55  ;;  %2017 = vmatpush.msra.mxu1 %v3747_v20 }
  0xf6   : > { %1054 = vmatmul.f32.gmra.mxu2 %v4821_v51  ;;  %1857 = vmatpush.msra.mxu3 %v3883_v52 }
  0xf7   : > { %1262 = vmatmul.f32.gmra.mxu0 %v3299_v7  ;;  %v4011_v49 = vpop.f32.mrf.mxu2  ;;  %2019 = vmatpush.msra.mxu1 %v3749_v32  ;;  %v4825_v32 = vand.u32 4294901760, %v3859_v16 }
  0xf8   : > { %1179 = vmatmul.f32.gmra.mxu3 %v3325_v54  ;;  %1341 = vmatmul.f32.gmra.mxu1 %v3320_v50  ;;  %v4014_v38 = vpop.f32.mrf.mxu3  ;;  %v4016_v18 = vpop.f32.mrf.mxu0 }
  0xf9   : > { %1942 = vmatpush.msra.mxu0 %v4822_v27  ;;  %1774 = vmatpush.msra.mxu2 %v3859_v16  ;;  %v4827_v16 = vand.u32 4294901760, %v3893_v19 }
  0xfa   : > { %v4022_v20 = vpop.f32.mrf.mxu1  ;;  %2021 = vmatpush.msra.mxu1 %v3782_v10  ;;  %1859 = vmatpush.msra.mxu3 %v3909_v33 }
  0xfb   : > { %1946 = vmatpush.msra.mxu0 %v4823_v26  ;;  %1777 = vmatpush.msra.mxu2 %v3890_v29 }
  0xfc   : > { %2023 = vmatpush.msra.mxu1 %v3784_v37  ;;  %v4826_v37 = vand.u32 4294901760, %v3890_v29  ;;  %1861 = vmatpush.msra.mxu3 %v3920_v4  ;;  %v599_v29 = vadd.f32 %v3946_v12, %v3931_v0 }
  0xfd   : > { %1950 = vmatpush.msra.mxu0 %v4824_v39  ;;  %1780 = vmatpush.msra.mxu2 %v3893_v19 }
  0xfe   : > { %1422 = vmatmul.f32.vlgmr.msrb.gmra.mxu2 %v3267_v42  ;;  %2025 = vmatpush.msra.mxu1 %v3814_v62  ;;  %v4828_v62 = vand.u32 4294901760, %v3918_v43 }
  0xff   : > { %1954 = vmatpush.msra.mxu0 %v4825_v32  ;;  %1783 = vmatpush.msra.mxu2 %v3918_v43  ;;  %v4830_v43 = vand.u32 4294901760, %v3927_v14 }
 0x100   : > { %1183 = vmatmul.f32.gmra.mxu3 %v3359_v63  ;;  %1267 = vmatmul.f32.gmra.mxu0 %v3344_v13  ;;  %v4040_v10 = vpop.f32.mrf.mxu3 }
 0x101   : > { %1347 = vmatmul.f32.gmra.mxu1 %v3357_v34  ;;  %v680_v11 = vpop.f32.mrf.mxu2  ;;  %1958 = vmatpush.msra.mxu0 %v4826_v37  ;;  %v4046_v53 = vpop.f32.mrf.mxu0 }
 0x102   : > { %1786 = vmatpush.msra.mxu2 %v3927_v14  ;;  %2027 = vmatpush.msra.mxu1 %v3817_v28  ;;  %v4829_v28 = vld [vmem:[#allocation24_spill] sm:$0xff]  ;;  %v681_v19 = vadd.f32 %v680_v11, %v599_v29  ;;  %v4831_v29 = vld [vmem:[#allocation30_spill] sm:$0xff] }
 0x103   : > { %v4050_v59 = vpop.f32.mrf.mxu1  ;;  %1962 = vmatpush.msra.mxu0 %v4827_v16  ;;  %1863 = vmatpush.msra.mxu3 %v3929_v25 }
 0x104   : > { %1789 = vmatpush.msra.mxu2 %v3941_v5  ;;  %2029 = vmatpush.msra.mxu1 %v3847_v60 }
 0x105   : > { %1966 = vmatpush.msra.mxu0 %v4828_v62  ;;  %1865 = vmatpush.msra.mxu3 %v3943_v40 }
 0x106   : > { %1426 = vmatmul.f32.gmra.mxu2 %v3332_v57  ;;  %2031 = vmatpush.msra.mxu1 %v3849_v46  ;;  %v603_v46 = vadd.f32 %v3994_v3, %v3982_v48  ;;  %v607_v48 = vadd.f32 %v4022_v20, %v4016_v18  ;;  %v611_v20 = vadd.f32 %v4050_v59, %v4046_v53 }
 0x107   : > { %1792 = vmatpush.msra.mxu2 %v3960_v35  ;;  %1970 = vmatpush.msra.mxu0 %v4830_v43 }
 0x108   : > { %1272 = vmatmul.f32.gmra.mxu0 %v4829_v28  ;;  %1487 = vmatmul.f32.vlgmr.msrb.gmra.mxu3 %v3267_v42 }
 0x109   : > { %1353 = vmatmul.f32.gmra.mxu1 %v3392_v15  ;;  %v685_v60 = vpop.f32.mrf.mxu2  ;;  %1974 = vmatpush.msra.mxu0 %v1702_v23 }
 0x10a   : > { %v754_v9 = vpop.f32.mrf.mxu3  ;;  %2033 = vmatpush.msra.mxu1 %v3880_v1  ;;  %v686_v1 = vadd.f32 %v685_v60, %v603_v46  ;;  %v4833_v46 = vld [vmem:[#allocation20_spill] sm:$0xff] }
 0x10b   : > { %v755_v24 = vadd.f32 %v754_v9, %v681_v19  ;;  %1978 = vmatpush.msra.mxu0 %v1708_v58 }
 0x10c   : > { %v865_v12 = vpop.f32.mrf.mxu0  ;;  %2035 = vmatpush.msra.mxu1 %v3883_v52 }
 0x10d   : > { %v866_v0 = vadd.f32 %v865_v12, %v755_v24  ;;  %v930_v55 = vpop.f32.mrf.mxu1  ;;  %v4832_v12 = vld [vmem:[#allocation31_spill] sm:$0xff] }
 0x10e   : > { %1430 = vmatmul.f32.gmra.mxu2 %v3384_v21  ;;  %2037 = vmatpush.msra.mxu1 %v3909_v33 }
 0x10f   : > { %v4080_v14 = vadd.f32 %v930_v55, %v866_v0  ;;  %v619_v0 = vadd.f32 %v3989_v17, %v4832_v12 }
 0x110   : > { %1491 = vmatmul.f32.gmra.mxu3 %v3332_v57  ;;  %1556 = vmatmul.f32.vlgmr.msrb.gmra.mxu0 %v3341_v31 }
 0x111   : > { %1713 = vmatmul.f32.vlgmr.msrb.gmra.mxu1 %v3267_v42  ;;  %2124 = vrot.lane.b32.xlu2 %v4080_v14, %s2942_s1  ;;  %v690_v52 = vpop.f32.mrf.mxu2 }
 0x112   : > { %2108 = vrot.lane.b32.xlu0 %v4080_v14, %s2943_s2  ;;  %v760_v23 = vpop.f32.mrf.mxu3  ;;  %2039 = vmatpush.msra.mxu1 %v3920_v4  ;;  %v691_v33 = vadd.f32 %v690_v52, %v607_v48 }
 0x113   : > { %v761_v35 = vadd.f32 %v760_v23, %v686_v1 }
 0x114   : > { %v869_v5 = vpop.f32.mrf.mxu0  ;;  %2041 = vmatpush.msra.mxu1 %v3929_v25 }
 0x115   : > { %v870_v31 = vadd.f32 %v869_v5, %v761_v35  ;;  %v934_v58 = vpop.f32.mrf.mxu1 }
 0x116   : > { %1434 = vmatmul.f32.gmra.mxu2 %v3425_v2  ;;  %2043 = vmatpush.msra.mxu1 %v3943_v40 }
 0x117   : > { %v4095_v3 = vadd.f32 %v934_v58, %v870_v31  ;;  %v623_v58 = vadd.f32 %v4014_v38, %v3987_v41 }
 0x118   : > { %1495 = vmatmul.f32.gmra.mxu3 %v3384_v21  ;;  %1564 = vmatmul.f32.gmra.mxu0 %v3399_v22 }
 0x119   : > { %1717 = vmatmul.f32.gmra.mxu1 %v3332_v57  ;;  %v695_v4 = vpop.f32.mrf.mxu2 }
 0x11a   : > { %2110 = vrot.lane.b32.xlu0 %v4095_v3, %s2943_s2  ;;  %v766_v27 = vpop.f32.mrf.mxu3  ;;  %v696_v32 = vadd.f32 %v695_v4, %v611_v20  ;;  %v627_v20 = vadd.f32 %v4040_v10, %v4011_v49 }
 0x11b   : > { %v767_v25 = vadd.f32 %v766_v27, %v691_v33  ;;  %v4834_v33 = vld [vmem:[#allocation22_spill] sm:$0xff] }
 0x11c   : > { %v873_v26 = vpop.f32.mrf.mxu0 }
 0x11d   : > { %v874_v39 = vadd.f32 %v873_v26, %v767_v25  ;;  %v938_v18 = vpop.f32.mrf.mxu1 }
 0x11e   : > { %1438 = vmatmul.f32.gmra.mxu2 %v3218_v56 }
 0x11f   : > { %v4106_v22 = vadd.f32 %v938_v18, %v874_v39  ;;  %v4835_v18 = vld [vmem:[#allocation18_spill] sm:$0xff] }
 0x120   : > { %1499 = vmatmul.f32.gmra.mxu3 %v3425_v2  ;;  %1572 = vmatmul.f32.gmra.mxu0 %v3452_v30  ;;  %v615_v30 = vadd.f32 %v3953_v6, %v3904_v36 }
 0x121   : > { %1721 = vmatmul.f32.gmra.mxu1 %v3384_v21  ;;  %2112 = vrot.lane.b32.xlu1 %v4106_v22, %s2943_s2  ;;  %v700_v40 = vpop.f32.mrf.mxu2 }
 0x122   : > { %2126 = vrot.lane.b32.xlu0 %v4095_v3, %s2942_s1  ;;  %v772_v11 = vpop.f32.mrf.mxu3  ;;  %v701_v19 = vadd.f32 %v700_v40, %v615_v30 }
 0x123   : > { %v773_v37 = vadd.f32 %v772_v11, %v696_v32 }
 0x124   : > { %v877_v16 = vpop.f32.mrf.mxu0 }
 0x125   : > { %v878_v53 = vadd.f32 %v877_v16, %v773_v37  ;;  %v942_v59 = vpop.f32.mrf.mxu1 }
 0x126   : > { %1442 = vmatmul.f32.gmra.mxu2 %v3273_v47 }
 0x127   : > { %v4118_v62 = vadd.f32 %v942_v59, %v878_v53  ;;  %v4836_v59 = vld [vmem:[#allocation21_spill] sm:$0xff] }
 0x128   : > { %1503 = vmatmul.f32.gmra.mxu3 %v3218_v56  ;;  %1580 = vmatmul.f32.gmra.mxu0 %v4831_v29 }
 0x129   : > { %1725 = vmatmul.f32.gmra.mxu1 %v3425_v2  ;;  %2128 = vrot.lane.b32.xlu1 %v4106_v22, %s2942_s1  ;;  %v705_v60 = vpop.f32.mrf.mxu2 }
 0x12a   : > { %2130 = vrot.lane.b32.xlu2 %v4118_v62, %s2942_s1  ;;  %v778_v43 = vpop.f32.mrf.mxu3  ;;  %v706_v1 = vadd.f32 %v705_v60, %v619_v0  ;;  %v4840_v0 = vld [vmem:[#allocation29_spill] sm:$0xff] }
 0x12b   : > { %v779_v9 = vadd.f32 %v778_v43, %v701_v19 }
 0x12c   : > { %v881_v24 = vpop.f32.mrf.mxu0 }
 0x12d   : > { %v882_v36 = vadd.f32 %v881_v24, %v779_v9  ;;  %v946_v6 = vpop.f32.mrf.mxu1  ;;  %v4838_v9 = vld [vmem:[#allocation26_spill] sm:$0xff]  ;;  %v4839_v24 = vld [vmem:[#allocation23_spill] sm:$0xff] }
 0x12e   : > { %1446 = vmatmul.f32.gmra.mxu2 %v3325_v54 }
 0x12f   : > { %v4130_v55 = vadd.f32 %v946_v6, %v882_v36 }
 0x130   : > { %1507 = vmatmul.f32.gmra.mxu3 %v3273_v47  ;;  %1588 = vmatmul.f32.gmra.mxu0 %v4833_v46  ;;  %v4841_v46 = vld [vmem:[#allocation27_spill] sm:$0xff] }
 0x131   : > { %1729 = vmatmul.f32.gmra.mxu1 %v3218_v56  ;;  %2132 = vrot.lane.b32.xlu0 %v4130_v55, %s2942_s1  ;;  %v710_v52 = vpop.f32.mrf.mxu2 }
 0x132   : > { %2116 = vrot.lane.b32.xlu2 %v4130_v55, %s2943_s2  ;;  %2114 = vrot.lane.b32.xlu1 %v4118_v62, %s2943_s2  ;;  %v784_v17 = vpop.f32.mrf.mxu3  ;;  %v711_v4 = vadd.f32 %v710_v52, %v623_v58 }
 0x133   : > { %v785_v23 = vadd.f32 %v784_v17, %v706_v1 }
 0x134   : > { %v885_v35 = vpop.f32.mrf.mxu0 }
 0x135   : > { %v886_v5 = vadd.f32 %v885_v35, %v785_v23  ;;  %v950_v31 = vpop.f32.mrf.mxu1 }
 0x136   : > { %1450 = vmatmul.f32.gmra.mxu2 %v3359_v63 }
 0x137   : > { %v4144_v48 = vadd.f32 %v950_v31, %v886_v5 }
 0x138   : > { %1511 = vmatmul.f32.gmra.mxu3 %v3325_v54  ;;  %1596 = vmatmul.f32.gmra.mxu0 %v4834_v33  ;;  %v2093_v33 = vlaneseq }
 0x139   : > { %1733 = vmatmul.f32.gmra.mxu1 %v3273_v47  ;;  %v715_v27 = vpop.f32.mrf.mxu2 }
 0x13a   : > { %2118 = vrot.lane.b32.xlu2 %v4144_v48, %s2943_s2  ;;  %2134 = vrot.lane.b32.xlu1 %v4144_v48, %s2942_s1  ;;  %v790_v25 = vpop.f32.mrf.mxu3  ;;  %v716_v40 = vadd.f32 %v715_v27, %v627_v20 }
 0x13b   : > { %v791_v26 = vadd.f32 %v790_v25, %v711_v4 }
 0x13c   : > { %v889_v39 = vpop.f32.mrf.mxu0 }
 0x13d   : > { %v890_v41 = vadd.f32 %v889_v39, %v791_v26  ;;  %v954_v38 = vpop.f32.mrf.mxu1 }
 0x13e   : > { %1795 = vmatmul.f32.vlgmr.msra.gmra.mxu2 %v4835_v18 }
 0x13f   : > { %v4156_v32 = vadd.f32 %v954_v38, %v890_v41  ;;  %v4265_v41 = vld [vmem:[#allocation8] sm:$0xff] }
 0x140   : > { %1515 = vmatmul.f32.gmra.mxu3 %v3359_v63  ;;  %1604 = vmatmul.f32.gmra.mxu0 %v4817_v61  ;;  %v4837_v61 = vld [vmem:[#allocation19_spill] sm:$0xff] }
 0x141   : > { %1737 = vmatmul.f32.gmra.mxu1 %v3325_v54  ;;  %2120 = vrot.lane.b32.xlu0 %v4156_v32, %s2943_s2  ;;  %v4165_v11 = vpop.f32.mrf.mxu2 }
 0x142   : > { %2136 = vrot.lane.b32.xlu2 %v4156_v32, %s2942_s1  ;;  %v796_v37 = vpop.f32.mrf.mxu3 }
 0x143   : > { %v797_v16 = vadd.f32 %v796_v37, %v716_v40 }
 0x144   : > { %v893_v49 = vpop.f32.mrf.mxu0 }
 0x145   : > { %v894_v10 = vadd.f32 %v893_v49, %v797_v16  ;;  %v958_v53 = vpop.f32.mrf.mxu1 }
 0x146   : > { %1800 = vmatmul.f32.gmra.mxu2 %v4836_v59 }
 0x147   : > { %v4168_v30 = vadd.f32 %v958_v53, %v894_v10 }
 0x148   : > { %1612 = vmatmul.f32.gmra.mxu0 %v4821_v51  ;;  %1869 = vmatmul.f32.vlgmr.msra.gmra.mxu3 %v4837_v61 }
 0x149   : > { %1741 = vmatmul.f32.gmra.mxu1 %v3359_v63  ;;  %2138 = vrot.lane.b32.xlu0 %v4168_v30, %s2942_s1  ;;  %v4177_v29 = vpop.f32.mrf.mxu2 }
 0x14a   : > { %2122 = vrot.lane.b32.xlu1 %v4168_v30, %s2943_s2  ;;  %v1156_v19 = vpop.f32.mrf.mxu3 }
 0x14b   : > { %v1157_v26 = vadd.f32 %v1156_v19, %v4165_v11 }
 0x14c   : > { %v1238_v60 = vpop.f32.mrf.mxu0 }
 0x14d   : > { %v4179_v43 = vpop.f32.mrf.mxu1  ;;  %v1239_v38 = vadd.f32 %v1238_v60, %v1157_v26 }
 0x14e   : > { %1805 = vmatmul.f32.gmra.mxu2 %v4838_v9 }
 0x14f   : > { %v1313_v16 = vadd.f32 %v4179_v43, %v1239_v38 }
 0x150   : > { %1875 = vmatmul.f32.gmra.mxu3 %v4839_v24  ;;  %1980 = vmatmul.f32.vlgmr.msra.gmra.mxu0 %v3267_v42 }
 0x151   : > { %2045 = vmatmul.f32.vlgmr.msra.gmra.mxu1 %v3267_v42  ;;  %v4185_v51 = vpop.f32.mrf.mxu2 }
 0x152   : > { %v4187_v36 = vpop.f32.mrf.mxu3 }
 0x153   : > { %v1161_v49 = vadd.f32 %v4187_v36, %v4177_v29 }
 0x154   : > { %v4189_v6 = vpop.f32.mrf.mxu0 }
 0x155   : > { %v4191_v12 = vpop.f32.mrf.mxu1  ;;  %v1244_v61 = vadd.f32 %v4189_v6, %v1161_v49  ;;  %v4300_v6 = vld [vmem:[#allocation7 + $0x8] sm:$0xff]  ;;  %v4326_v49 = vld [vmem:[#allocation8 + $0x10] sm:$0xff] }
 0x156   : > { %1810 = vmatmul.f32.gmra.mxu2 %v4840_v0 }
 0x158   : > { %1881 = vmatmul.f32.gmra.mxu3 %v4841_v46  ;;  %1984 = vmatmul.f32.gmra.mxu0 %v3332_v57  ;;  %v4302_v46 = vld [vmem:[#allocation8 + $0x8] sm:$0xff] }
 0x159   : > { %2049 = vmatmul.f32.gmra.mxu1 %v3332_v57  ;;  %v4197_v1 = vpop.f32.mrf.mxu2 }
 0x15a   : > { %v4199_v52 = vpop.f32.mrf.mxu3 }
 0x15b   : > { %v1165_v9 = vadd.f32 %v4199_v52, %v4185_v51  ;;  %v2141_v51 = vmul.f32 %v4300_v6, %v4095_v3 }
 0x15c   : > { %v4201_v42 = vpop.f32.mrf.mxu0 }
 0x15d   : > { %v4203_v17 = vpop.f32.mrf.mxu1 }
 0x15e   : > { %1815 = vmatmul.f32.gmra.mxu2 %v3245_v8 }
 0x160   : > { %1887 = vmatmul.f32.gmra.mxu3 %v3460_v45  ;;  %1988 = vmatmul.f32.gmra.mxu0 %v3384_v21 }
 0x161   : > { %2053 = vmatmul.f32.gmra.mxu1 %v3384_v21  ;;  %v4209_v23 = vpop.f32.mrf.mxu2 }
 0x163   : > { %v4211_v35 = vpop.f32.mrf.mxu3 }
 0x164   : > { %v4213_v57 = vpop.f32.mrf.mxu0 }
 0x165   : > { %v4215_v5 = vpop.f32.mrf.mxu1 }
 0x166   : > { %1820 = vmatmul.f32.gmra.mxu2 %v3299_v7 }
 0x168   : > { %1893 = vmatmul.f32.gmra.mxu3 %v3270_v44  ;;  %1992 = vmatmul.f32.gmra.mxu0 %v3425_v2 }
 0x169   : > { %2057 = vmatmul.f32.gmra.mxu1 %v3425_v2  ;;  %v4221_v8 = vpop.f32.mrf.mxu2 }
 0x16b   : > { %v4223_v45 = vpop.f32.mrf.mxu3  ;;  %v2125_v18 = vpop.permute.xlu2 %2124 }
 0x16c   : > { %v4225_v21 = vpop.f32.mrf.mxu0 }
 0x16d   : > { %v4227_v31 = vpop.f32.mrf.mxu1 }
 0x16e   : > { %1825 = vmatmul.f32.gmra.mxu2 %v3344_v13 }
 0x170   : > { %1899 = vmatmul.f32.gmra.mxu3 %v3320_v50  ;;  %1996 = vmatmul.f32.gmra.mxu0 %v3218_v56 }
 0x171   : > { %2061 = vmatmul.f32.gmra.mxu1 %v3218_v56  ;;  %v4233_v44 = vpop.f32.mrf.mxu2  ;;  %v2094_v56 = vand.u32 127, %v2093_v33  ;;  %v1249_v33 = vadd.f32 %v4201_v42, %v1165_v9 }
 0x173   : > { %v4235_v7 = vpop.f32.mrf.mxu3  ;;  %v2099_v25 = vand.u32 1, %v2094_v56  ;;  %v1325_v42 = vadd.f32 %v4203_v17, %v1249_v33  ;;  %v4350_v33 = vld [vmem:[#allocation8 + $0x20] sm:$0xff] }
 0x174   : > { %v4237_v2 = vpop.f32.mrf.mxu0 }
 0x175   : > { %v4239_v58 = vpop.f32.mrf.mxu1  ;;  %vm4257_vm0 = vcmp.eq.s32.totalorder %v2099_v25, 0 }
 0x176   : > { %1830 = vmatmul.f32.gmra.mxu2 %v4829_v28  ;;  %v4261_v28 = vld [vmem:[#allocation7] sm:$0xff] }
 0x178   : > { %1905 = vmatmul.f32.gmra.mxu3 %v3357_v34  ;;  %2000 = vmatmul.f32.gmra.mxu0 %v3273_v47 }
 0x179   : > { %2065 = vmatmul.f32.gmra.mxu1 %v3273_v47  ;;  %v4245_v50 = vpop.f32.mrf.mxu2 }
 0x17b   : > { %v4247_v13 = vpop.f32.mrf.mxu3 }
 0x17d   : > { %v4249_v4 = vpop.f32.mrf.mxu0 }
 0x17e   : > { %v4251_v27 = vpop.f32.mrf.mxu1 }
 0x180   : > { %1911 = vmatmul.f32.gmra.mxu3 %v3392_v15  ;;  %2004 = vmatmul.f32.gmra.mxu0 %v3325_v54 }
 0x181   : > { %2069 = vmatmul.f32.gmra.mxu1 %v3325_v54  ;;  %v1423_v34 = vpop.f32.mrf.mxu2  ;;  %v2140_v54 = vmul.f32 %v4261_v28, %v4080_v14 }
 0x182   : > { %v1424_v53 = vadd.f32 %v1423_v34, %v1313_v16 }
 0x183   : > { %v4263_v39 = vpop.f32.mrf.mxu3 }
 0x184   : > { %v2109_v20 = vpop.permute.xlu0 %2108  ;;  %v2131_v52 = vpop.permute.xlu2 %2130 }
 0x185   : > { %v2148_v15 = vsel %vm4257_vm0, %v2109_v20, %v2125_v18  ;;  %v4269_v40 = vpop.f32.mrf.mxu0  ;;  %v1169_v20 = vadd.f32 %v4211_v35, %v4197_v1 }
 0x186   : > { %v2156_v11 = vmul.f32 %v2148_v15, %v4265_v41  ;;  %v4274_v37 = vpop.f32.mrf.mxu1 }
 0x188   : > { %v2164_v10 = vadd.f32 %v2156_v11, %v2140_v54  ;;  %2008 = vmatmul.f32.gmra.mxu0 %v3359_v63  ;;  %v4324_v11 = vld [vmem:[#allocation7 + $0x10] sm:$0xff] }
 0x189   : > { %2073 = vmatmul.f32.gmra.mxu1 %v3359_v63  ;;  %v1427_v14 = vpop.f32.mrf.mxu2  ;;  %v1319_v63 = vadd.f32 %v4191_v12, %v1244_v61  ;;  %v2142_v1 = vmul.f32 %v4324_v11, %v4106_v22 }
 0x18a   : > { %2172 = vst [vmem:[%s4283_s3] sm:$0xff] %v2164_v10  ;;  %v1254_v10 = vadd.f32 %v4213_v57, %v1169_v20 }
 0x18b   : > { %v1488_v59 = vpop.f32.mrf.mxu3  ;;  %v1428_v24 = vadd.f32 %v1427_v14, %v1319_v63 }
 0x18c   : > { %v4287_v19 = vadd.f32 %v1488_v59, %v1424_v53  ;;  %v2111_v60 = vpop.permute.xlu0 %2110  ;;  %v1331_v57 = vadd.f32 %v4215_v5, %v1254_v10  ;;  %v2117_v63 = vpop.permute.xlu2 %2116 }
 0x18d   : > { %v4289_v43 = vpop.f32.mrf.mxu0 }
 0x18e   : > { %v4291_v29 = vpop.f32.mrf.mxu1  ;;  %2196 = vrot.lane.b32.xlu0 %v4287_v19, %s2942_s1  ;;  %2180 = vrot.lane.b32.xlu1 %v4287_v19, %s2943_s2 }
 0x191   : > { %v1431_v36 = vpop.f32.mrf.mxu2 }
 0x192   : > { %v1432_v54 = vadd.f32 %v1431_v36, %v1325_v42  ;;  %v4348_v36 = vld [vmem:[#allocation7 + $0x20] sm:$0xff] }
 0x193   : > { %v1492_v0 = vpop.f32.mrf.mxu3  ;;  %v2113_v25 = vpop.permute.xlu1 %2112  ;;  %v2144_v42 = vmul.f32 %v4348_v36, %v4130_v55 }
 0x194   : > { %v4305_v56 = vadd.f32 %v1492_v0, %v1428_v24  ;;  %v2127_v26 = vpop.permute.xlu0 %2126 }
 0x195   : > { %v2149_v12 = vsel %vm4257_vm0, %v2111_v60, %v2127_v26  ;;  %v4309_v34 = vpop.f32.mrf.mxu0  ;;  %v1173_v60 = vadd.f32 %v4223_v45, %v4209_v23 }
 0x196   : > { %v2157_v38 = vmul.f32 %v2149_v12, %v4302_v46  ;;  %v4314_v18 = vpop.f32.mrf.mxu1  ;;  %2182 = vrot.lane.b32.xlu2 %v4305_v56, %s2943_s2  ;;  %2198 = vrot.lane.b32.xlu1 %v4305_v56, %s2942_s1 }
 0x197   : > { %v1259_v26 = vadd.f32 %v4225_v21, %v1173_v60 }
 0x198   : > { %v2165_v15 = vadd.f32 %v2157_v38, %v2141_v51  ;;  %v4357_v51 = vld [vmem:[#allocation8 + $0x18] sm:$0xff] }
 0x199   : > { %v1435_v3 = vpop.f32.mrf.mxu2  ;;  %v1337_v55 = vadd.f32 %v4227_v31, %v1259_v26 }
 0x19a   : > { %2173 = vst [vmem:[%s4283_s3 + $0x8] sm:$0xff] %v2165_v15  ;;  %v1436_v24 = vadd.f32 %v1435_v3, %v1331_v57  ;;  %v4382_v57 = vld [vmem:[#allocation7 + $0x28] sm:$0xff] }
 0x19b   : > { %v1496_v16 = vpop.f32.mrf.mxu3  ;;  %v2129_v14 = vpop.permute.xlu1 %2128 }
 0x19c   : > { %v4329_v53 = vadd.f32 %v1496_v16, %v1432_v54  ;;  %v2150_v17 = vsel %vm4257_vm0, %v2113_v25, %v2129_v14  ;;  %v4352_v25 = vld [vmem:[#allocation7 + $0x18] sm:$0xff]  ;;  %v1177_v16 = vadd.f32 %v4235_v7, %v4221_v8  ;;  %v2119_v14 = vpop.permute.xlu2 %2118 }
 0x19d   : > { %v4333_v59 = vpop.f32.mrf.mxu0  ;;  %v2158_v35 = vmul.f32 %v2150_v17, %v4326_v49  ;;  %v2143_v54 = vmul.f32 %v4352_v25, %v4118_v62 }
 0x19e   : > { %v4338_v61 = vpop.f32.mrf.mxu1  ;;  %2184 = vrot.lane.b32.xlu0 %v4329_v53, %s2943_s2  ;;  %2200 = vrot.lane.b32.xlu2 %v4329_v53, %s2942_s1  ;;  %v1264_v60 = vadd.f32 %v4237_v2, %v1177_v16  ;;  %v2145_v2 = vmul.f32 %v4382_v57, %v4144_v48 }
 0x19f   : > { %v2166_v9 = vadd.f32 %v2158_v35, %v2142_v1 }
 0x1a1   : > { %2174 = vst [vmem:[%s4283_s3 + $0x10] sm:$0xff] %v2166_v9  ;;  %v1439_v22 = vpop.f32.mrf.mxu2 }
 0x1a2   : > { %v1440_v17 = vadd.f32 %v1439_v22, %v1337_v55  ;;  %v1343_v22 = vadd.f32 %v4239_v58, %v1264_v60 }
 0x1a3   : > { %v1500_v0 = vpop.f32.mrf.mxu3  ;;  %v2133_v5 = vpop.permute.xlu0 %2132 }
 0x1a4   : > { %v4355_v12 = vadd.f32 %v1500_v0, %v1436_v24  ;;  %v2152_v23 = vsel %vm4257_vm0, %v2117_v63, %v2133_v5  ;;  %v2115_v45 = vpop.permute.xlu1 %2114  ;;  %v4387_v63 = vld [vmem:[#allocation8 + $0x28] sm:$0xff]  ;;  %v1181_v0 = vadd.f32 %v4247_v13, %v4233_v44  ;;  %v2137_v48 = vpop.permute.xlu2 %2136 }
 0x1a5   : > { %v4361_v38 = vpop.f32.mrf.mxu0  ;;  %v2160_v20 = vmul.f32 %v2152_v23, %v4350_v33  ;;  %v2151_v21 = vsel %vm4257_vm0, %v2115_v45, %v2131_v52  ;;  %v4405_v45 = vld [vmem:[#allocation7 + $0x30] sm:$0xff] }
 0x1a6   : > { %v4368_v15 = vpop.f32.mrf.mxu1  ;;  %2202 = vrot.lane.b32.xlu0 %v4355_v12, %s2942_s1  ;;  %2186 = vrot.lane.b32.xlu1 %v4355_v12, %s2943_s2  ;;  %v2159_v3 = vmul.f32 %v2151_v21, %v4357_v51  ;;  %v1269_v21 = vadd.f32 %v4249_v4, %v1181_v0  ;;  %v2146_v13 = vmul.f32 %v4405_v45, %v4156_v32  ;;  %v4430_v32 = vld [vmem:[#allocation7 + $0x38] sm:$0xff] }
 0x1a7   : > { %v2168_v10 = vadd.f32 %v2160_v20, %v2144_v42  ;;  %v4408_v20 = vld [vmem:[#allocation8 + $0x30] sm:$0xff] }
 0x1a8   : > { %v2167_v52 = vadd.f32 %v2159_v3, %v2143_v54  ;;  %v1349_v4 = vadd.f32 %v4251_v27, %v1269_v21 }
 0x1a9   : > { %2176 = vst [vmem:[%s4283_s3 + $0x20] sm:$0xff] %v2168_v10  ;;  %v1443_v1 = vpop.f32.mrf.mxu2  ;;  %v1185_v10 = vadd.f32 %v4263_v39, %v4245_v50  ;;  %v2147_v39 = vmul.f32 %v4430_v32, %v4168_v30 }
 0x1aa   : > { %2175 = vst [vmem:[%s4283_s3 + $0x18] sm:$0xff] %v2167_v52  ;;  %v1444_v5 = vadd.f32 %v1443_v1, %v1343_v22 }
 0x1ab   : > { %v1504_v35 = vpop.f32.mrf.mxu3  ;;  %v1274_v60 = vadd.f32 %v4269_v40, %v1185_v10 }
 0x1ac   : > { %v4385_v62 = vadd.f32 %v1504_v35, %v1440_v17  ;;  %v2135_v31 = vpop.permute.xlu1 %2134  ;;  %v4432_v35 = vld [vmem:[#allocation8 + $0x38] sm:$0xff] }
 0x1ad   : > { %v4389_v9 = vpop.f32.mrf.mxu0  ;;  %v2153_v8 = vsel %vm4257_vm0, %v2119_v14, %v2135_v31  ;;  %v1355_v40 = vadd.f32 %v4274_v37, %v1274_v60  ;;  %v1715_v37 = vadd.f32 %v4291_v29, %v4289_v43 }
 0x1ae   : > { %v4393_v7 = vpop.f32.mrf.mxu1  ;;  %2188 = vrot.lane.b32.xlu2 %v4385_v62, %s2943_s2  ;;  %2204 = vrot.lane.b32.xlu1 %v4385_v62, %s2942_s1  ;;  %v2161_v24 = vmul.f32 %v2153_v8, %v4387_v63 }
 0x1b0   : > { %v2169_v26 = vadd.f32 %v2161_v24, %v2145_v2 }
 0x1b1   : > { %v1447_v23 = vpop.f32.mrf.mxu2 }
 0x1b2   : > { %2177 = vst [vmem:[%s4283_s3 + $0x28] sm:$0xff] %v2169_v26  ;;  %v1448_v14 = vadd.f32 %v1447_v23, %v1349_v4 }
 0x1b3   : > { %v1508_v42 = vpop.f32.mrf.mxu3  ;;  %v2121_v3 = vpop.permute.xlu0 %2120 }
 0x1b4   : > { %v4411_v54 = vadd.f32 %v1508_v42, %v1444_v5  ;;  %v2154_v58 = vsel %vm4257_vm0, %v2121_v3, %v2137_v48 }
 0x1b5   : > { %v4415_v44 = vpop.f32.mrf.mxu0  ;;  %v2162_v55 = vmul.f32 %v2154_v58, %v4408_v20 }
 0x1b6   : > { %v4420_v16 = vpop.f32.mrf.mxu1  ;;  %2190 = vrot.lane.b32.xlu0 %v4411_v54, %s2943_s2  ;;  %2206 = vrot.lane.b32.xlu2 %v4411_v54, %s2942_s1 }
 0x1b7   : > { %v2170_v52 = vadd.f32 %v2162_v55, %v2146_v13 }
 0x1b9   : > { %2178 = vst [vmem:[%s4283_s3 + $0x30] sm:$0xff] %v2170_v52  ;;  %v1451_v17 = vpop.f32.mrf.mxu2  ;;  %v1719_v52 = vadd.f32 %v4314_v18, %v4309_v34 }
 0x1ba   : > { %v1452_v26 = vadd.f32 %v1451_v17, %v1355_v40 }
 0x1bb   : > { %v1512_v1 = vpop.f32.mrf.mxu3  ;;  %v2139_v8 = vpop.permute.xlu0 %2138 }
 0x1bc   : > { %v4435_v31 = vadd.f32 %v1512_v1, %v1448_v14  ;;  %v2123_v2 = vpop.permute.xlu1 %2122 }
 0x1bd   : > { %v2155_v27 = vsel %vm4257_vm0, %v2123_v2, %v2139_v8  ;;  %v4439_v50 = vpop.f32.mrf.mxu0 }
 0x1be   : > { %v2163_v24 = vmul.f32 %v2155_v27, %v4432_v35  ;;  %v4444_v22 = vpop.f32.mrf.mxu1  ;;  %2208 = vrot.lane.b32.xlu0 %v4435_v31, %s2942_s1  ;;  %2192 = vrot.lane.b32.xlu1 %v4435_v31, %s2943_s2  ;;  %v1723_v27 = vadd.f32 %v4338_v61, %v4333_v59 }
 0x1c0   : > { %v2171_v0 = vadd.f32 %v2163_v24, %v2147_v39 }
 0x1c1   : > { %v1796_v5 = vpop.f32.mrf.mxu2 }
 0x1c2   : > { %2179 = vst [vmem:[%s4283_s3 + $0x38] sm:$0xff] %v2171_v0  ;;  %v1797_v48 = vadd.f32 %v1796_v5, %v1715_v37 }
 0x1c3   : > { %v1516_v23 = vpop.f32.mrf.mxu3 }
 0x1c4   : > { %v4452_v42 = vadd.f32 %v1516_v23, %v1452_v26  ;;  %v1727_v23 = vadd.f32 %v4368_v15, %v4361_v38 }
 0x1c5   : > { %v4454_v30 = vpop.f32.mrf.mxu0 }
 0x1c6   : > { %v4456_v21 = vpop.f32.mrf.mxu1  ;;  %2194 = vrot.lane.b32.xlu2 %v4452_v42, %s2943_s2  ;;  %2210 = vrot.lane.b32.xlu1 %v4452_v42, %s2942_s1 }
 0x1c9   : > { %v1801_v3 = vpop.f32.mrf.mxu2 }
 0x1ca   : > { %v1802_v17 = vadd.f32 %v1801_v3, %v1719_v52 }
 0x1cb   : > { %v1870_v58 = vpop.f32.mrf.mxu3 }
 0x1cc   : > { %v1871_v13 = vadd.f32 %v1870_v58, %v1797_v48 }
 0x1cd   : > { %v1981_v55 = vpop.f32.mrf.mxu0 }
 0x1ce   : > { %v1982_v4 = vadd.f32 %v1981_v55, %v1871_v13  ;;  %v2046_v10 = vpop.f32.mrf.mxu1 }
 0x1d0   : > { %v4466_v14 = vadd.f32 %v2046_v10, %v1982_v4  ;;  %v1731_v4 = vadd.f32 %v4393_v7, %v4389_v9 }
 0x1d1   : > { %v1806_v43 = vpop.f32.mrf.mxu2 }
 0x1d2   : > { %2252 = vrot.lane.b32.xlu2 %v4466_v14, %s2943_s2  ;;  %2268 = vrot.lane.b32.xlu1 %v4466_v14, %s2942_s1  ;;  %v1807_v34 = vadd.f32 %v1806_v43, %v1723_v27 }
 0x1d3   : > { %v1876_v29 = vpop.f32.mrf.mxu3 }
 0x1d4   : > { %v1877_v1 = vadd.f32 %v1876_v29, %v1802_v17 }
 0x1d5   : > { %v1985_v60 = vpop.f32.mrf.mxu0 }
 0x1d6   : > { %v1986_v8 = vadd.f32 %v1985_v60, %v1877_v1  ;;  %v2050_v2 = vpop.f32.mrf.mxu1  ;;  %v1735_v60 = vadd.f32 %v4420_v16, %v4415_v44 }
 0x1d8   : > { %v4474_v39 = vadd.f32 %v2050_v2, %v1986_v8 }
 0x1d9   : > { %v1811_v18 = vpop.f32.mrf.mxu2 }
 0x1da   : > { %2254 = vrot.lane.b32.xlu0 %v4474_v39, %s2943_s2  ;;  %2270 = vrot.lane.b32.xlu2 %v4474_v39, %s2942_s1  ;;  %v1812_v59 = vadd.f32 %v1811_v18, %v1727_v23 }
 0x1db   : > { %v1882_v24 = vpop.f32.mrf.mxu3 }
 0x1dc   : > { %v1883_v40 = vadd.f32 %v1882_v24, %v1807_v34 }
 0x1dd   : > { %v1989_v0 = vpop.f32.mrf.mxu0 }
 0x1de   : > { %v1990_v26 = vadd.f32 %v1989_v0, %v1883_v40  ;;  %v2054_v5 = vpop.f32.mrf.mxu1  ;;  %v1739_v40 = vadd.f32 %v4444_v22, %v4439_v50 }
 0x1e0   : > { %v4482_v37 = vadd.f32 %v2054_v5, %v1990_v26 }
 0x1e1   : > { %v1816_v61 = vpop.f32.mrf.mxu2 }
 0x1e2   : > { %2272 = vrot.lane.b32.xlu0 %v4482_v37, %s2942_s1  ;;  %2256 = vrot.lane.b32.xlu1 %v4482_v37, %s2943_s2  ;;  %v1817_v38 = vadd.f32 %v1816_v61, %v1731_v4 }
 0x1e3   : > { %v1888_v48 = vpop.f32.mrf.mxu3 }
 0x1e4   : > { %v1889_v3 = vadd.f32 %v1888_v48, %v1812_v59  ;;  %v1743_v48 = vadd.f32 %v4456_v21, %v4454_v30 }
 0x1e5   : > { %v1993_v58 = vpop.f32.mrf.mxu0 }
 0x1e6   : > { %v1994_v13 = vadd.f32 %v1993_v58, %v1889_v3  ;;  %v2058_v55 = vpop.f32.mrf.mxu1 }
 0x1e8   : > { %v4490_v10 = vadd.f32 %v2058_v55, %v1994_v13  ;;  %v2212_v13 = vmul.f32 %v4261_v28, %v4287_v19 }
 0x1e9   : > { %v1821_v15 = vpop.f32.mrf.mxu2 }
 0x1ea   : > { %2258 = vrot.lane.b32.xlu2 %v4490_v10, %s2943_s2  ;;  %2274 = vrot.lane.b32.xlu1 %v4490_v10, %s2942_s1  ;;  %v1822_v9 = vadd.f32 %v1821_v15, %v1735_v60  ;;  %v2213_v60 = vmul.f32 %v4300_v6, %v4305_v56 }
 0x1eb   : > { %v1894_v52 = vpop.f32.mrf.mxu3 }
 0x1ec   : > { %v1895_v17 = vadd.f32 %v1894_v52, %v1817_v38 }
 0x1ed   : > { %v1997_v43 = vpop.f32.mrf.mxu0 }
 0x1ee   : > { %v1998_v29 = vadd.f32 %v1997_v43, %v1895_v17  ;;  %v2062_v1 = vpop.f32.mrf.mxu1 }
 0x1f0   : > { %v4498_v8 = vadd.f32 %v2062_v1, %v1998_v29  ;;  %v2183_v52 = vpop.permute.xlu2 %2182 }
 0x1f1   : > { %v1826_v27 = vpop.f32.mrf.mxu2 }
 0x1f2   : > { %2260 = vrot.lane.b32.xlu0 %v4498_v8, %s2943_s2  ;;  %2276 = vrot.lane.b32.xlu2 %v4498_v8, %s2942_s1  ;;  %v1827_v16 = vadd.f32 %v1826_v27, %v1739_v40 }
 0x1f3   : > { %v1900_v7 = vpop.f32.mrf.mxu3 }
 0x1f4   : > { %v1901_v2 = vadd.f32 %v1900_v7, %v1822_v9 }
 0x1f5   : > { %v2001_v34 = vpop.f32.mrf.mxu0 }
 0x1f6   : > { %v2002_v18 = vadd.f32 %v2001_v34, %v1901_v2  ;;  %v2066_v24 = vpop.f32.mrf.mxu1 }
 0x1f8   : > { %v4506_v44 = vadd.f32 %v2066_v24, %v2002_v18 }
 0x1f9   : > { %v1831_v61 = vpop.f32.mrf.mxu2 }
 0x1fa   : > { %2262 = vrot.lane.b32.xlu1 %v4506_v44, %s2943_s2  ;;  %v1832_v55 = vadd.f32 %v1831_v61, %v1743_v48 }
 0x1fb   : > { %v1906_v0 = vpop.f32.mrf.mxu3 }
 0x1fc   : > { %v1907_v26 = vadd.f32 %v1906_v0, %v1827_v16 }
 0x1fd   : > { %v2005_v5 = vpop.f32.mrf.mxu0 }
 0x1fe   : > { %v2006_v23 = vadd.f32 %v2005_v5, %v1907_v26  ;;  %v2070_v59 = vpop.f32.mrf.mxu1 }
 0x200   : > { %v4512_v3 = vadd.f32 %v2070_v59, %v2006_v23  ;;  %v2197_v58 = vpop.permute.xlu0 %2196  ;;  %v2181_v50 = vpop.permute.xlu1 %2180 }
 0x201   : > { %v2220_v22 = vsel %vm4257_vm0, %v2181_v50, %v2197_v58 }
 0x202   : > { %v2228_v4 = vmul.f32 %v2220_v22, %v4265_v41  ;;  %2264 = vrot.lane.b32.xlu2 %v4512_v3, %s2943_s2  ;;  %2280 = vrot.lane.b32.xlu1 %v4512_v3, %s2942_s1 }
 0x203   : > { %v1912_v30 = vpop.f32.mrf.mxu3 }
 0x204   : > { %v2236_v21 = vadd.f32 %v2228_v4, %v2212_v13  ;;  %v1913_v38 = vadd.f32 %v1912_v30, %v1832_v55 }
 0x205   : > { %v2009_v15 = vpop.f32.mrf.mxu0 }
 0x206   : > { %2244 = vst [vmem:[%s4524_s28] sm:$0xff] %v2236_v21  ;;  %v2010_v19 = vadd.f32 %v2009_v15, %v1913_v38  ;;  %v2074_v17 = vpop.f32.mrf.mxu1 }
 0x208   : > { %v4527_v43 = vadd.f32 %v2074_v17, %v2010_v19  ;;  %v2199_v29 = vpop.permute.xlu1 %2198 }
 0x209   : > { %v2221_v1 = vsel %vm4257_vm0, %v2183_v52, %v2199_v29 }
 0x20a   : > { %v2229_v9 = vmul.f32 %v2221_v1, %v4302_v46  ;;  %2266 = vrot.lane.b32.xlu0 %v4527_v43, %s2943_s2  ;;  %2282 = vrot.lane.b32.xlu2 %v4527_v43, %s2942_s1 }
 0x20c   : > { %v2237_v7 = vadd.f32 %v2229_v9, %v2213_v60 }
 0x20e   : > { %2245 = vst [vmem:[%s4524_s28 + $0x10] sm:$0xff] %v2237_v7 }
 0x20f   : > { %2838 = shalt.err (!%p2835_p0)
}
 0x210   : > { %s2944_s3 = smov 128   ;;  %s2945_s8 = smov 8   ;;  %v2201_v56 = vpop.permute.xlu2 %2200  ;;  %v2185_v2 = vpop.permute.xlu0 %2184  ;;  %v2214_v34 = vmul.f32 %v4324_v11, %v4329_v53  ;;  %v2215_v26 = vmul.f32 %v4352_v25, %v4355_v12  ;;  %v2216_v48 = vmul.f32 %v4348_v36, %v4385_v62  ;;  %v2217_v55 = vmul.f32 %v4382_v57, %v4411_v54 }
 0x211   : > { %2597 = dma.vmem_to_hbm [thread:$0]  (%p3073_p3), %s2345_s6, 1024, %s2347_s9, %s2325_s12, %s2944_s3, %s2944_s3, %s2945_s8   ;;  %v2222_v27 = vsel %vm4257_vm0, %v2185_v2, %v2201_v56  ;;  %v2218_v15 = vmul.f32 %v4405_v45, %v4435_v31  ;;  %v2219_v1 = vmul.f32 %v4430_v32, %v4452_v42  ;;  %v2284_v2 = vmul.f32 %v4261_v28, %v4466_v14 }
 0x212   : > { %v2230_v18 = vmul.f32 %v2222_v27, %v4326_v49  ;;  %2278 = vrot.lane.b32.xlu0 %v4506_v44, %s2942_s1  ;;  %v2286_v14 = vmul.f32 %v4324_v11, %v4482_v37  ;;  %v2288_v37 = vmul.f32 %v4348_v36, %v4498_v8  ;;  %s2550_s1 = sshll.u32 %s2925_s21, 7  ;;  %s2364_s6 = sshll.u32 %s4524_s28, 4  ;;  %s2365_s6 = int_to_ptr.vmem [resolvable:$true] %s2364_s6 }
 0x213   : > { %s2363_s16 = scalar_lea.hbm %s4685_s5, %s2550_s1  ;;  %s2330_s21 = scalar_lea.sflag [#allocation12], %s3104_s13 }
 0x214   : > { %v2238_v24 = vadd.f32 %v2230_v18, %v2214_v34  ;;  %s2366_s9 = sshll.u32 %s2363_s16, 4  ;;  %s2859_s24 = scalar_lea.hbm %s4685_s5, 256  ;;  %s2367_s9 = int_to_ptr.hbm [resolvable:$true] %s2366_s9 }
 0x215   : > { %s2853_s12 = sshra.s32 %s2367_s9, 4  ;;  %s2854_s12 = int_to_ptr.hbm [resolvable:$true] %s2853_s12 }
 0x216   : > { %2246 = vst [vmem:[%s4524_s28 + $0x20] sm:$0xff] %v2238_v24  ;;  %s2855_s7 = scalar_lea.hbm %s2854_s12, 128  ;;  %p2860_p2 = scmp.lt.s32.totalorder %s2854_s12, %s4685_s5 }
 0x217   : > { %p2856_p5 = scmp.ne.s32.totalorder %s2854_s12, %s2855_s7  ;;  %p2861_p1 = scmp.lt.s32.totalorder %s2859_s24, %s2855_s7 }
 0x218   : > { %v2203_v40 = vpop.permute.xlu0 %2202  ;;  %v2187_v16 = vpop.permute.xlu1 %2186 }
 0x219   : > { %v2223_v0 = vsel %vm4257_vm0, %v2187_v16, %v2203_v40  ;;  %v2189_v23 = vpop.permute.xlu2 %2188  ;;  %v2285_v40 = vmul.f32 %v4300_v6, %v4474_v39  ;;  %v2287_v39 = vmul.f32 %v4352_v25, %v4490_v10  ;;  %p2857_p7 = pnand %p2856_p5, %p3073_p3  ;;  %p2862_p4 = por %p2861_p1, %p2860_p2 }
 0x21a   : > { %v2231_v5 = vmul.f32 %v2223_v0, %v4357_v51 }
 0x21b   : > { %p2858_p9 = pneg %p2857_p7 }
 0x21c   : > { %v2239_v53 = vadd.f32 %v2231_v5, %v2215_v26 }
 0x21d   : > { %p2863_p8 = pnand %p2862_p4, %p2858_p9 }
 0x21e   : > { %2247 = vst [vmem:[%s4524_s28 + $0x30] sm:$0xff] %v2239_v53 }
 0x220   : > { %v2205_v59 = vpop.permute.xlu1 %2204 }
 0x221   : > { %v2224_v61 = vsel %vm4257_vm0, %v2189_v23, %v2205_v59  ;;  %v2207_v22 = vpop.permute.xlu2 %2206 }
 0x222   : > { %v2232_v58 = vmul.f32 %v2224_v61, %v4350_v33 }
 0x224   : > { %v2240_v50 = vadd.f32 %v2232_v58, %v2216_v48 }
 0x226   : > { %2248 = vst [vmem:[%s4524_s28 + $0x40] sm:$0xff] %v2240_v50 }
 0x228   : > { %v2191_v12 = vpop.permute.xlu0 %2190 }
 0x229   : > { %v2225_v13 = vsel %vm4257_vm0, %v2191_v12, %v2207_v22  ;;  %v2195_v17 = vpop.permute.xlu2 %2194  ;;  %v2290_v12 = vmul.f32 %v4405_v45, %v4512_v3 }
 0x22a   : > { %v2233_v4 = vmul.f32 %v2225_v13, %v4387_v63 }
 0x22c   : > { %v2241_v30 = vadd.f32 %v2233_v4, %v2217_v55  ;;  %v2291_v4 = vmul.f32 %v4430_v32, %v4527_v43  ;;  %v2289_v32 = vmul.f32 %v4382_v57, %v4506_v44 }
 0x22e   : > { %2249 = vst [vmem:[%s4524_s28 + $0x50] sm:$0xff] %v2241_v30 }
 0x230   : > { %v2209_v21 = vpop.permute.xlu0 %2208  ;;  %v2193_v62 = vpop.permute.xlu1 %2192 }
 0x231   : > { %v2226_v38 = vsel %vm4257_vm0, %v2193_v62, %v2209_v21  ;;  %v2253_v7 = vpop.permute.xlu2 %2252 }
 0x232   : > { %v2234_v52 = vmul.f32 %v2226_v38, %v4408_v20 }
 0x234   : > { %v2242_v19 = vadd.f32 %v2234_v52, %v2218_v15 }
 0x236   : > { %2250 = vst [vmem:[%s4524_s28 + $0x60] sm:$0xff] %v2242_v19 }
 0x238   : > { %v2211_v54 = vpop.permute.xlu1 %2210 }
 0x239   : > { %v2227_v29 = vsel %vm4257_vm0, %v2195_v17, %v2211_v54  ;;  %v2271_v18 = vpop.permute.xlu2 %2270 }
 0x23a   : > { %v2235_v60 = vmul.f32 %v2227_v29, %v4432_v35 }
 0x23c   : > { %v2243_v9 = vadd.f32 %v2235_v60, %v2219_v1 }
 0x23e   : > { %2251 = vst [vmem:[%s4524_s28 + $0x70] sm:$0xff] %v2243_v9 }
 0x244   : > { %v2269_v31 = vpop.permute.xlu1 %2268  ;;  %v2259_v23 = vpop.permute.xlu2 %2258 }
 0x245   : > { %v2292_v56 = vsel %vm4257_vm0, %v2253_v7, %v2269_v31 }
 0x246   : > { %v2300_v27 = vmul.f32 %v2292_v56, %v4265_v41 }
 0x248   : > { %v2308_v34 = vadd.f32 %v2300_v27, %v2284_v2 }
 0x24a   : > { %2316 = vst [vmem:[%s4524_s28 + $0x8] sm:$0xff] %v2308_v34 }
 0x24c   : > { %v2255_v42 = vpop.permute.xlu0 %2254  ;;  %v2277_v48 = vpop.permute.xlu2 %2276 }
 0x24d   : > { %v2293_v24 = vsel %vm4257_vm0, %v2255_v42, %v2271_v18 }
 0x24e   : > { %v2301_v16 = vmul.f32 %v2293_v24, %v4302_v46 }
 0x250   : > { %v2309_v0 = vadd.f32 %v2301_v16, %v2285_v40 }
 0x252   : > { %2317 = vst [vmem:[%s4524_s28 + $0x18] sm:$0xff] %v2309_v0 }
 0x254   : > { %v2273_v26 = vpop.permute.xlu0 %2272  ;;  %v2257_v28 = vpop.permute.xlu1 %2256 }
 0x255   : > { %v2294_v41 = vsel %vm4257_vm0, %v2257_v28, %v2273_v26 }
 0x256   : > { %v2302_v5 = vmul.f32 %v2294_v41, %v4326_v49 }
 0x258   : > { %v2310_v53 = vadd.f32 %v2302_v5, %v2286_v14 }
 0x25a   : > { %2318 = vst [vmem:[%s4524_s28 + $0x28] sm:$0xff] %v2310_v53 }
 0x25c   : > { %v2275_v6 = vpop.permute.xlu1 %2274  ;;  %v2265_v25 = vpop.permute.xlu2 %2264 }
 0x25d   : > { %v2295_v46 = vsel %vm4257_vm0, %v2259_v23, %v2275_v6 }
 0x25e   : > { %v2303_v59 = vmul.f32 %v2295_v46, %v4357_v51 }
 0x260   : > { %v2311_v61 = vadd.f32 %v2303_v59, %v2287_v39 }
 0x262   : > { %2319 = vst [vmem:[%s4524_s28 + $0x38] sm:$0xff] %v2311_v61 }
 0x264   : > { %v2261_v11 = vpop.permute.xlu0 %2260  ;;  %v2283_v36 = vpop.permute.xlu2 %2282 }
 0x265   : > { %v2296_v49 = vsel %vm4257_vm0, %v2261_v11, %v2277_v48 }
 0x266   : > { %v2304_v58 = vmul.f32 %v2296_v49, %v4350_v33 }
 0x268   : > { %v2312_v50 = vadd.f32 %v2304_v58, %v2288_v37 }
 0x26a   : > { %2320 = vst [vmem:[%s4524_s28 + $0x48] sm:$0xff] %v2312_v50 }
 0x26c   : > { %v2263_v22 = vpop.permute.xlu1 %2262 }
 0x274   : > { %v2281_v51 = vpop.permute.xlu1 %2280 }
 0x275   : > { %v2298_v10 = vsel %vm4257_vm0, %v2265_v25, %v2281_v51 }
 0x276   : > { %v2306_v13 = vmul.f32 %v2298_v10, %v4408_v20 }
 0x278   : > { %v2314_v55 = vadd.f32 %v2306_v13, %v2290_v12 }
 0x27a   : > { %2322 = vst [vmem:[%s4524_s28 + $0x68] sm:$0xff] %v2314_v55 }
 0x27c   : > { %v2267_v33 = vpop.permute.xlu0 %2266 }
 0x27d   : > { %v2299_v8 = vsel %vm4257_vm0, %v2267_v33, %v2283_v36 }
 0x27e   : > { %v2307_v30 = vmul.f32 %v2299_v8, %v4432_v35 }
 0x280   : > { %v2315_v21 = vadd.f32 %v2307_v30, %v2291_v4 }
 0x282   : > { %2323 = vst [vmem:[%s4524_s28 + $0x78] sm:$0xff] %v2315_v21 }
 0x284   : > { %v2279_v45 = vpop.permute.xlu0 %2278 }
 0x285   : > { %v2297_v20 = vsel %vm4257_vm0, %v2263_v22, %v2279_v45 }
 0x286   : > { %v2305_v3 = vmul.f32 %v2297_v20, %v4387_v63 }
 0x288   : > { %v2313_v35 = vadd.f32 %v2305_v3, %v2289_v32 }
 0x28a   : > { %2321 = vst [vmem:[%s4524_s28 + $0x58] sm:$0xff] %v2313_v35 }
 0x28b   : > { %2866 = shalt.err (!%p2863_p8)
}
 0x28c   : > { %s2946_s13 = smov 256   ;;  %s2947_s28 = smov 16  }
 0x28d   : > { %2598 = dma.vmem_to_hbm [thread:$0]  (%p3073_p3), %s2365_s6, 2048, %s2367_s9, %s2330_s21, %s2946_s13, %s2946_s13, %s2947_s28  }
 0x28e PF: > { %s2381_s26 = sand.u32 1, %s2913_s18   ;;  %p2616_p10 = pnand %p2529_p11, %p3027_p6 }
 0x28f   : > { %s2382_s3 = scalar_lea.sflag [#allocation4], %s2381_s26 }
 0x290   : > { %p2617_p12 = pneg %p2616_p10 }
 0x292   : > { %2904 = dma.done.wait (%p2617_p12), %s2382_s3, 1024  }
 0x293   : > { %2906 = vsyncadd (%p2617_p12), %s2382_s3, 4294966272  ;;  %s2392_s8 = scalar_lea.sflag [#allocation12], %s2381_s26 }
 0x294   : > { %2908 = dma.done.wait (%p2617_p12), %s2392_s8, 2048  }
 0x295   : > { %2910 = vsyncadd (%p2617_p12), %s2392_s8, 4294965248  ;;  %s27_s23 = sadd.s32 1, %s2933_s23   ;;  %s4844_s18 = smov %s2917_s19 }
 0x296   : > { %p24_p13 = scmp.ge.s32.totalorder %s27_s23, 4   ;;  %s4845_s19 = smov %s2921_s20 }
 0x297   : > { %s4846_s20 = smov %s3089_s27  ;;  %s4847_s21 = smov %s2929_s22 }
 0x298   : > { %s4848_s22 = smov %s4850_s15  ;;  %26 = sbr.rel (!%p24_p13) target bundleno = 14 (0xe), region = 112 }
 0x29d   :  { %2398 = vsyncpa [#allocation3], 1 }
 0x29e   :  { %2400 = vsyncpa [#allocation3 + $0x1], 1 }
 0x29f   :  { %2401 = vsyncpa [#allocation6], 1 }
 0x2a0   :  { %2402 = vsyncpa [#allocation9], 1 }
 0x2a1   :  { %2403 = vsyncpa [#allocation4], 1 }
 0x2a2   :  { %2405 = vsyncpa [#allocation4 + $0x1], 1 }
 0x2a3   :  { %2406 = vsyncpa [#allocation12], 1 }
 0x2a4   :  { %2408 = vsyncpa [#allocation12 + $0x1], 1 }

// kernel: tpu_custom_call.1
= control target key start
LH: loop header
LB: loop body
LE: loop exit
PB: predicated region body
PF: predicated region fallthrough
CT: control target
= control target key end

     0   :  { %s4680_s0 = inlined_call_operand.hbm [shape: f32[2,64,128], index: 0, kind: input, shape index: {}]   ;;  %s4681_s1 = inlined_call_operand.hbm [shape: f32[128,384], index: 1, kind: input, shape index: {}]   ;;  %s4682_s2 = inlined_call_operand.hbm [shape: f32[64,128], index: 2, kind: input, shape index: {}]   ;;  %s4683_s3 = inlined_call_operand.hbm [shape: f32[64,128], index: 3, kind: input, shape index: {}]   ;;  %s4684_s4 = inlined_call_operand.hbm [shape: f32[2,64,128], index: 4, kind: output, shape index: {0}]   ;;  %s4685_s5 = inlined_call_operand.hbm [shape: f32[2,64,256], index: 5, kind: output, shape index: {1}]  }
   0x1   :  { %4745 = sst [smem:[#allocation32_spill]] %s4681_s1 }
   0x2   :  { %4746 = sst [smem:[#allocation33_spill]] %s4682_s2 }
   0x3   :  { %4747 = sst [smem:[#allocation34_spill]] %s4683_s3 }
   0x4   :  { %11 = vsyncpa [#allocation3], 0 }
   0x5   :  { %13 = vsyncpa [#allocation3 + $0x1], 0 }
   0x6   :  { %14 = vsyncpa [#allocation6], 0 }
   0x7   :  { %15 = vsyncpa [#allocation9], 0 }
   0x8   :  { %16 = vsyncpa [#allocation4], 0 }
   0x9   :  { %18 = vsyncpa [#allocation4 + $0x1], 0 }
   0xa   :  { %19 = vsyncpa [#allocation12], 0 }
   0xb   :  { %21 = vsyncpa [#allocation12 + $0x1], 0  ;;  %s2978_s18 = smov 0   ;;  %s2980_s19 = smov 0  }
   0xc   :  { %s2982_s20 = smov 0   ;;  %s2984_s21 = smov 0  }
   0xd   :  { %s2986_s22 = smov 0   ;;  %s2988_s23 = smov 0  }
   0xe LB: > { %s2523_s24 = sadd.s32 4294967295, %s2933_s23   ;;  %s2524_s25 = sadd.s32 4294967294, %s2933_s23   ;;  %s2933_s23 = sphi %s2988_s23, %s27_s23   ;;  %s2929_s22 = sphi %s2986_s22, %s4848_s22   ;;  %s2925_s21 = sphi %s2984_s21, %s4847_s21   ;;  %s2921_s20 = sphi %s2982_s20, %s4846_s20   ;;  %s2917_s19 = sphi %s2980_s19, %s4845_s19   ;;  %s2913_s18 = sphi %s2978_s18, %s4844_s18  }
   0xf   : > { %p61_p0 = scmp.ne.s32.totalorder %s2917_s19, %s2913_s18  ;;  %p3012_p1 = scmp.eq.s32.totalorder %s2523_s24, 0 }
  0x10   : > { %p3016_p2 = scmp.eq.s32.totalorder %s2523_s24, 1  ;;  %p166_p3 = scmp.eq.s32.totalorder %s2524_s25, 1 }
  0x11   : > { %p3022_p4 = por %p3012_p1, %p61_p0  ;;  %p2525_p5 = scmp.ge.s32.totalorder %s2933_s23, 1 }
  0x12   : > { %p3027_p6 = por %p166_p3, %p61_p0  ;;  %p201_p7 = scmp.lt.s32.totalorder %s2933_s23, 3 }
  0x13   : > { %s4752_s1 = sld [smem:[#allocation32_spill]]  ;;  %s2935_s9 = smov [#allocation5]  }
  0x14   : > { %p3035_p8 = pnand %p2525_p5, %p201_p7  ;;  %s214_s10 = sshll.u32 %s2935_s9, 4  ;;  %s215_s10 = int_to_ptr.vmem [resolvable:$true] %s214_s10 }
  0x15   : > { %p2529_p11 = scmp.ge.s32.totalorder %s2933_s23, 2  ;;  %s4755_s2 = sld [smem:[#allocation33_spill]] }
  0x16   : > { %p2601_p9 = pneg %p3035_p8  ;;  %s2936_s15 = smov 384  }
  0x17   : > { %s2937_s16 = smov 24   ;;  %s2938_s17 = smov [#allocation7]  }
  0x18   : > { %p3043_p10 = pnand %p2601_p9, %p3012_p1  ;;  %s231_s24 = sshll.u32 %s2938_s17, 4  ;;  %s232_s24 = int_to_ptr.vmem [resolvable:$true] %s231_s24 }
  0x19   : > { %s212_s7 = sshll.u32 %s4752_s1, 4  ;;  %s4686_s25 = smov 128   ;;  %s213_s7 = int_to_ptr.hbm [resolvable:$true] %s212_s7 }
  0x1a   : > { %2604 = dma.hbm_to_vmem [thread:$0]  (!%p3043_p10), %s213_s7, 6144, %s215_s10, [#allocation6], %s2936_s15, %s2936_s15, %s2937_s16  }
  0x1b   : > { %s229_s14 = sshll.u32 %s4755_s2, 4  ;;  %s4687_s30 = smov 8   ;;  %s230_s14 = int_to_ptr.hbm [resolvable:$true] %s229_s14 }
  0x1c   : > { %2607 = dma.hbm_to_vmem [thread:$0]  (!%p3043_p10), %s230_s14, 1024, %s232_s24, [#allocation6], %s4686_s25, %s4686_s25, %s4687_s30  }
  0x1d   : > { %s4756_s3 = sld [smem:[#allocation34_spill]]  ;;  %s2941_s7 = smov [#allocation8]  }
  0x1e   : > { %s248_s10 = sshll.u32 %s2941_s7, 4  ;;  %s48_s13 = sadd.s32 1, %s2921_s20  ;;  %s249_s10 = int_to_ptr.vmem [resolvable:$true] %s248_s10 }
  0x1f   : > { %s39_s15 = sadd.s32 1, %s2929_s22  ;;  %p55_p12 = scmp.ne.s32.totalorder %s2921_s20, %s2917_s19 }
  0x20   : > { %p41_p13 = scmp.ge.s32.totalorder %s39_s15, 2  ;;  %p56_p0 = scmp.eq.s32.totalorder %s2933_s23, 0 }
  0x21   : > { %p3073_p3 = por %p3016_p2, %p55_p12  ;;  %p2625_p5 = scmp.lt.s32.totalorder %s2933_s23, 2 }
  0x22   : > { %s4850_s15 = smov (%p41_p13, %s39_s15), 0  ;;  %p3080_p7 = por %p56_p0, %p55_p12 }
  0x23   : > { %s246_s12 = sshll.u32 %s4756_s3, 4  ;;  %s262_s16 = sand.u32 1, %s2921_s20   ;;  %s247_s12 = int_to_ptr.hbm [resolvable:$true] %s246_s12 }
  0x24   : > { %2610 = dma.hbm_to_vmem [thread:$0]  (!%p3043_p10), %s247_s12, 1024, %s249_s10, [#allocation9], %s4686_s25, %s4686_s25, %s4687_s30  }
  0x25   : > { %s43_s17 = ssub.s32 %s2929_s22, %s4850_s15  ;;  %s2530_s24 = sshll.u32 %s262_s16, 6 }
  0x26   : > { %p46_p9 = scmp.eq.s32.totalorder %s43_s17, 0  ;;  %s2548_s6 = sshll.u32 %s2929_s22, 6 }
  0x27   : > { %s273_s7 = scalar_lea.hbm %s4680_s0, %s2548_s6  ;;  %s266_s10 = scalar_lea.vmem [#allocation2], %s2530_s24 }
  0x28   : > { %s3089_s27 = scalar_select %p46_p9, %s2921_s20, %s48_s13  }
  0x29   : > { %s276_s25 = sshll.u32 %s266_s10, 4  ;;  %s274_s30 = sshll.u32 %s273_s7, 4  ;;  %s277_s25 = int_to_ptr.vmem [resolvable:$true] %s276_s25  ;;  %s275_s30 = int_to_ptr.hbm [resolvable:$true] %s274_s30 }
  0x2a   : > { %p2612_p2 = pnand %p2625_p5, %p3080_p7  ;;  %s263_s1 = scalar_lea.sflag [#allocation3], %s262_s16 }
  0x2b   : > { %s4759_s2 = smov 8   ;;  %s4760_s3 = smov 128  }
  0x2c   : > { %2614 = dma.hbm_to_vmem [thread:$0]  (!%p2612_p2), %s275_s30, 1024, %s277_s25, %s263_s1, %s4760_s3, %s4760_s3, %s4759_s2  }
  0x2d   : > { %288 = sbr.rel (%p3035_p8) target bundleno = 654 (0x28e), region = 36 }
  0x32   : > { %s3104_s13 = sand.u32 1, %s2917_s19  }
  0x33   : > { %s2534_s17 = sshll.u32 %s3104_s13, 6  ;;  %s291_s24 = scalar_lea.sflag [#allocation3], %s3104_s13 }
  0x34   : > { %s3110_s11 = scalar_lea.vmem [#allocation2], %s2534_s17 }
  0x35   : > { %2892 = dma.done.wait (%p3022_p4), %s291_s24, 1024  }
  0x36   : > { %2894 = vsyncadd (%p3022_p4), %s291_s24, 4294966272 }
  0x37   : > { %2896 = dma.done.wait (%p3012_p1), [#allocation6], 7168  }
  0x38   : > { %2898 = vsyncadd (%p3012_p1), [#allocation6], 4294960128 }
  0x39   : > { %2900 = dma.done.wait (%p3012_p1), [#allocation9], 1024  }
  0x3a   : > { %2902 = vsyncadd (%p3012_p1), [#allocation9], 4294966272  ;;  %v400_v0 = vld [vmem:[#allocation5 + $0x168] sm:$0xff]  ;;  %v397_v1 = vld [vmem:[#allocation5 + $0x150] sm:$0xff]  ;;  %s2942_s1 = smov 1   ;;  %s2943_s2 = smov 127  }
  0x3b   : > { %v394_v2 = vld [vmem:[#allocation5 + $0x138] sm:$0xff]  ;;  %v3124_v3 = vand.u32 4294901760, %v400_v0  ;;  %v3126_v4 = vand.u32 4294901760, %v397_v1  ;;  %v391_v6 = vld [vmem:[#allocation5 + $0x120] sm:$0xff]  ;;  %v388_v7 = vld [vmem:[#allocation5 + $0x108] sm:$0xff]  ;;  %s4283_s3 = scalar_lea.vmem [#allocation10], %s2534_s17 }
  0x3c   : > { %v3128_v5 = vand.u32 4294901760, %v394_v2  ;;  %v385_v8 = vld [vmem:[#allocation5 + $0xf0] sm:$0xff]  ;;  %v3130_v9 = vand.u32 4294901760, %v391_v6  ;;  %v3132_v10 = vand.u32 4294901760, %v388_v7  ;;  %v382_v12 = vld [vmem:[#allocation5 + $0xd8] sm:$0xff]  ;;  %v379_v13 = vld [vmem:[#allocation5 + $0xc0] sm:$0xff] }
  0x3d   : > { %v3134_v11 = vand.u32 4294901760, %v385_v8  ;;  %2551 = vmatpush.msra.mxu2 %v3124_v3  ;;  %v3138_v14 = vsub.f32 %v400_v0, %v3124_v3  ;;  %v3141_v15 = vsub.f32 %v397_v1, %v3126_v4  ;;  %404 = vmatpush.msra.mxu0 %v3124_v3  ;;  %v376_v17 = vld [vmem:[#allocation5 + $0xa8] sm:$0xff]  ;;  %v3147_v18 = vand.u32 4294901760, %v382_v12  ;;  %v373_v25 = vld [vmem:[#allocation5 + $0x90] sm:$0xff]  ;;  %v370_v33 = vld [vmem:[#allocation5 + $0x78] sm:$0xff]  ;;  %s2539_s26 = sshll.u32 %s3104_s13, 7 }
  0x3e   : > { %v3144_v16 = vsub.f32 %v394_v2, %v3128_v5  ;;  %v3150_v19 = vsub.f32 %v391_v6, %v3130_v9  ;;  %v3153_v20 = vsub.f32 %v388_v7, %v3132_v10  ;;  %v3159_v24 = vand.u32 4294901760, %v379_v13  ;;  %v367_v42 = vld [vmem:[#allocation5 + $0x60] sm:$0xff]  ;;  %v364_v49 = vld [vmem:[#allocation5 + $0x48] sm:$0xff]  ;;  %v361_v55 = vld [vmem:[#allocation5 + $0x30] sm:$0xff]  ;;  %s4524_s28 = scalar_lea.vmem [#allocation11], %s2539_s26  ;;  %s2549_s8 = sshll.u32 %s2925_s21, 6 }
  0x3f   : > { %2552 = vmatpush.msra.mxu2 %v3126_v4  ;;  %v502_v21 = vand.u32 4294901760, %v3138_v14  ;;  %v508_v22 = vand.u32 4294901760, %v3141_v15  ;;  %406 = vmatpush.msra.mxu0 %v3126_v4  ;;  %v3163_v27 = vand.u32 4294901760, %v376_v17  ;;  %v3166_v28 = vsub.f32 %v385_v8, %v3134_v11  ;;  %v351_v47 = vld [vmem:[%s3110_s11 + $0x20] sm:$0xff]  ;;  %v358_v62 = vld [vmem:[#allocation5 + $0x18] sm:$0xff]  ;;  %s2343_s16 = scalar_lea.hbm %s4684_s4, %s2549_s8  ;;  %s2344_s6 = sshll.u32 %s4283_s3, 4  ;;  %s2345_s6 = int_to_ptr.vmem [resolvable:$true] %s2344_s6 }
  0x40   : > { %v514_v23 = vand.u32 4294901760, %v3144_v16  ;;  %v520_v26 = vand.u32 4294901760, %v3150_v19  ;;  %v526_v32 = vand.u32 4294901760, %v3153_v20  ;;  %v3183_v35 = vand.u32 4294901760, %v373_v25  ;;  %v355_v2 = vld [vmem:[#allocation5] sm:$0xff]  ;;  %s2346_s9 = sshll.u32 %s2343_s16, 4  ;;  %s2347_s9 = int_to_ptr.hbm [resolvable:$true] %s2346_s9 }
  0x41   : > { %2553 = vmatpush.msra.mxu2 %v3128_v5  ;;  %v503_v29 = vsub.f32 %v3138_v14, %v502_v21  ;;  %v509_v30 = vsub.f32 %v3141_v15, %v508_v22  ;;  %408 = vmatpush.msra.mxu0 %v3128_v5  ;;  %v3186_v36 = vsub.f32 %v382_v12, %v3147_v18  ;;  %v532_v39 = vand.u32 4294901760, %v3166_v28  ;;  %v347_v12 = vld [vmem:[%s3110_s11] sm:$0xff]  ;;  %s2325_s12 = scalar_lea.sflag [#allocation4], %s3104_s13  ;;  %s2825_s7 = sshra.s32 %s2347_s9, 4  ;;  %s2826_s7 = int_to_ptr.hbm [resolvable:$true] %s2825_s7 }
  0x42   : > { %v515_v31 = vsub.f32 %v3144_v16, %v514_v23  ;;  %v521_v34 = vsub.f32 %v3150_v19, %v520_v26  ;;  %v3192_v40 = vsub.f32 %v379_v13, %v3159_v24  ;;  %v3194_v41 = vand.u32 4294901760, %v370_v33  ;;  %s2827_s10 = scalar_lea.hbm %s2826_s7, 64  ;;  %p2832_p10 = scmp.lt.s32.totalorder %s2826_s7, %s4684_s4 }
  0x43   : > { %2554 = vmatpush.msra.mxu2 %v3130_v9  ;;  %v504_v37 = vand.u32 4294901760, %v503_v29  ;;  %v510_v38 = vand.u32 4294901760, %v509_v30  ;;  %410 = vmatpush.msra.mxu0 %v3130_v9  ;;  %v527_v44 = vsub.f32 %v3153_v20, %v526_v32  ;;  %v4696_v45 = vand.u32 4294901760, %v3186_v36  ;;  %v352_v30 = vld [vmem:[%s3110_s11 + $0x28] sm:$0xff]  ;;  %p2828_p1 = scmp.ne.s32.totalorder %s2826_s7, %s2827_s10 }
  0x44   : > { %v516_v43 = vand.u32 4294901760, %v515_v31  ;;  %v3202_v46 = vsub.f32 %v376_v17, %v3163_v27  ;;  %v4694_v48 = vand.u32 4294901760, %v3192_v40  ;;  %v522_v50 = vand.u32 4294901760, %v521_v34 }
  0x45   : > { %2555 = vmatpush.msra.mxu2 %v3132_v10  ;;  %2567 = vmatpush.msra.mxu3 %v504_v37  ;;  %v533_v51 = vsub.f32 %v3166_v28, %v532_v39  ;;  %v3211_v52 = vand.u32 4294901760, %v367_v42  ;;  %v3214_v53 = vsub.f32 %v373_v25, %v3183_v35  ;;  %v3218_v56 = vand.u32 4294901760, %v351_v47  ;;  %p2829_p4 = pnand %p2828_p1, %p3073_p3 }
  0x46   : > { %505 = vmatpush.msra.mxu1 %v504_v37  ;;  %412 = vmatpush.msra.mxu0 %v3132_v10  ;;  %v4692_v54 = vand.u32 4294901760, %v3202_v46  ;;  %v528_v57 = vand.u32 4294901760, %v527_v44  ;;  %v539_v58 = vsub.f32 %v3186_v36, %v4696_v45  ;;  %v3224_v59 = vand.u32 4294901760, %v364_v49 }
  0x47   : > { %2556 = vmatpush.msra.mxu2 %v3134_v11  ;;  %2568 = vmatpush.msra.mxu3 %v510_v38  ;;  %v3227_v60 = vsub.f32 %v370_v33, %v3194_v41  ;;  %v545_v61 = vsub.f32 %v3192_v40, %v4694_v48  ;;  %v534_v63 = vand.u32 4294901760, %v533_v51  ;;  %v3234_v0 = vand.u32 4294901760, %v361_v55  ;;  %p2830_p8 = pneg %p2829_p4 }
  0x48   : > { %511 = vmatpush.msra.mxu1 %v510_v38  ;;  %414 = vmatpush.msra.mxu0 %v3134_v11  ;;  %v4690_v1 = vand.u32 4294901760, %v3214_v53  ;;  %v3238_v6 = vsub.f32 %v367_v42, %v3211_v52  ;;  %v551_v7 = vsub.f32 %v3202_v46, %v4692_v54  ;;  %v3245_v8 = vsub.f32 %v351_v47, %v3218_v56 }
  0x49   : > { %2557 = vmatpush.msra.mxu2 %v3147_v18  ;;  %2569 = vmatpush.msra.mxu3 %v516_v43  ;;  %v540_v13 = vand.u32 4294901760, %v539_v58  ;;  %v3249_v17 = vand.u32 4294901760, %v358_v62  ;;  %v4689_v25 = vand.u32 4294901760, %v3227_v60  ;;  %v3253_v29 = vsub.f32 %v364_v49, %v3224_v59 }
  0x4a   : > { %517 = vmatpush.msra.mxu1 %v516_v43  ;;  %416 = vmatpush.msra.mxu0 %v3147_v18  ;;  %v546_v31 = vand.u32 4294901760, %v545_v61  ;;  %v3256_v33 = vand.u32 4294901760, %v355_v2  ;;  %v557_v34 = vsub.f32 %v3214_v53, %v4690_v1  ;;  %v4688_v37 = vand.u32 4294901760, %v3238_v6 }
  0x4b   : > { %2558 = vmatpush.msra.mxu2 %v3159_v24  ;;  %2570 = vmatpush.msra.mxu3 %v522_v50  ;;  %v3265_v38 = vsub.f32 %v361_v55, %v3234_v0  ;;  %v3267_v42 = vand.u32 4294901760, %v347_v12  ;;  %v552_v43 = vand.u32 4294901760, %v551_v7  ;;  %v3270_v44 = vand.u32 4294901760, %v3245_v8 }
  0x4c   : > { %523 = vmatpush.msra.mxu1 %v522_v50  ;;  %418 = vmatpush.msra.mxu0 %v3159_v24  ;;  %v3273_v47 = vand.u32 4294901760, %v352_v30  ;;  %v563_v49 = vsub.f32 %v3227_v60, %v4689_v25  ;;  %v4691_v50 = vand.u32 4294901760, %v3253_v29  ;;  %v3281_v51 = vsub.f32 %v358_v62, %v3249_v17  ;;  %v348_v25 = vld [vmem:[%s3110_s11 + $0x8] sm:$0xff] }
  0x4d   : > { %2559 = vmatpush.msra.mxu2 %v3163_v27  ;;  %2571 = vmatpush.msra.mxu3 %v528_v57  ;;  %v3284_v55 = vsub.f32 %v347_v12, %v3267_v42  ;;  %v569_v58 = vsub.f32 %v3238_v6, %v4688_v37  ;;  %v4693_v61 = vand.u32 4294901760, %v3265_v38  ;;  %v3293_v62 = vsub.f32 %v355_v2, %v3256_v33 }
  0x4e   : > { %529 = vmatpush.msra.mxu1 %v528_v57  ;;  %420 = vmatpush.msra.mxu0 %v3163_v27  ;;  %v558_v57 = vand.u32 4294901760, %v557_v34  ;;  %v3299_v7 = vsub.f32 %v352_v30, %v3273_v47  ;;  %v575_v2 = vsub.f32 %v3253_v29, %v4691_v50  ;;  %v353_v34 = vld [vmem:[%s3110_s11 + $0x30] sm:$0xff] }
  0x4f   : > { %2560 = vmatpush.msra.mxu2 %v3183_v35  ;;  %2572 = vmatpush.msra.mxu3 %v534_v63  ;;  %4761 = vst [vmem:[#allocation18_spill] sm:$0xff] %v3284_v55  ;;  %v3302_v12 = vand.u32 4294901760, %v3284_v55  ;;  %v570_v30 = vand.u32 4294901760, %v569_v58  ;;  %v581_v37 = vsub.f32 %v3265_v38, %v4693_v61  ;;  %v3325_v54 = vand.u32 4294901760, %v353_v34 }
  0x50   : > { %535 = vmatpush.msra.mxu1 %v534_v63  ;;  %422 = vmatpush.msra.mxu0 %v3183_v35  ;;  %v470_v63 = vsub.f32 %v3245_v8, %v3270_v44  ;;  %v3320_v50 = vand.u32 4294901760, %v3299_v7  ;;  %v576_v58 = vand.u32 4294901760, %v575_v2 }
  0x51   : > { %2561 = vmatpush.msra.mxu2 %v3194_v41  ;;  %2573 = vmatpush.msra.mxu3 %v540_v13  ;;  %4762 = vst [vmem:[#allocation19_spill] sm:$0xff] %v3302_v12  ;;  %v582_v61 = vand.u32 4294901760, %v581_v37  ;;  %v354_v37 = vld [vmem:[%s3110_s11 + $0x38] sm:$0xff] }
  0x52   : > { %541 = vmatpush.msra.mxu1 %v540_v13  ;;  %424 = vmatpush.msra.mxu0 %v3194_v41  ;;  %v564_v13 = vand.u32 4294901760, %v563_v49  ;;  %v4697_v49 = vand.u32 4294901760, %v3293_v62  ;;  %v3317_v1 = vand.u32 4294901760, %v470_v63  ;;  %v478_v2 = vsub.f32 %v3299_v7, %v3320_v50 }
  0x53   : > { %2562 = vmatpush.msra.mxu2 %v3211_v52  ;;  %2574 = vmatpush.msra.mxu3 %v546_v31 }
  0x54   : > { %547 = vmatpush.msra.mxu1 %v546_v31  ;;  %426 = vmatpush.msra.mxu0 %v3211_v52  ;;  %v4695_v31 = vand.u32 4294901760, %v3281_v51  ;;  %4763 = vst [vmem:[#allocation20_spill] sm:$0xff] %v3317_v1  ;;  %v593_v48 = vsub.f32 %v3293_v62, %v4697_v49 }
  0x55   : > { %2563 = vmatpush.msra.mxu2 %v3224_v59  ;;  %2575 = vmatpush.msra.mxu3 %v552_v43 }
  0x56   : > { %553 = vmatpush.msra.mxu1 %v552_v43  ;;  %428 = vmatpush.msra.mxu0 %v3224_v59  ;;  %v438_v43 = vsub.f32 %v3284_v55, %v3302_v12  ;;  %v587_v63 = vsub.f32 %v3281_v51, %v4695_v31 }
  0x57   : > { %2564 = vmatpush.msra.mxu2 %v3234_v0  ;;  %2576 = vmatpush.msra.mxu3 %v558_v57 }
  0x58   : > { %559 = vmatpush.msra.mxu1 %v558_v57  ;;  %430 = vmatpush.msra.mxu0 %v3234_v0  ;;  %v3332_v57 = vand.u32 4294901760, %v348_v25  ;;  %v3341_v31 = vand.u32 4294901760, %v438_v43  ;;  %v588_v45 = vand.u32 4294901760, %v587_v63  ;;  %v3353_v43 = vand.u32 4294901760, %v478_v2 }
  0x59   : > { %2565 = vmatpush.msra.mxu2 %v3249_v17  ;;  %2577 = vmatpush.msra.mxu3 %v564_v13  ;;  %v3359_v63 = vand.u32 4294901760, %v354_v37 }
  0x5a   : > { %565 = vmatpush.msra.mxu1 %v564_v13  ;;  %432 = vmatpush.msra.mxu0 %v3249_v17  ;;  %v3344_v13 = vsub.f32 %v353_v34, %v3325_v54  ;;  %v3350_v49 = vsub.f32 %v348_v25, %v3332_v57  ;;  %4765 = vst [vmem:[#allocation22_spill] sm:$0xff] %v3353_v43 }
  0x5b   : > { %2566 = vmatpush.msra.mxu2 %v3256_v33  ;;  %2578 = vmatpush.msra.mxu3 %v570_v30 }
  0x5c   : > { %472 = vmatmul.f32.vlgmr.msra.gmra.mxu2 %v3317_v1  ;;  %571 = vmatpush.msra.mxu1 %v570_v30  ;;  %4764 = vst [vmem:[#allocation21_spill] sm:$0xff] %v3350_v49  ;;  %v594_v30 = vand.u32 4294901760, %v593_v48  ;;  %v3357_v34 = vand.u32 4294901760, %v3344_v13  ;;  %v3365_v48 = vand.u32 4294901760, %v3350_v49  ;;  %v356_v1 = vld [vmem:[#allocation5 + $0x8] sm:$0xff] }
  0x5d   : > { %2579 = vmatpush.msra.mxu3 %v576_v58  ;;  %631 = vmatpush.msrb.mxu2 %v3138_v14 }
  0x5e   : > { %577 = vmatpush.msra.mxu1 %v576_v58  ;;  %434 = vmatpush.msra.mxu0 %v3256_v33  ;;  %4766 = vst [vmem:[#allocation23_spill] sm:$0xff] %v3365_v48  ;;  %v486_v25 = vsub.f32 %v3344_v13, %v3357_v34  ;;  %v446_v14 = vsub.f32 %v3350_v49, %v3365_v48 }
  0x5f   : > { %2580 = vmatpush.msra.mxu3 %v582_v61  ;;  %634 = vmatpush.msrb.mxu2 %v3141_v15 }
  0x60   : > { %583 = vmatpush.msra.mxu1 %v582_v61  ;;  %440 = vmatmul.f32.vlgmr.msra.gmra.mxu0 %v3341_v31  ;;  %v3373_v61 = vsub.f32 %v354_v37, %v3359_v63  ;;  %v3386_v58 = vand.u32 4294901760, %v486_v25 }
  0x61   : > { %2581 = vmatpush.msra.mxu3 %v588_v45  ;;  %637 = vmatpush.msrb.mxu2 %v3144_v16 }
  0x62   : > { %589 = vmatpush.msra.mxu1 %v588_v45  ;;  %802 = vmatpush.msrb.mxu0 %v502_v21  ;;  %4767 = vst [vmem:[#allocation24_spill] sm:$0xff] %v3373_v61  ;;  %v349_v45 = vld [vmem:[%s3110_s11 + $0x10] sm:$0xff]  ;;  %v3392_v15 = vand.u32 4294901760, %v3373_v61 }
  0x63   : > { %2582 = vmatpush.msra.mxu3 %v594_v30  ;;  %640 = vmatpush.msrb.mxu2 %v3150_v19  ;;  %v3384_v21 = vand.u32 4294901760, %v349_v45  ;;  %4768 = vst [vmem:[#allocation25_spill] sm:$0xff] %v3386_v58 }
  0x64   : > { %480 = vmatmul.f32.gmra.mxu2 %v3353_v43  ;;  %613 = vmatmul.f32.vlgmr.msra.gmra.mxu3 %v3218_v56 }
  0x65   : > { %719 = vmatpush.msrb.mxu3 %v3124_v3  ;;  %643 = vmatpush.msrb.mxu2 %v3153_v20  ;;  %v3404_v16 = vsub.f32 %v349_v45, %v3384_v21  ;;  %v398_v20 = vld [vmem:[#allocation5 + $0x158] sm:$0xff] }
  0x66   : > { %595 = vmatpush.msra.mxu1 %v594_v30  ;;  %806 = vmatpush.msrb.mxu0 %v508_v22  ;;  %v3399_v22 = vand.u32 4294901760, %v446_v14  ;;  %v4774_v14 = vand.u32 4294901760, %v3192_v40 }
  0x67   : > { %721 = vmatpush.msrb.mxu3 %v3126_v4  ;;  %646 = vmatpush.msrb.mxu2 %v3166_v28  ;;  %4769 = vst [vmem:[#allocation26_spill] sm:$0xff] %v3404_v16  ;;  %v3418_v19 = vand.u32 4294901760, %v3404_v16  ;;  %v3447_v28 = vand.u32 4294901760, %v398_v20 }
  0x68   : > { %597 = vmatmul.f32.vlgmr.msra.gmra.mxu1 %v3267_v42  ;;  %810 = vmatpush.msrb.mxu0 %v514_v23  ;;  %v494_v23 = vsub.f32 %v3373_v61, %v3392_v15 }
  0x69   : > { %723 = vmatpush.msrb.mxu3 %v3128_v5  ;;  %649 = vmatpush.msrb.mxu2 %v3186_v36  ;;  %4770 = vst [vmem:[#allocation27_spill] sm:$0xff] %v3418_v19 }
  0x6a   : > { %897 = vmatpush.msrb.mxu1 %v3124_v3  ;;  %814 = vmatpush.msrb.mxu0 %v520_v26  ;;  %v350_v3 = vld [vmem:[%s3110_s11 + $0x18] sm:$0xff]  ;;  %v3421_v26 = vand.u32 4294901760, %v494_v23  ;;  %s2831_s11 = scalar_lea.hbm %s4684_s4, 128 }
  0x6b   : > { %725 = vmatpush.msrb.mxu3 %v3130_v9  ;;  %652 = vmatpush.msrb.mxu2 %v3192_v40  ;;  %v3425_v2 = vand.u32 4294901760, %v350_v3  ;;  %p2833_p12 = scmp.lt.s32.totalorder %s2831_s11, %s2827_s10 }
  0x6c   : > { %488 = vmatmul.f32.gmra.mxu2 %v3386_v58  ;;  %617 = vmatmul.f32.gmra.mxu3 %v3273_v47  ;;  %4771 = vst [vmem:[#allocation28_spill] sm:$0xff] %v3421_v26 }
  0x6d   : > { %727 = vmatpush.msrb.mxu3 %v3132_v10  ;;  %655 = vmatpush.msrb.mxu2 %v3202_v46  ;;  %v3441_v37 = vsub.f32 %v350_v3, %v3425_v2  ;;  %p2834_p13 = por %p2833_p12, %p2832_p10 }
  0x6e   : > { %899 = vmatpush.msrb.mxu1 %v3126_v4  ;;  %448 = vmatmul.f32.gmra.mxu0 %v3399_v22  ;;  %v401_v4 = vld [vmem:[#allocation5 + $0x170] sm:$0xff] }
  0x6f   : > { %729 = vmatpush.msrb.mxu3 %v3134_v11  ;;  %658 = vmatpush.msrb.mxu2 %v3214_v53  ;;  %4772 = vst [vmem:[#allocation29_spill] sm:$0xff] %v3441_v37  ;;  %v3460_v45 = vand.u32 4294901760, %v3441_v37  ;;  %p2835_p0 = pnand %p2834_p13, %p2830_p8 }
  0x70   : > { %901 = vmatpush.msrb.mxu1 %v3128_v5  ;;  %818 = vmatpush.msrb.mxu0 %v526_v32  ;;  %v454_v5 = vsub.f32 %v3404_v16, %v3418_v19  ;;  %v3438_v32 = vand.u32 4294901760, %v401_v4 }
  0x71   : > { %731 = vmatpush.msrb.mxu3 %v3147_v18  ;;  %661 = vmatpush.msrb.mxu2 %v3227_v60  ;;  %v462_v40 = vsub.f32 %v3441_v37, %v3460_v45 }
  0x72   : > { %903 = vmatpush.msrb.mxu1 %v3130_v9  ;;  %822 = vmatpush.msrb.mxu0 %v532_v39  ;;  %v395_v9 = vld [vmem:[#allocation5 + $0x140] sm:$0xff]  ;;  %v4773_v39 = vand.u32 4294901760, %v3186_v36  ;;  %v3452_v30 = vand.u32 4294901760, %v454_v5  ;;  %v3457_v25 = vsub.f32 %v401_v4, %v3438_v32  ;;  %v3470_v36 = vsub.f32 %v398_v20, %v3447_v28  ;;  %v386_v5 = vld [vmem:[#allocation5 + $0xf8] sm:$0xff] }
  0x73   : > { %733 = vmatpush.msrb.mxu3 %v3159_v24  ;;  %664 = vmatpush.msrb.mxu2 %v3238_v6  ;;  %v4775_v20 = vand.u32 4294901760, %v3202_v46  ;;  %v3508_v46 = vand.u32 4294901760, %v386_v5 }
  0x74   : > { %496 = vmatmul.f32.gmra.mxu2 %v3421_v26  ;;  %601 = vmatmul.f32.gmra.mxu1 %v3332_v57  ;;  %v4700_v23 = vand.u32 4294901760, %v3457_v25  ;;  %v4777_v26 = vand.u32 4294901760, %v3214_v53  ;;  %v380_v53 = vld [vmem:[#allocation5 + $0xc8] sm:$0xff] }
  0x75   : > { %621 = vmatmul.f32.gmra.mxu3 %v3325_v54  ;;  %667 = vmatpush.msrb.mxu2 %v3253_v29 }
  0x76   : > { %735 = vmatpush.msrb.mxu3 %v3163_v27  ;;  %905 = vmatpush.msrb.mxu1 %v3132_v10  ;;  %v3462_v10 = vand.u32 4294901760, %v395_v9 }
  0x77   : > { %670 = vmatpush.msrb.mxu2 %v3265_v38  ;;  %826 = vmatpush.msrb.mxu0 %v4773_v39  ;;  %v3496_v39 = vand.u32 4294901760, %v462_v40  ;;  %v4778_v40 = vand.u32 4294901760, %v3470_v36 }
  0x78   : > { %737 = vmatpush.msrb.mxu3 %v3183_v35  ;;  %907 = vmatpush.msrb.mxu1 %v3134_v11  ;;  %v392_v11 = vld [vmem:[#allocation5 + $0x128] sm:$0xff]  ;;  %v3480_v3 = vsub.f32 %v395_v9, %v3462_v10 }
  0x79   : > { %673 = vmatpush.msrb.mxu2 %v3281_v51  ;;  %830 = vmatpush.msrb.mxu0 %v4774_v14  ;;  %v3484_v4 = vand.u32 4294901760, %v392_v11  ;;  %4776 = vst [vmem:[#allocation30_spill] sm:$0xff] %v3496_v39  ;;  %v1061_v14 = vsub.f32 %v3457_v25, %v4700_v23  ;;  %v1067_v23 = vsub.f32 %v3470_v36, %v4778_v40  ;;  %v3537_v40 = vand.u32 4294901760, %v380_v53 }
  0x7a   : > { %739 = vmatpush.msrb.mxu3 %v3194_v41  ;;  %909 = vmatpush.msrb.mxu1 %v3147_v18  ;;  %v389_v18 = vld [vmem:[#allocation5 + $0x110] sm:$0xff] }
  0x7b   : > { %676 = vmatpush.msrb.mxu2 %v3293_v62  ;;  %456 = vmatmul.f32.gmra.mxu0 %v3452_v30  ;;  %v3492_v9 = vand.u32 4294901760, %v389_v18 }
  0x7c   : > { %741 = vmatpush.msrb.mxu3 %v3211_v52  ;;  %911 = vmatpush.msrb.mxu1 %v3159_v24  ;;  %v4779_v24 = vand.u32 4294901760, %v3227_v60  ;;  %v4781_v60 = vand.u32 4294901760, %v3238_v6  ;;  %v4782_v6 = vand.u32 4294901760, %v3253_v29 }
  0x7d   : > { %605 = vmatmul.f32.gmra.mxu1 %v3384_v21  ;;  %625 = vmatmul.f32.gmra.mxu3 %v3359_v63 }
  0x7e   : > { %679 = vmatmul.f32.vlgmr.msrb.gmra.mxu2 %v3284_v55  ;;  %743 = vmatpush.msrb.mxu3 %v3224_v59 }
  0x7f   : > { %834 = vmatpush.msrb.mxu0 %v4775_v20  ;;  %913 = vmatpush.msrb.mxu1 %v3163_v27  ;;  %v3506_v27 = vsub.f32 %v392_v11, %v3484_v4  ;;  %v383_v20 = vld [vmem:[#allocation5 + $0xe0] sm:$0xff]  ;;  %v4780_v11 = vand.u32 4294901760, %v3480_v3 }
  0x80   : > { %745 = vmatpush.msrb.mxu3 %v3234_v0  ;;  %962 = vmatpush.msra.mxu2 %v3438_v32  ;;  %v3526_v43 = vand.u32 4294901760, %v383_v20 }
  0x81   : > { %838 = vmatpush.msrb.mxu0 %v4777_v26  ;;  %915 = vmatpush.msrb.mxu1 %v3183_v35  ;;  %v3519_v35 = vsub.f32 %v389_v18, %v3492_v9  ;;  %v1062_v26 = vand.u32 4294901760, %v1061_v14  ;;  %v1073_v58 = vsub.f32 %v3480_v3, %v4780_v11  ;;  %v3533_v18 = vsub.f32 %v386_v5, %v3508_v46 }
  0x82   : > { %747 = vmatpush.msrb.mxu3 %v3249_v17  ;;  %964 = vmatpush.msra.mxu2 %v3447_v28  ;;  %v1068_v14 = vand.u32 4294901760, %v1067_v23  ;;  %v3545_v11 = vsub.f32 %v383_v20, %v3526_v43  ;;  %v4783_v23 = vand.u32 4294901760, %v3265_v38  ;;  %v4784_v29 = vand.u32 4294901760, %v3506_v27 }
  0x83   : > { %842 = vmatpush.msrb.mxu0 %v4779_v24  ;;  %917 = vmatpush.msrb.mxu1 %v3194_v41  ;;  %v377_v24 = vld [vmem:[#allocation5 + $0xb0] sm:$0xff]  ;;  %v1074_v5 = vand.u32 4294901760, %v1073_v58  ;;  %v374_v41 = vld [vmem:[#allocation5 + $0x98] sm:$0xff]  ;;  %v4785_v20 = vand.u32 4294901760, %v3281_v51 }
  0x84   : > { %749 = vmatpush.msrb.mxu3 %v3256_v33  ;;  %464 = vmatmul.f32.gmra.mxu0 %v3496_v39  ;;  %v3560_v58 = vand.u32 4294901760, %v374_v41 }
  0x85   : > { %846 = vmatpush.msrb.mxu0 %v4781_v60  ;;  %919 = vmatpush.msrb.mxu1 %v3211_v52  ;;  %v4707_v52 = vand.u32 4294901760, %v3519_v35  ;;  %v3547_v60 = vand.u32 4294901760, %v377_v24 }
  0x86   : > { %609 = vmatmul.f32.gmra.mxu1 %v3425_v2  ;;  %684 = vmatmul.f32.gmra.mxu2 %v3350_v49 }
  0x87   : > { %753 = vmatmul.f32.vlgmr.msrb.gmra.mxu3 %v3302_v12  ;;  %850 = vmatpush.msrb.mxu0 %v4782_v6  ;;  %v1079_v6 = vsub.f32 %v3506_v27, %v4784_v29  ;;  %v1085_v38 = vsub.f32 %v3519_v35, %v4707_v52 }
  0x88   : > { %1063 = vmatpush.msra.mxu3 %v1062_v26  ;;  %921 = vmatpush.msrb.mxu1 %v3224_v59  ;;  %v4705_v26 = vand.u32 4294901760, %v3533_v18  ;;  %v3558_v59 = vsub.f32 %v380_v53, %v3537_v40  ;;  %v3571_v53 = vsub.f32 %v377_v24, %v3547_v60 }
  0x89   : > { %854 = vmatpush.msrb.mxu0 %v4783_v23  ;;  %966 = vmatpush.msra.mxu2 %v3462_v10  ;;  %v371_v23 = vld [vmem:[#allocation5 + $0x80] sm:$0xff]  ;;  %v1080_v51 = vand.u32 4294901760, %v1079_v6 }
  0x8a   : > { %923 = vmatpush.msrb.mxu1 %v3234_v0  ;;  %1069 = vmatpush.msra.mxu3 %v1068_v14  ;;  %v4706_v0 = vand.u32 4294901760, %v3545_v11  ;;  %v4786_v14 = vand.u32 4294901760, %v3293_v62  ;;  %v1091_v29 = vsub.f32 %v3533_v18, %v4705_v26  ;;  %v3585_v24 = vand.u32 4294901760, %v371_v23  ;;  %v365_v26 = vld [vmem:[#allocation5 + $0x50] sm:$0xff] }
  0x8b   : > { %858 = vmatpush.msrb.mxu0 %v4785_v20  ;;  %968 = vmatpush.msra.mxu2 %v3484_v4  ;;  %v1086_v62 = vand.u32 4294901760, %v1085_v38  ;;  %v4711_v6 = vand.u32 4294901760, %v3571_v53  ;;  %v368_v20 = vld [vmem:[#allocation5 + $0x68] sm:$0xff] }
  0x8c   : > { %925 = vmatpush.msrb.mxu1 %v3249_v17  ;;  %1075 = vmatpush.msra.mxu3 %v1074_v5  ;;  %v4710_v17 = vand.u32 4294901760, %v3558_v59  ;;  %v3583_v5 = vsub.f32 %v374_v41, %v3560_v58  ;;  %v1092_v41 = vand.u32 4294901760, %v1091_v29  ;;  %v3605_v52 = vsub.f32 %v371_v23, %v3585_v24 }
  0x8d   : > { %862 = vmatpush.msrb.mxu0 %v4786_v14  ;;  %970 = vmatpush.msra.mxu2 %v3492_v9  ;;  %v3596_v14 = vand.u32 4294901760, %v368_v20  ;;  %v1109_v29 = vsub.f32 %v3571_v53, %v4711_v6 }
  0x8e   : > { %927 = vmatpush.msrb.mxu1 %v3256_v33  ;;  %689 = vmatmul.f32.gmra.mxu2 %v3404_v16  ;;  %v1097_v33 = vsub.f32 %v3545_v11, %v4706_v0  ;;  %v1103_v38 = vsub.f32 %v3558_v59, %v4710_v17  ;;  %v4716_v0 = vand.u32 4294901760, %v3583_v5  ;;  %v3616_v17 = vand.u32 4294901760, %v365_v26 }
  0x8f   : > { %759 = vmatmul.f32.gmra.mxu3 %v3365_v48  ;;  %864 = vmatmul.f32.vlgmr.msrb.gmra.mxu0 %v3267_v42  ;;  %v3614_v16 = vsub.f32 %v368_v20, %v3596_v14  ;;  %v1110_v20 = vand.u32 4294901760, %v1109_v29  ;;  %v4787_v29 = vand.u32 4294901760, %v3605_v52  ;;  %v3648_v48 = vand.u32 4294901760, %v356_v1 }
  0x90   : > { %929 = vmatmul.f32.vlgmr.msrb.gmra.mxu1 %v3267_v42  ;;  %1189 = vmatpush.msra.mxu0 %v3457_v25  ;;  %v1104_v23 = vand.u32 4294901760, %v1103_v38  ;;  %v3630_v6 = vsub.f32 %v365_v26, %v3616_v17  ;;  %v362_v38 = vld [vmem:[#allocation5 + $0x38] sm:$0xff] }
  0x91   : > { %1277 = vmatpush.msra.mxu1 %v3438_v32  ;;  %1081 = vmatpush.msra.mxu3 %v1080_v51  ;;  %v1098_v51 = vand.u32 4294901760, %v1097_v33  ;;  %v1121_v26 = vsub.f32 %v3605_v52, %v4787_v29 }
  0x92   : > { %1192 = vmatpush.msra.mxu0 %v3470_v36  ;;  %972 = vmatpush.msra.mxu2 %v3508_v46 }
  0x93   : > { %1279 = vmatpush.msra.mxu1 %v3447_v28  ;;  %1087 = vmatpush.msra.mxu3 %v1086_v62  ;;  %v1115_v62 = vsub.f32 %v3583_v5, %v4716_v0  ;;  %v3634_v0 = vand.u32 4294901760, %v362_v38 }
  0x94   : > { %1195 = vmatpush.msra.mxu0 %v3480_v3  ;;  %974 = vmatpush.msra.mxu2 %v3526_v43 }
  0x95   : > { %1281 = vmatpush.msra.mxu1 %v3462_v10  ;;  %1093 = vmatpush.msra.mxu3 %v1092_v41  ;;  %v4723_v41 = vand.u32 4294901760, %v3630_v6 }
  0x96   : > { %694 = vmatmul.f32.gmra.mxu2 %v3441_v37  ;;  %1198 = vmatpush.msra.mxu0 %v3506_v27  ;;  %v359_v37 = vld [vmem:[#allocation5 + $0x20] sm:$0xff] }
  0x97   : > { %765 = vmatmul.f32.gmra.mxu3 %v3418_v19  ;;  %868 = vmatmul.f32.gmra.mxu0 %v3332_v57  ;;  %v3636_v33 = vand.u32 4294901760, %v359_v37  ;;  %v3646_v19 = vsub.f32 %v362_v38, %v3634_v0  ;;  %v1122_v38 = vand.u32 4294901760, %v1121_v26  ;;  %v1133_v49 = vsub.f32 %v3630_v6, %v4723_v41 }
  0x98   : > { %933 = vmatmul.f32.gmra.mxu1 %v3332_v57  ;;  %1099 = vmatpush.msra.mxu3 %v1098_v51  ;;  %v1116_v51 = vand.u32 4294901760, %v1115_v62 }
  0x99   : > { %1283 = vmatpush.msra.mxu1 %v3484_v4  ;;  %1201 = vmatpush.msra.mxu0 %v3519_v35  ;;  %v3657_v29 = vsub.f32 %v359_v37, %v3636_v33  ;;  %v1134_v26 = vand.u32 4294901760, %v1133_v49 }
  0x9a   : > { %976 = vmatpush.msra.mxu2 %v3537_v40  ;;  %1105 = vmatpush.msra.mxu3 %v1104_v23  ;;  %v4788_v23 = vand.u32 4294901760, %v3614_v16 }
  0x9b   : > { %1285 = vmatpush.msra.mxu1 %v3492_v9  ;;  %1204 = vmatpush.msra.mxu0 %v3533_v18 }
  0x9c   : > { %978 = vmatpush.msra.mxu2 %v3547_v60  ;;  %1111 = vmatpush.msra.mxu3 %v1110_v20  ;;  %v1127_v62 = vsub.f32 %v3614_v16, %v4788_v23  ;;  %v4726_v20 = vand.u32 4294901760, %v3646_v19  ;;  %v3667_v23 = vsub.f32 %v356_v1, %v3648_v48 }
  0x9d   : > { %1287 = vmatpush.msra.mxu1 %v3508_v46  ;;  %1207 = vmatpush.msra.mxu0 %v3545_v11 }
  0x9e   : > { %699 = vmatmul.f32.gmra.mxu2 %v3245_v8  ;;  %1117 = vmatpush.msra.mxu3 %v1116_v51  ;;  %v1128_v37 = vand.u32 4294901760, %v1127_v62  ;;  %v4725_v51 = vand.u32 4294901760, %v3657_v29  ;;  %v1139_v1 = vsub.f32 %v3646_v19, %v4726_v20  ;;  %v4724_v41 = vand.u32 4294901760, %v3667_v23 }
  0x9f   : > { %771 = vmatmul.f32.gmra.mxu3 %v3460_v45  ;;  %872 = vmatmul.f32.gmra.mxu0 %v3384_v21 }
  0xa0   : > { %937 = vmatmul.f32.gmra.mxu1 %v3384_v21  ;;  %980 = vmatpush.msra.mxu2 %v3560_v58  ;;  %v1145_v62 = vsub.f32 %v3657_v29, %v4725_v51  ;;  %v1140_v49 = vand.u32 4294901760, %v1139_v1  ;;  %v402_v1 = vld [vmem:[#allocation5 + $0x178] sm:$0xff]  ;;  %v4790_v51 = vand.u32 4294901760, %v3470_v36 }
  0xa1   : > { %1289 = vmatpush.msra.mxu1 %v3526_v43  ;;  %1210 = vmatpush.msra.mxu0 %v3558_v59 }
  0xa2   : > { %982 = vmatpush.msra.mxu2 %v3585_v24  ;;  %1123 = vmatpush.msra.mxu3 %v1122_v38  ;;  %v1151_v38 = vsub.f32 %v3667_v23, %v4724_v41 }
  0xa3   : > { %1291 = vmatpush.msra.mxu1 %v3537_v40  ;;  %1213 = vmatpush.msra.mxu0 %v3571_v53 }
  0xa4   : > { %984 = vmatpush.msra.mxu2 %v3596_v14  ;;  %1129 = vmatpush.msra.mxu3 %v1128_v37  ;;  %v1146_v37 = vand.u32 4294901760, %v1145_v62  ;;  %v399_v62 = vld [vmem:[#allocation5 + $0x160] sm:$0xff] }
  0xa5   : > { %1293 = vmatpush.msra.mxu1 %v3547_v60  ;;  %1216 = vmatpush.msra.mxu0 %v3583_v5 }
  0xa6   : > { %704 = vmatmul.f32.gmra.mxu2 %v3299_v7  ;;  %1135 = vmatpush.msra.mxu3 %v1134_v26  ;;  %v1152_v26 = vand.u32 4294901760, %v1151_v38  ;;  %v3712_v38 = vand.u32 4294901760, %v399_v62 }
  0xa7   : > { %777 = vmatmul.f32.gmra.mxu3 %v3270_v44  ;;  %876 = vmatmul.f32.gmra.mxu0 %v3425_v2 }
  0xa8   : > { %941 = vmatmul.f32.gmra.mxu1 %v3425_v2  ;;  %986 = vmatpush.msra.mxu2 %v3616_v17  ;;  %v3723_v41 = vsub.f32 %v399_v62, %v3712_v38  ;;  %v393_v62 = vld [vmem:[#allocation5 + $0x130] sm:$0xff] }
  0xa9   : > { %1295 = vmatpush.msra.mxu1 %v3560_v58  ;;  %1219 = vmatpush.msra.mxu0 %v3605_v52 }
  0xaa   : > { %988 = vmatpush.msra.mxu2 %v3634_v0  ;;  %1141 = vmatpush.msra.mxu3 %v1140_v49  ;;  %v3710_v49 = vand.u32 4294901760, %v402_v1 }
  0xab   : > { %1297 = vmatpush.msra.mxu1 %v3585_v24  ;;  %1222 = vmatpush.msra.mxu0 %v3614_v16 }
  0xac   : > { %990 = vmatpush.msra.mxu2 %v3636_v33  ;;  %1147 = vmatpush.msra.mxu3 %v1146_v37  ;;  %v4789_v37 = vand.u32 4294901760, %v3457_v25  ;;  %v4740_v25 = vand.u32 4294901760, %v3723_v41 }
  0xad   : > { %1299 = vmatpush.msra.mxu1 %v3596_v14  ;;  %1225 = vmatpush.msra.mxu0 %v3630_v6 }
  0xae   : > { %709 = vmatmul.f32.gmra.mxu2 %v3344_v13  ;;  %1153 = vmatpush.msra.mxu3 %v1152_v26  ;;  %v3720_v26 = vsub.f32 %v402_v1, %v3710_v49  ;;  %v1625_v36 = vsub.f32 %v3723_v41, %v4740_v25  ;;  %v396_v1 = vld [vmem:[#allocation5 + $0x148] sm:$0xff] }
  0xaf   : > { %783 = vmatmul.f32.gmra.mxu3 %v3320_v50  ;;  %880 = vmatmul.f32.gmra.mxu0 %v3218_v56  ;;  %v3747_v20 = vand.u32 4294901760, %v396_v1 }
  0xb0   : > { %945 = vmatmul.f32.gmra.mxu1 %v3218_v56  ;;  %992 = vmatpush.msra.mxu2 %v3648_v48 }
  0xb1   : > { %1301 = vmatpush.msra.mxu1 %v3616_v17  ;;  %1228 = vmatpush.msra.mxu0 %v3646_v19 }
  0xb2   : > { %1360 = vmatpush.msrb.mxu2 %v4789_v37  ;;  %1455 = vmatpush.msrb.mxu3 %v3438_v32  ;;  %v4727_v32 = vand.u32 4294901760, %v3720_v26  ;;  %v1626_v37 = vand.u32 4294901760, %v1625_v36  ;;  %v390_v36 = vld [vmem:[#allocation5 + $0x118] sm:$0xff] }
  0xb3   : > { %1303 = vmatpush.msra.mxu1 %v3634_v0  ;;  %1231 = vmatpush.msra.mxu0 %v3657_v29 }
  0xb4   : > { %1364 = vmatpush.msrb.mxu2 %v4790_v51  ;;  %1457 = vmatpush.msrb.mxu3 %v3447_v28  ;;  %v1619_v28 = vsub.f32 %v3720_v26, %v4727_v32  ;;  %v4791_v51 = vand.u32 4294901760, %v3480_v3  ;;  %v3749_v32 = vand.u32 4294901760, %v393_v62  ;;  %v3756_v3 = vsub.f32 %v396_v1, %v3747_v20  ;;  %v387_v1 = vld [vmem:[#allocation5 + $0x100] sm:$0xff] }
  0xb5   : > { %1305 = vmatpush.msra.mxu1 %v3636_v33  ;;  %1234 = vmatpush.msra.mxu0 %v3667_v23 }
  0xb6   : > { %714 = vmatmul.f32.gmra.mxu2 %v3373_v61  ;;  %1459 = vmatpush.msrb.mxu3 %v3462_v10  ;;  %v1620_v10 = vand.u32 4294901760, %v1619_v28  ;;  %v4792_v61 = vand.u32 4294901760, %v3506_v27  ;;  %v4793_v28 = vand.u32 4294901760, %v3519_v35  ;;  %v4794_v35 = vand.u32 4294901760, %v3533_v18 }
  0xb7   : > { %789 = vmatmul.f32.gmra.mxu3 %v3357_v34  ;;  %884 = vmatmul.f32.gmra.mxu0 %v3273_v47 }
  0xb8   : > { %949 = vmatmul.f32.gmra.mxu1 %v3273_v47  ;;  %1368 = vmatpush.msrb.mxu2 %v4791_v51  ;;  %v3759_v51 = vsub.f32 %v393_v62, %v3749_v32 }
  0xb9   : > { %1307 = vmatpush.msra.mxu1 %v3648_v48  ;;  %1520 = vmatpush.msrb.mxu0 %v3710_v49 }
  0xba   : > { %1372 = vmatpush.msrb.mxu2 %v4792_v61  ;;  %1461 = vmatpush.msrb.mxu3 %v3484_v4  ;;  %v4738_v61 = vand.u32 4294901760, %v3756_v3  ;;  %v4736_v4 = vand.u32 4294901760, %v3759_v51 }
  0xbb   : > { %1621 = vmatpush.msrb.mxu1 %v1620_v10  ;;  %1522 = vmatpush.msrb.mxu0 %v3712_v38  ;;  %v3782_v10 = vand.u32 4294901760, %v390_v36 }
  0xbc   : > { %1376 = vmatpush.msrb.mxu2 %v4793_v28  ;;  %1463 = vmatpush.msrb.mxu3 %v3492_v9  ;;  %v1631_v27 = vsub.f32 %v3756_v3, %v4738_v61  ;;  %v1637_v9 = vsub.f32 %v3759_v51, %v4736_v4  ;;  %v4795_v28 = vand.u32 4294901760, %v3545_v11  ;;  %v360_v61 = vld [vmem:[#allocation5 + $0x28] sm:$0xff] }
  0xbd   : > { %1627 = vmatpush.msrb.mxu1 %v1626_v37  ;;  %1524 = vmatpush.msrb.mxu0 %v3747_v20  ;;  %v3784_v37 = vand.u32 4294901760, %v387_v1  ;;  %v3790_v18 = vsub.f32 %v390_v36, %v3782_v10  ;;  %v384_v36 = vld [vmem:[#allocation5 + $0xe8] sm:$0xff]  ;;  %v3929_v25 = vand.u32 4294901760, %v360_v61 }
  0xbe   : > { %998 = vmatmul.f32.vlgmr.msra.gmra.mxu2 %v3341_v31  ;;  %1465 = vmatpush.msrb.mxu3 %v3508_v46  ;;  %v1632_v46 = vand.u32 4294901760, %v1631_v27  ;;  %v1638_v62 = vand.u32 4294901760, %v1637_v9  ;;  %v4796_v9 = vand.u32 4294901760, %v3558_v59 }
  0xbf   : > { %795 = vmatmul.f32.gmra.mxu3 %v3392_v15  ;;  %888 = vmatmul.f32.gmra.mxu0 %v3325_v54  ;;  %v3793_v27 = vsub.f32 %v387_v1, %v3784_v37  ;;  %v381_v1 = vld [vmem:[#allocation5 + $0xd0] sm:$0xff] }
  0xc0   : > { %953 = vmatmul.f32.gmra.mxu1 %v3325_v54  ;;  %1380 = vmatpush.msrb.mxu2 %v4794_v35  ;;  %v4797_v35 = vand.u32 4294901760, %v3571_v53 }
  0xc1   : > { %1526 = vmatpush.msrb.mxu0 %v3749_v32  ;;  %1467 = vmatpush.msrb.mxu3 %v3526_v43  ;;  %v4735_v43 = vand.u32 4294901760, %v3790_v18  ;;  %v4730_v11 = vand.u32 4294901760, %v3793_v27 }
  0xc2   : > { %1384 = vmatpush.msrb.mxu2 %v4795_v28  ;;  %1633 = vmatpush.msrb.mxu1 %v1632_v46  ;;  %v3817_v28 = vand.u32 4294901760, %v381_v1 }
  0xc3   : > { %1528 = vmatpush.msrb.mxu0 %v3782_v10  ;;  %1469 = vmatpush.msrb.mxu3 %v3537_v40  ;;  %v1643_v59 = vsub.f32 %v3790_v18, %v4735_v43  ;;  %v1649_v40 = vsub.f32 %v3793_v27, %v4730_v11 }
  0xc4   : > { %1388 = vmatpush.msrb.mxu2 %v4796_v9  ;;  %1639 = vmatpush.msrb.mxu1 %v1638_v62  ;;  %v3814_v62 = vand.u32 4294901760, %v384_v36  ;;  %v4798_v9 = vand.u32 4294901760, %v3583_v5  ;;  %v3826_v53 = vsub.f32 %v381_v1, %v3817_v28 }
  0xc5   : > { %1530 = vmatpush.msrb.mxu0 %v3784_v37  ;;  %1471 = vmatpush.msrb.mxu3 %v3547_v60  ;;  %v1644_v60 = vand.u32 4294901760, %v1643_v59  ;;  %v1650_v46 = vand.u32 4294901760, %v1649_v40  ;;  %v4799_v59 = vand.u32 4294901760, %v3605_v52  ;;  %v378_v40 = vld [vmem:[#allocation5 + $0xb8] sm:$0xff] }
  0xc6   : > { %1006 = vmatmul.f32.gmra.mxu2 %v3399_v22  ;;  %v3823_v11 = vsub.f32 %v384_v36, %v3814_v62  ;;  %v4733_v5 = vand.u32 4294901760, %v3826_v53  ;;  %v375_v36 = vld [vmem:[#allocation5 + $0xa0] sm:$0xff] }
  0xc7   : > { %892 = vmatmul.f32.gmra.mxu0 %v3359_v63  ;;  %1155 = vmatmul.f32.vlgmr.msra.gmra.mxu3 %v3267_v42 }
  0xc8   : > { %957 = vmatmul.f32.gmra.mxu1 %v3359_v63  ;;  %1392 = vmatpush.msrb.mxu2 %v4797_v35  ;;  %v4800_v35 = vand.u32 4294901760, %v3614_v16 }
  0xc9   : > { %1473 = vmatpush.msrb.mxu3 %v3560_v58  ;;  %1645 = vmatpush.msrb.mxu1 %v1644_v60  ;;  %v4734_v58 = vand.u32 4294901760, %v3823_v11  ;;  %v3847_v60 = vand.u32 4294901760, %v378_v40 }
  0xca   : > { %1396 = vmatpush.msrb.mxu2 %v4798_v9  ;;  %1532 = vmatpush.msrb.mxu0 %v3814_v62  ;;  %v4801_v9 = vand.u32 4294901760, %v3630_v6 }
  0xcb   : > { %1475 = vmatpush.msrb.mxu3 %v3585_v24  ;;  %1651 = vmatpush.msrb.mxu1 %v1650_v46  ;;  %v1655_v52 = vsub.f32 %v3823_v11, %v4734_v58  ;;  %v1661_v24 = vsub.f32 %v3826_v53, %v4733_v5  ;;  %v3849_v46 = vand.u32 4294901760, %v375_v36  ;;  %v363_v5 = vld [vmem:[#allocation5 + $0x40] sm:$0xff] }
  0xcc   : > { %1400 = vmatpush.msrb.mxu2 %v4799_v59  ;;  %1534 = vmatpush.msrb.mxu0 %v3817_v28  ;;  %v3856_v59 = vsub.f32 %v378_v40, %v3847_v60  ;;  %v4804_v40 = vld [vmem:[#allocation23_spill] sm:$0xff]  ;;  %v3920_v4 = vand.u32 4294901760, %v363_v5 }
  0xcd   : > { %1477 = vmatpush.msrb.mxu3 %v3596_v14  ;;  %v1656_v14 = vand.u32 4294901760, %v1655_v52  ;;  %v1662_v1 = vand.u32 4294901760, %v1661_v24  ;;  %v3859_v16 = vsub.f32 %v375_v36, %v3849_v46  ;;  %v4802_v52 = vand.u32 4294901760, %v3646_v19  ;;  %v4803_v24 = vld [vmem:[#allocation21_spill] sm:$0xff] }
  0xce   : > { %1014 = vmatmul.f32.gmra.mxu2 %v3452_v30  ;;  %1536 = vmatpush.msrb.mxu0 %v3847_v60  ;;  %v4805_v36 = vand.u32 4294901760, %v3657_v29 }
  0xcf   : > { %1159 = vmatmul.f32.gmra.mxu3 %v3332_v57  ;;  %1237 = vmatmul.f32.vlgmr.msra.gmra.mxu0 %v3284_v55  ;;  %v4732_v6 = vand.u32 4294901760, %v3859_v16 }
  0xd0   : > { %1311 = vmatmul.f32.vlgmr.msra.gmra.mxu1 %v3302_v12  ;;  %1404 = vmatpush.msrb.mxu2 %v4800_v35  ;;  %v372_v35 = vld [vmem:[#allocation5 + $0x88] sm:$0xff] }
  0xd1   : > { %1479 = vmatpush.msrb.mxu3 %v3616_v17  ;;  %1657 = vmatpush.msrb.mxu1 %v1656_v14  ;;  %v4731_v17 = vand.u32 4294901760, %v3856_v59 }
  0xd2   : > { %1408 = vmatpush.msrb.mxu2 %v4801_v9  ;;  %1538 = vmatpush.msrb.mxu0 %v3849_v46  ;;  %v369_v9 = vld [vmem:[#allocation5 + $0x70] sm:$0xff] }
  0xd3   : > { %1481 = vmatpush.msrb.mxu3 %v3634_v0  ;;  %1663 = vmatpush.msrb.mxu1 %v1662_v1  ;;  %v1667_v19 = vsub.f32 %v3856_v59, %v4731_v17  ;;  %v1673_v0 = vsub.f32 %v3859_v16, %v4732_v6  ;;  %v3880_v1 = vand.u32 4294901760, %v372_v35  ;;  %v4806_v17 = vand.u32 4294901760, %v3667_v23  ;;  %v4807_v23 = vld [vmem:[#allocation20_spill] sm:$0xff] }
  0xd4   : > { %1412 = vmatpush.msrb.mxu2 %v4802_v52  ;;  %v3883_v52 = vand.u32 4294901760, %v369_v9 }
  0xd5   : > { %1483 = vmatpush.msrb.mxu3 %v3636_v33  ;;  %v1668_v14 = vand.u32 4294901760, %v1667_v19  ;;  %v1674_v33 = vand.u32 4294901760, %v1673_v0  ;;  %1540 = vmatpush.msrb.mxu0 %v3880_v1  ;;  %v3890_v29 = vsub.f32 %v372_v35, %v3880_v1  ;;  %v366_v0 = vld [vmem:[#allocation5 + $0x58] sm:$0xff]  ;;  %v4808_v35 = vld [vmem:[#allocation26_spill] sm:$0xff] }
  0xd6   : > { %1022 = vmatmul.f32.gmra.mxu2 %v3496_v39  ;;  %v3893_v19 = vsub.f32 %v369_v9, %v3883_v52  ;;  %v4809_v9 = vld [vmem:[#allocation27_spill] sm:$0xff]  ;;  %v4814_v39 = vand.u32 4294901760, %v3720_v26 }
  0xd7   : > { %1163 = vmatmul.f32.gmra.mxu3 %v3384_v21  ;;  %1242 = vmatmul.f32.gmra.mxu0 %v4803_v24 }
  0xd8   : > { %1317 = vmatmul.f32.gmra.mxu1 %v4804_v40  ;;  %1416 = vmatpush.msrb.mxu2 %v4805_v36 }
  0xd9   : > { %1485 = vmatpush.msrb.mxu3 %v3648_v48  ;;  %1669 = vmatpush.msrb.mxu1 %v1668_v14  ;;  %v4737_v48 = vand.u32 4294901760, %v3890_v29 }
  0xda   : > { %1420 = vmatpush.msrb.mxu2 %v4806_v17  ;;  %1542 = vmatpush.msrb.mxu0 %v3883_v52  ;;  %v4739_v17 = vand.u32 4294901760, %v3893_v19 }
  0xdb   : > { %1835 = vmatpush.msra.mxu3 %v3710_v49  ;;  %1675 = vmatpush.msrb.mxu1 %v1674_v33  ;;  %v1679_v14 = vsub.f32 %v3890_v29, %v4737_v48  ;;  %v3909_v33 = vand.u32 4294901760, %v366_v0 }
  0xdc   : > { %1747 = vmatpush.msra.mxu2 %v3720_v26  ;;  %v1685_v6 = vsub.f32 %v3893_v19, %v4739_v17 }
  0xdd   : > { %1837 = vmatpush.msra.mxu3 %v3712_v38  ;;  %v1680_v58 = vand.u32 4294901760, %v1679_v14  ;;  %1544 = vmatpush.msrb.mxu0 %v3909_v33  ;;  %v3918_v43 = vsub.f32 %v366_v0, %v3909_v33  ;;  %v3927_v14 = vsub.f32 %v363_v5, %v3920_v4  ;;  %v3931_v0 = vpop.f32.mrf.mxu0  ;;  %v3941_v5 = vsub.f32 %v360_v61, %v3929_v25 }
  0xde   : > { %1030 = vmatmul.f32.gmra.mxu2 %v4807_v23  ;;  %v1686_v48 = vand.u32 4294901760, %v1685_v6 }
  0xdf   : > { %1839 = vmatpush.msra.mxu3 %v3747_v20  ;;  %1247 = vmatmul.f32.gmra.mxu0 %v4808_v35  ;;  %v3904_v36 = vpop.f32.mrf.mxu2  ;;  %v4742_v17 = vand.u32 4294901760, %v3918_v43  ;;  %v4810_v35 = vld [vmem:[#allocation22_spill] sm:$0xff]  ;;  %v4813_v61 = vand.u32 4294901760, %v3927_v14  ;;  %v1702_v23 = vand.u32 4294901760, %v3941_v5 }
  0xe0   : > { %1167 = vmatmul.f32.gmra.mxu3 %v3425_v2  ;;  %1323 = vmatmul.f32.gmra.mxu1 %v4809_v9  ;;  %v357_v9 = vld [vmem:[#allocation5 + $0x10] sm:$0xff] }
  0xe1   : > { %1750 = vmatpush.msra.mxu2 %v3723_v41  ;;  %1841 = vmatpush.msra.mxu3 %v3749_v32  ;;  %v3943_v40 = vand.u32 4294901760, %v357_v9  ;;  %v1697_v55 = vsub.f32 %v3927_v14, %v4813_v61  ;;  %v4817_v61 = vld [vmem:[#allocation25_spill] sm:$0xff] }
  0xe2   : > { %1681 = vmatpush.msrb.mxu1 %v1680_v58  ;;  %1546 = vmatpush.msrb.mxu0 %v3920_v4  ;;  %v1691_v58 = vsub.f32 %v3918_v43, %v4742_v17 }
  0xe3   : > { %1753 = vmatpush.msra.mxu2 %v3756_v3  ;;  %1843 = vmatpush.msra.mxu3 %v3782_v10 }
  0xe4   : > { %1687 = vmatpush.msrb.mxu1 %v1686_v48  ;;  %1548 = vmatpush.msrb.mxu0 %v3929_v25  ;;  %v4811_v48 = vld [vmem:[#allocation29_spill] sm:$0xff]  ;;  %v1692_v24 = vand.u32 4294901760, %v1691_v58 }
  0xe5   : > { %1756 = vmatpush.msra.mxu2 %v3759_v51  ;;  %v3946_v12 = vpop.f32.mrf.mxu1  ;;  %1845 = vmatpush.msra.mxu3 %v3784_v37 }
  0xe6   : > { %1038 = vmatmul.f32.gmra.mxu2 %v4810_v35  ;;  %v3960_v35 = vsub.f32 %v357_v9, %v3943_v40  ;;  %1550 = vmatpush.msrb.mxu0 %v3943_v40 }
  0xe7   : > { %1252 = vmatmul.f32.gmra.mxu0 %v4811_v48  ;;  %v3951_v17 = vpop.f32.mrf.mxu2  ;;  %v3953_v6 = vpop.f32.mrf.mxu3  ;;  %1693 = vmatpush.msrb.mxu1 %v1692_v24  ;;  %v1698_v48 = vand.u32 4294901760, %v1697_v55  ;;  %v4815_v55 = vand.u32 4294901760, %v3723_v41 }
  0xe8   : > { %1171 = vmatmul.f32.gmra.mxu3 %v3218_v56  ;;  %4812 = vst [vmem:[#allocation31_spill] sm:$0xff] %v3951_v17  ;;  %1329 = vmatmul.f32.gmra.mxu1 %v3460_v45  ;;  %v1703_v17 = vsub.f32 %v3941_v5, %v1702_v23  ;;  %v1708_v58 = vand.u32 4294901760, %v3960_v35 }
  0xe9   : > { %1918 = vmatpush.msra.mxu0 %v4814_v39  ;;  %1759 = vmatpush.msra.mxu2 %v3790_v18  ;;  %v4816_v39 = vand.u32 4294901760, %v3756_v3 }
  0xea   : > { %1847 = vmatpush.msra.mxu3 %v3814_v62  ;;  %1699 = vmatpush.msrb.mxu1 %v1698_v48  ;;  %v1704_v9 = vand.u32 4294901760, %v1703_v17  ;;  %v1709_v24 = vsub.f32 %v3960_v35, %v1708_v58 }
  0xeb   : > { %1922 = vmatpush.msra.mxu0 %v4815_v55  ;;  %1762 = vmatpush.msra.mxu2 %v3793_v27  ;;  %v3982_v48 = vpop.f32.mrf.mxu0  ;;  %v4820_v55 = vand.u32 4294901760, %v3793_v27  ;;  %v4822_v27 = vand.u32 4294901760, %v3823_v11 }
  0xec   : > { %1849 = vmatpush.msra.mxu3 %v3817_v28  ;;  %1705 = vmatpush.msrb.mxu1 %v1704_v9  ;;  %v1710_v26 = vand.u32 4294901760, %v1709_v24  ;;  %v4818_v9 = vand.u32 4294901760, %v3759_v51  ;;  %v4819_v24 = vand.u32 4294901760, %v3790_v18  ;;  %v4821_v51 = vld [vmem:[#allocation28_spill] sm:$0xff] }
  0xed   : > { %1926 = vmatpush.msra.mxu0 %v4816_v39  ;;  %1765 = vmatpush.msra.mxu2 %v3823_v11  ;;  %v4824_v39 = vand.u32 4294901760, %v3856_v59 }
  0xee   : > { %1046 = vmatmul.f32.gmra.mxu2 %v4817_v61  ;;  %1851 = vmatpush.msra.mxu3 %v3847_v60 }
  0xef   : > { %1257 = vmatmul.f32.gmra.mxu0 %v3245_v8  ;;  %v3987_v41 = vpop.f32.mrf.mxu2  ;;  %v3989_v17 = vpop.f32.mrf.mxu3  ;;  %1711 = vmatpush.msrb.mxu1 %v1710_v26  ;;  %v4823_v26 = vand.u32 4294901760, %v3826_v53 }
  0xf0   : > { %1175 = vmatmul.f32.gmra.mxu3 %v3273_v47  ;;  %1335 = vmatmul.f32.gmra.mxu1 %v3270_v44 }
  0xf1   : > { %1930 = vmatpush.msra.mxu0 %v4818_v9  ;;  %v3994_v3 = vpop.f32.mrf.mxu1  ;;  %2013 = vmatpush.msra.mxu1 %v3710_v49 }
  0xf2   : > { %1768 = vmatpush.msra.mxu2 %v3826_v53  ;;  %1853 = vmatpush.msra.mxu3 %v3849_v46 }
  0xf3   : > { %1934 = vmatpush.msra.mxu0 %v4819_v24  ;;  %2015 = vmatpush.msra.mxu1 %v3712_v38 }
  0xf4   : > { %1771 = vmatpush.msra.mxu2 %v3856_v59  ;;  %1855 = vmatpush.msra.mxu3 %v3880_v1 }
  0xf5   : > { %1938 = vmatpush.msra.mxu0 %v4820_v55  ;;  %2017 = vmatpush.msra.mxu1 %v3747_v20 }
  0xf6   : > { %1054 = vmatmul.f32.gmra.mxu2 %v4821_v51  ;;  %1857 = vmatpush.msra.mxu3 %v3883_v52 }
  0xf7   : > { %1262 = vmatmul.f32.gmra.mxu0 %v3299_v7  ;;  %v4011_v49 = vpop.f32.mrf.mxu2  ;;  %2019 = vmatpush.msra.mxu1 %v3749_v32  ;;  %v4825_v32 = vand.u32 4294901760, %v3859_v16 }
  0xf8   : > { %1179 = vmatmul.f32.gmra.mxu3 %v3325_v54  ;;  %1341 = vmatmul.f32.gmra.mxu1 %v3320_v50  ;;  %v4014_v38 = vpop.f32.mrf.mxu3  ;;  %v4016_v18 = vpop.f32.mrf.mxu0 }
  0xf9   : > { %1942 = vmatpush.msra.mxu0 %v4822_v27  ;;  %1774 = vmatpush.msra.mxu2 %v3859_v16  ;;  %v4827_v16 = vand.u32 4294901760, %v3893_v19 }
  0xfa   : > { %v4022_v20 = vpop.f32.mrf.mxu1  ;;  %2021 = vmatpush.msra.mxu1 %v3782_v10  ;;  %1859 = vmatpush.msra.mxu3 %v3909_v33 }
  0xfb   : > { %1946 = vmatpush.msra.mxu0 %v4823_v26  ;;  %1777 = vmatpush.msra.mxu2 %v3890_v29 }
  0xfc   : > { %2023 = vmatpush.msra.mxu1 %v3784_v37  ;;  %v4826_v37 = vand.u32 4294901760, %v3890_v29  ;;  %1861 = vmatpush.msra.mxu3 %v3920_v4  ;;  %v599_v29 = vadd.f32 %v3946_v12, %v3931_v0 }
  0xfd   : > { %1950 = vmatpush.msra.mxu0 %v4824_v39  ;;  %1780 = vmatpush.msra.mxu2 %v3893_v19 }
  0xfe   : > { %1422 = vmatmul.f32.vlgmr.msrb.gmra.mxu2 %v3267_v42  ;;  %2025 = vmatpush.msra.mxu1 %v3814_v62  ;;  %v4828_v62 = vand.u32 4294901760, %v3918_v43 }
  0xff   : > { %1954 = vmatpush.msra.mxu0 %v4825_v32  ;;  %1783 = vmatpush.msra.mxu2 %v3918_v43  ;;  %v4830_v43 = vand.u32 4294901760, %v3927_v14 }
 0x100   : > { %1183 = vmatmul.f32.gmra.mxu3 %v3359_v63  ;;  %1267 = vmatmul.f32.gmra.mxu0 %v3344_v13  ;;  %v4040_v10 = vpop.f32.mrf.mxu3 }
 0x101   : > { %1347 = vmatmul.f32.gmra.mxu1 %v3357_v34  ;;  %v680_v11 = vpop.f32.mrf.mxu2  ;;  %1958 = vmatpush.msra.mxu0 %v4826_v37  ;;  %v4046_v53 = vpop.f32.mrf.mxu0 }
 0x102   : > { %1786 = vmatpush.msra.mxu2 %v3927_v14  ;;  %2027 = vmatpush.msra.mxu1 %v3817_v28  ;;  %v4829_v28 = vld [vmem:[#allocation24_spill] sm:$0xff]  ;;  %v681_v19 = vadd.f32 %v680_v11, %v599_v29  ;;  %v4831_v29 = vld [vmem:[#allocation30_spill] sm:$0xff] }
 0x103   : > { %v4050_v59 = vpop.f32.mrf.mxu1  ;;  %1962 = vmatpush.msra.mxu0 %v4827_v16  ;;  %1863 = vmatpush.msra.mxu3 %v3929_v25 }
 0x104   : > { %1789 = vmatpush.msra.mxu2 %v3941_v5  ;;  %2029 = vmatpush.msra.mxu1 %v3847_v60 }
 0x105   : > { %1966 = vmatpush.msra.mxu0 %v4828_v62  ;;  %1865 = vmatpush.msra.mxu3 %v3943_v40 }
 0x106   : > { %1426 = vmatmul.f32.gmra.mxu2 %v3332_v57  ;;  %2031 = vmatpush.msra.mxu1 %v3849_v46  ;;  %v603_v46 = vadd.f32 %v3994_v3, %v3982_v48  ;;  %v607_v48 = vadd.f32 %v4022_v20, %v4016_v18  ;;  %v611_v20 = vadd.f32 %v4050_v59, %v4046_v53 }
 0x107   : > { %1792 = vmatpush.msra.mxu2 %v3960_v35  ;;  %1970 = vmatpush.msra.mxu0 %v4830_v43 }
 0x108   : > { %1272 = vmatmul.f32.gmra.mxu0 %v4829_v28  ;;  %1487 = vmatmul.f32.vlgmr.msrb.gmra.mxu3 %v3267_v42 }
 0x109   : > { %1353 = vmatmul.f32.gmra.mxu1 %v3392_v15  ;;  %v685_v60 = vpop.f32.mrf.mxu2  ;;  %1974 = vmatpush.msra.mxu0 %v1702_v23 }
 0x10a   : > { %v754_v9 = vpop.f32.mrf.mxu3  ;;  %2033 = vmatpush.msra.mxu1 %v3880_v1  ;;  %v686_v1 = vadd.f32 %v685_v60, %v603_v46  ;;  %v4833_v46 = vld [vmem:[#allocation20_spill] sm:$0xff] }
 0x10b   : > { %v755_v24 = vadd.f32 %v754_v9, %v681_v19  ;;  %1978 = vmatpush.msra.mxu0 %v1708_v58 }
 0x10c   : > { %v865_v12 = vpop.f32.mrf.mxu0  ;;  %2035 = vmatpush.msra.mxu1 %v3883_v52 }
 0x10d   : > { %v866_v0 = vadd.f32 %v865_v12, %v755_v24  ;;  %v930_v55 = vpop.f32.mrf.mxu1  ;;  %v4832_v12 = vld [vmem:[#allocation31_spill] sm:$0xff] }
 0x10e   : > { %1430 = vmatmul.f32.gmra.mxu2 %v3384_v21  ;;  %2037 = vmatpush.msra.mxu1 %v3909_v33 }
 0x10f   : > { %v4080_v14 = vadd.f32 %v930_v55, %v866_v0  ;;  %v619_v0 = vadd.f32 %v3989_v17, %v4832_v12 }
 0x110   : > { %1491 = vmatmul.f32.gmra.mxu3 %v3332_v57  ;;  %1556 = vmatmul.f32.vlgmr.msrb.gmra.mxu0 %v3341_v31 }
 0x111   : > { %1713 = vmatmul.f32.vlgmr.msrb.gmra.mxu1 %v3267_v42  ;;  %2124 = vrot.lane.b32.xlu2 %v4080_v14, %s2942_s1  ;;  %v690_v52 = vpop.f32.mrf.mxu2 }
 0x112   : > { %2108 = vrot.lane.b32.xlu0 %v4080_v14, %s2943_s2  ;;  %v760_v23 = vpop.f32.mrf.mxu3  ;;  %2039 = vmatpush.msra.mxu1 %v3920_v4  ;;  %v691_v33 = vadd.f32 %v690_v52, %v607_v48 }
 0x113   : > { %v761_v35 = vadd.f32 %v760_v23, %v686_v1 }
 0x114   : > { %v869_v5 = vpop.f32.mrf.mxu0  ;;  %2041 = vmatpush.msra.mxu1 %v3929_v25 }
 0x115   : > { %v870_v31 = vadd.f32 %v869_v5, %v761_v35  ;;  %v934_v58 = vpop.f32.mrf.mxu1 }
 0x116   : > { %1434 = vmatmul.f32.gmra.mxu2 %v3425_v2  ;;  %2043 = vmatpush.msra.mxu1 %v3943_v40 }
 0x117   : > { %v4095_v3 = vadd.f32 %v934_v58, %v870_v31  ;;  %v623_v58 = vadd.f32 %v4014_v38, %v3987_v41 }
 0x118   : > { %1495 = vmatmul.f32.gmra.mxu3 %v3384_v21  ;;  %1564 = vmatmul.f32.gmra.mxu0 %v3399_v22 }
 0x119   : > { %1717 = vmatmul.f32.gmra.mxu1 %v3332_v57  ;;  %v695_v4 = vpop.f32.mrf.mxu2 }
 0x11a   : > { %2110 = vrot.lane.b32.xlu0 %v4095_v3, %s2943_s2  ;;  %v766_v27 = vpop.f32.mrf.mxu3  ;;  %v696_v32 = vadd.f32 %v695_v4, %v611_v20  ;;  %v627_v20 = vadd.f32 %v4040_v10, %v4011_v49 }
 0x11b   : > { %v767_v25 = vadd.f32 %v766_v27, %v691_v33  ;;  %v4834_v33 = vld [vmem:[#allocation22_spill] sm:$0xff] }
 0x11c   : > { %v873_v26 = vpop.f32.mrf.mxu0 }
 0x11d   : > { %v874_v39 = vadd.f32 %v873_v26, %v767_v25  ;;  %v938_v18 = vpop.f32.mrf.mxu1 }
 0x11e   : > { %1438 = vmatmul.f32.gmra.mxu2 %v3218_v56 }
 0x11f   : > { %v4106_v22 = vadd.f32 %v938_v18, %v874_v39  ;;  %v4835_v18 = vld [vmem:[#allocation18_spill] sm:$0xff] }
 0x120   : > { %1499 = vmatmul.f32.gmra.mxu3 %v3425_v2  ;;  %1572 = vmatmul.f32.gmra.mxu0 %v3452_v30  ;;  %v615_v30 = vadd.f32 %v3953_v6, %v3904_v36 }
 0x121   : > { %1721 = vmatmul.f32.gmra.mxu1 %v3384_v21  ;;  %2112 = vrot.lane.b32.xlu1 %v4106_v22, %s2943_s2  ;;  %v700_v40 = vpop.f32.mrf.mxu2 }
 0x122   : > { %2126 = vrot.lane.b32.xlu0 %v4095_v3, %s2942_s1  ;;  %v772_v11 = vpop.f32.mrf.mxu3  ;;  %v701_v19 = vadd.f32 %v700_v40, %v615_v30 }
 0x123   : > { %v773_v37 = vadd.f32 %v772_v11, %v696_v32 }
 0x124   : > { %v877_v16 = vpop.f32.mrf.mxu0 }
 0x125   : > { %v878_v53 = vadd.f32 %v877_v16, %v773_v37  ;;  %v942_v59 = vpop.f32.mrf.mxu1 }
 0x126   : > { %1442 = vmatmul.f32.gmra.mxu2 %v3273_v47 }
 0x127   : > { %v4118_v62 = vadd.f32 %v942_v59, %v878_v53  ;;  %v4836_v59 = vld [vmem:[#allocation21_spill] sm:$0xff] }
 0x128   : > { %1503 = vmatmul.f32.gmra.mxu3 %v3218_v56  ;;  %1580 = vmatmul.f32.gmra.mxu0 %v4831_v29 }
 0x129   : > { %1725 = vmatmul.f32.gmra.mxu1 %v3425_v2  ;;  %2128 = vrot.lane.b32.xlu1 %v4106_v22, %s2942_s1  ;;  %v705_v60 = vpop.f32.mrf.mxu2 }
 0x12a   : > { %2130 = vrot.lane.b32.xlu2 %v4118_v62, %s2942_s1  ;;  %v778_v43 = vpop.f32.mrf.mxu3  ;;  %v706_v1 = vadd.f32 %v705_v60, %v619_v0  ;;  %v4840_v0 = vld [vmem:[#allocation29_spill] sm:$0xff] }
 0x12b   : > { %v779_v9 = vadd.f32 %v778_v43, %v701_v19 }
 0x12c   : > { %v881_v24 = vpop.f32.mrf.mxu0 }
 0x12d   : > { %v882_v36 = vadd.f32 %v881_v24, %v779_v9  ;;  %v946_v6 = vpop.f32.mrf.mxu1  ;;  %v4838_v9 = vld [vmem:[#allocation26_spill] sm:$0xff]  ;;  %v4839_v24 = vld [vmem:[#allocation23_spill] sm:$0xff] }
 0x12e   : > { %1446 = vmatmul.f32.gmra.mxu2 %v3325_v54 }
 0x12f   : > { %v4130_v55 = vadd.f32 %v946_v6, %v882_v36 }
 0x130   : > { %1507 = vmatmul.f32.gmra.mxu3 %v3273_v47  ;;  %1588 = vmatmul.f32.gmra.mxu0 %v4833_v46  ;;  %v4841_v46 = vld [vmem:[#allocation27_spill] sm:$0xff] }
 0x131   : > { %1729 = vmatmul.f32.gmra.mxu1 %v3218_v56  ;;  %2132 = vrot.lane.b32.xlu0 %v4130_v55, %s2942_s1  ;;  %v710_v52 = vpop.f32.mrf.mxu2 }
 0x132   : > { %2116 = vrot.lane.b32.xlu2 %v4130_v55, %s2943_s2  ;;  %2114 = vrot.lane.b32.xlu1 %v4118_v62, %s2943_s2  ;;  %v784_v17 = vpop.f32.mrf.mxu3  ;;  %v711_v4 = vadd.f32 %v710_v52, %v623_v58 }
 0x133   : > { %v785_v23 = vadd.f32 %v784_v17, %v706_v1 }
 0x134   : > { %v885_v35 = vpop.f32.mrf.mxu0 }
 0x135   : > { %v886_v5 = vadd.f32 %v885_v35, %v785_v23  ;;  %v950_v31 = vpop.f32.mrf.mxu1 }
 0x136   : > { %1450 = vmatmul.f32.gmra.mxu2 %v3359_v63 }
 0x137   : > { %v4144_v48 = vadd.f32 %v950_v31, %v886_v5 }
 0x138   : > { %1511 = vmatmul.f32.gmra.mxu3 %v3325_v54  ;;  %1596 = vmatmul.f32.gmra.mxu0 %v4834_v33  ;;  %v2093_v33 = vlaneseq }
 0x139   : > { %1733 = vmatmul.f32.gmra.mxu1 %v3273_v47  ;;  %v715_v27 = vpop.f32.mrf.mxu2 }
 0x13a   : > { %2118 = vrot.lane.b32.xlu2 %v4144_v48, %s2943_s2  ;;  %2134 = vrot.lane.b32.xlu1 %v4144_v48, %s2942_s1  ;;  %v790_v25 = vpop.f32.mrf.mxu3  ;;  %v716_v40 = vadd.f32 %v715_v27, %v627_v20 }
 0x13b   : > { %v791_v26 = vadd.f32 %v790_v25, %v711_v4 }
 0x13c   : > { %v889_v39 = vpop.f32.mrf.mxu0 }
 0x13d   : > { %v890_v41 = vadd.f32 %v889_v39, %v791_v26  ;;  %v954_v38 = vpop.f32.mrf.mxu1 }
 0x13e   : > { %1795 = vmatmul.f32.vlgmr.msra.gmra.mxu2 %v4835_v18 }
 0x13f   : > { %v4156_v32 = vadd.f32 %v954_v38, %v890_v41  ;;  %v4265_v41 = vld [vmem:[#allocation8] sm:$0xff] }
 0x140   : > { %1515 = vmatmul.f32.gmra.mxu3 %v3359_v63  ;;  %1604 = vmatmul.f32.gmra.mxu0 %v4817_v61  ;;  %v4837_v61 = vld [vmem:[#allocation19_spill] sm:$0xff] }
 0x141   : > { %1737 = vmatmul.f32.gmra.mxu1 %v3325_v54  ;;  %2120 = vrot.lane.b32.xlu0 %v4156_v32, %s2943_s2  ;;  %v4165_v11 = vpop.f32.mrf.mxu2 }
 0x142   : > { %2136 = vrot.lane.b32.xlu2 %v4156_v32, %s2942_s1  ;;  %v796_v37 = vpop.f32.mrf.mxu3 }
 0x143   : > { %v797_v16 = vadd.f32 %v796_v37, %v716_v40 }
 0x144   : > { %v893_v49 = vpop.f32.mrf.mxu0 }
 0x145   : > { %v894_v10 = vadd.f32 %v893_v49, %v797_v16  ;;  %v958_v53 = vpop.f32.mrf.mxu1 }
 0x146   : > { %1800 = vmatmul.f32.gmra.mxu2 %v4836_v59 }
 0x147   : > { %v4168_v30 = vadd.f32 %v958_v53, %v894_v10 }
 0x148   : > { %1612 = vmatmul.f32.gmra.mxu0 %v4821_v51  ;;  %1869 = vmatmul.f32.vlgmr.msra.gmra.mxu3 %v4837_v61 }
 0x149   : > { %1741 = vmatmul.f32.gmra.mxu1 %v3359_v63  ;;  %2138 = vrot.lane.b32.xlu0 %v4168_v30, %s2942_s1  ;;  %v4177_v29 = vpop.f32.mrf.mxu2 }
 0x14a   : > { %2122 = vrot.lane.b32.xlu1 %v4168_v30, %s2943_s2  ;;  %v1156_v19 = vpop.f32.mrf.mxu3 }
 0x14b   : > { %v1157_v26 = vadd.f32 %v1156_v19, %v4165_v11 }
 0x14c   : > { %v1238_v60 = vpop.f32.mrf.mxu0 }
 0x14d   : > { %v4179_v43 = vpop.f32.mrf.mxu1  ;;  %v1239_v38 = vadd.f32 %v1238_v60, %v1157_v26 }
 0x14e   : > { %1805 = vmatmul.f32.gmra.mxu2 %v4838_v9 }
 0x14f   : > { %v1313_v16 = vadd.f32 %v4179_v43, %v1239_v38 }
 0x150   : > { %1875 = vmatmul.f32.gmra.mxu3 %v4839_v24  ;;  %1980 = vmatmul.f32.vlgmr.msra.gmra.mxu0 %v3267_v42 }
 0x151   : > { %2045 = vmatmul.f32.vlgmr.msra.gmra.mxu1 %v3267_v42  ;;  %v4185_v51 = vpop.f32.mrf.mxu2 }
 0x152   : > { %v4187_v36 = vpop.f32.mrf.mxu3 }
 0x153   : > { %v1161_v49 = vadd.f32 %v4187_v36, %v4177_v29 }
 0x154   : > { %v4189_v6 = vpop.f32.mrf.mxu0 }
 0x155   : > { %v4191_v12 = vpop.f32.mrf.mxu1  ;;  %v1244_v61 = vadd.f32 %v4189_v6, %v1161_v49  ;;  %v4300_v6 = vld [vmem:[#allocation7 + $0x8] sm:$0xff]  ;;  %v4326_v49 = vld [vmem:[#allocation8 + $0x10] sm:$0xff] }
 0x156   : > { %1810 = vmatmul.f32.gmra.mxu2 %v4840_v0 }
 0x158   : > { %1881 = vmatmul.f32.gmra.mxu3 %v4841_v46  ;;  %1984 = vmatmul.f32.gmra.mxu0 %v3332_v57  ;;  %v4302_v46 = vld [vmem:[#allocation8 + $0x8] sm:$0xff] }
 0x159   : > { %2049 = vmatmul.f32.gmra.mxu1 %v3332_v57  ;;  %v4197_v1 = vpop.f32.mrf.mxu2 }
 0x15a   : > { %v4199_v52 = vpop.f32.mrf.mxu3 }
 0x15b   : > { %v1165_v9 = vadd.f32 %v4199_v52, %v4185_v51  ;;  %v2141_v51 = vmul.f32 %v4300_v6, %v4095_v3 }
 0x15c   : > { %v4201_v42 = vpop.f32.mrf.mxu0 }
 0x15d   : > { %v4203_v17 = vpop.f32.mrf.mxu1 }
 0x15e   : > { %1815 = vmatmul.f32.gmra.mxu2 %v3245_v8 }
 0x160   : > { %1887 = vmatmul.f32.gmra.mxu3 %v3460_v45  ;;  %1988 = vmatmul.f32.gmra.mxu0 %v3384_v21 }
 0x161   : > { %2053 = vmatmul.f32.gmra.mxu1 %v3384_v21  ;;  %v4209_v23 = vpop.f32.mrf.mxu2 }
 0x163   : > { %v4211_v35 = vpop.f32.mrf.mxu3 }
 0x164   : > { %v4213_v57 = vpop.f32.mrf.mxu0 }
 0x165   : > { %v4215_v5 = vpop.f32.mrf.mxu1 }
 0x166   : > { %1820 = vmatmul.f32.gmra.mxu2 %v3299_v7 }
 0x168   : > { %1893 = vmatmul.f32.gmra.mxu3 %v3270_v44  ;;  %1992 = vmatmul.f32.gmra.mxu0 %v3425_v2 }
 0x169   : > { %2057 = vmatmul.f32.gmra.mxu1 %v3425_v2  ;;  %v4221_v8 = vpop.f32.mrf.mxu2 }
 0x16b   : > { %v4223_v45 = vpop.f32.mrf.mxu3  ;;  %v2125_v18 = vpop.permute.xlu2 %2124 }
 0x16c   : > { %v4225_v21 = vpop.f32.mrf.mxu0 }
 0x16d   : > { %v4227_v31 = vpop.f32.mrf.mxu1 }
 0x16e   : > { %1825 = vmatmul.f32.gmra.mxu2 %v3344_v13 }
 0x170   : > { %1899 = vmatmul.f32.gmra.mxu3 %v3320_v50  ;;  %1996 = vmatmul.f32.gmra.mxu0 %v3218_v56 }
 0x171   : > { %2061 = vmatmul.f32.gmra.mxu1 %v3218_v56  ;;  %v4233_v44 = vpop.f32.mrf.mxu2  ;;  %v2094_v56 = vand.u32 127, %v2093_v33  ;;  %v1249_v33 = vadd.f32 %v4201_v42, %v1165_v9 }
 0x173   : > { %v4235_v7 = vpop.f32.mrf.mxu3  ;;  %v2099_v25 = vand.u32 1, %v2094_v56  ;;  %v1325_v42 = vadd.f32 %v4203_v17, %v1249_v33  ;;  %v4350_v33 = vld [vmem:[#allocation8 + $0x20] sm:$0xff] }
 0x174   : > { %v4237_v2 = vpop.f32.mrf.mxu0 }
 0x175   : > { %v4239_v58 = vpop.f32.mrf.mxu1  ;;  %vm4257_vm0 = vcmp.eq.s32.totalorder %v2099_v25, 0 }
 0x176   : > { %1830 = vmatmul.f32.gmra.mxu2 %v4829_v28  ;;  %v4261_v28 = vld [vmem:[#allocation7] sm:$0xff] }
 0x178   : > { %1905 = vmatmul.f32.gmra.mxu3 %v3357_v34  ;;  %2000 = vmatmul.f32.gmra.mxu0 %v3273_v47 }
 0x179   : > { %2065 = vmatmul.f32.gmra.mxu1 %v3273_v47  ;;  %v4245_v50 = vpop.f32.mrf.mxu2 }
 0x17b   : > { %v4247_v13 = vpop.f32.mrf.mxu3 }
 0x17d   : > { %v4249_v4 = vpop.f32.mrf.mxu0 }
 0x17e   : > { %v4251_v27 = vpop.f32.mrf.mxu1 }
 0x180   : > { %1911 = vmatmul.f32.gmra.mxu3 %v3392_v15  ;;  %2004 = vmatmul.f32.gmra.mxu0 %v3325_v54 }
 0x181   : > { %2069 = vmatmul.f32.gmra.mxu1 %v3325_v54  ;;  %v1423_v34 = vpop.f32.mrf.mxu2  ;;  %v2140_v54 = vmul.f32 %v4261_v28, %v4080_v14 }
 0x182   : > { %v1424_v53 = vadd.f32 %v1423_v34, %v1313_v16 }
 0x183   : > { %v4263_v39 = vpop.f32.mrf.mxu3 }
 0x184   : > { %v2109_v20 = vpop.permute.xlu0 %2108  ;;  %v2131_v52 = vpop.permute.xlu2 %2130 }
 0x185   : > { %v2148_v15 = vsel %vm4257_vm0, %v2109_v20, %v2125_v18  ;;  %v4269_v40 = vpop.f32.mrf.mxu0  ;;  %v1169_v20 = vadd.f32 %v4211_v35, %v4197_v1 }
 0x186   : > { %v2156_v11 = vmul.f32 %v2148_v15, %v4265_v41  ;;  %v4274_v37 = vpop.f32.mrf.mxu1 }
 0x188   : > { %v2164_v10 = vadd.f32 %v2156_v11, %v2140_v54  ;;  %2008 = vmatmul.f32.gmra.mxu0 %v3359_v63  ;;  %v4324_v11 = vld [vmem:[#allocation7 + $0x10] sm:$0xff] }
 0x189   : > { %2073 = vmatmul.f32.gmra.mxu1 %v3359_v63  ;;  %v1427_v14 = vpop.f32.mrf.mxu2  ;;  %v1319_v63 = vadd.f32 %v4191_v12, %v1244_v61  ;;  %v2142_v1 = vmul.f32 %v4324_v11, %v4106_v22 }
 0x18a   : > { %2172 = vst [vmem:[%s4283_s3] sm:$0xff] %v2164_v10  ;;  %v1254_v10 = vadd.f32 %v4213_v57, %v1169_v20 }
 0x18b   : > { %v1488_v59 = vpop.f32.mrf.mxu3  ;;  %v1428_v24 = vadd.f32 %v1427_v14, %v1319_v63 }
 0x18c   : > { %v4287_v19 = vadd.f32 %v1488_v59, %v1424_v53  ;;  %v2111_v60 = vpop.permute.xlu0 %2110  ;;  %v1331_v57 = vadd.f32 %v4215_v5, %v1254_v10  ;;  %v2117_v63 = vpop.permute.xlu2 %2116 }
 0x18d   : > { %v4289_v43 = vpop.f32.mrf.mxu0 }
 0x18e   : > { %v4291_v29 = vpop.f32.mrf.mxu1  ;;  %2196 = vrot.lane.b32.xlu0 %v4287_v19, %s2942_s1  ;;  %2180 = vrot.lane.b32.xlu1 %v4287_v19, %s2943_s2 }
 0x191   : > { %v1431_v36 = vpop.f32.mrf.mxu2 }
 0x192   : > { %v1432_v54 = vadd.f32 %v1431_v36, %v1325_v42  ;;  %v4348_v36 = vld [vmem:[#allocation7 + $0x20] sm:$0xff] }
 0x193   : > { %v1492_v0 = vpop.f32.mrf.mxu3  ;;  %v2113_v25 = vpop.permute.xlu1 %2112  ;;  %v2144_v42 = vmul.f32 %v4348_v36, %v4130_v55 }
 0x194   : > { %v4305_v56 = vadd.f32 %v1492_v0, %v1428_v24  ;;  %v2127_v26 = vpop.permute.xlu0 %2126 }
 0x195   : > { %v2149_v12 = vsel %vm4257_vm0, %v2111_v60, %v2127_v26  ;;  %v4309_v34 = vpop.f32.mrf.mxu0  ;;  %v1173_v60 = vadd.f32 %v4223_v45, %v4209_v23 }
 0x196   : > { %v2157_v38 = vmul.f32 %v2149_v12, %v4302_v46  ;;  %v4314_v18 = vpop.f32.mrf.mxu1  ;;  %2182 = vrot.lane.b32.xlu2 %v4305_v56, %s2943_s2  ;;  %2198 = vrot.lane.b32.xlu1 %v4305_v56, %s2942_s1 }
 0x197   : > { %v1259_v26 = vadd.f32 %v4225_v21, %v1173_v60 }
 0x198   : > { %v2165_v15 = vadd.f32 %v2157_v38, %v2141_v51  ;;  %v4357_v51 = vld [vmem:[#allocation8 + $0x18] sm:$0xff] }
 0x199   : > { %v1435_v3 = vpop.f32.mrf.mxu2  ;;  %v1337_v55 = vadd.f32 %v4227_v31, %v1259_v26 }
 0x19a   : > { %2173 = vst [vmem:[%s4283_s3 + $0x8] sm:$0xff] %v2165_v15  ;;  %v1436_v24 = vadd.f32 %v1435_v3, %v1331_v57  ;;  %v4382_v57 = vld [vmem:[#allocation7 + $0x28] sm:$0xff] }
 0x19b   : > { %v1496_v16 = vpop.f32.mrf.mxu3  ;;  %v2129_v14 = vpop.permute.xlu1 %2128 }
 0x19c   : > { %v4329_v53 = vadd.f32 %v1496_v16, %v1432_v54  ;;  %v2150_v17 = vsel %vm4257_vm0, %v2113_v25, %v2129_v14  ;;  %v4352_v25 = vld [vmem:[#allocation7 + $0x18] sm:$0xff]  ;;  %v1177_v16 = vadd.f32 %v4235_v7, %v4221_v8  ;;  %v2119_v14 = vpop.permute.xlu2 %2118 }
 0x19d   : > { %v4333_v59 = vpop.f32.mrf.mxu0  ;;  %v2158_v35 = vmul.f32 %v2150_v17, %v4326_v49  ;;  %v2143_v54 = vmul.f32 %v4352_v25, %v4118_v62 }
 0x19e   : > { %v4338_v61 = vpop.f32.mrf.mxu1  ;;  %2184 = vrot.lane.b32.xlu0 %v4329_v53, %s2943_s2  ;;  %2200 = vrot.lane.b32.xlu2 %v4329_v53, %s2942_s1  ;;  %v1264_v60 = vadd.f32 %v4237_v2, %v1177_v16  ;;  %v2145_v2 = vmul.f32 %v4382_v57, %v4144_v48 }
 0x19f   : > { %v2166_v9 = vadd.f32 %v2158_v35, %v2142_v1 }
 0x1a1   : > { %2174 = vst [vmem:[%s4283_s3 + $0x10] sm:$0xff] %v2166_v9  ;;  %v1439_v22 = vpop.f32.mrf.mxu2 }
 0x1a2   : > { %v1440_v17 = vadd.f32 %v1439_v22, %v1337_v55  ;;  %v1343_v22 = vadd.f32 %v4239_v58, %v1264_v60 }
 0x1a3   : > { %v1500_v0 = vpop.f32.mrf.mxu3  ;;  %v2133_v5 = vpop.permute.xlu0 %2132 }
 0x1a4   : > { %v4355_v12 = vadd.f32 %v1500_v0, %v1436_v24  ;;  %v2152_v23 = vsel %vm4257_vm0, %v2117_v63, %v2133_v5  ;;  %v2115_v45 = vpop.permute.xlu1 %2114  ;;  %v4387_v63 = vld [vmem:[#allocation8 + $0x28] sm:$0xff]  ;;  %v1181_v0 = vadd.f32 %v4247_v13, %v4233_v44  ;;  %v2137_v48 = vpop.permute.xlu2 %2136 }
 0x1a5   : > { %v4361_v38 = vpop.f32.mrf.mxu0  ;;  %v2160_v20 = vmul.f32 %v2152_v23, %v4350_v33  ;;  %v2151_v21 = vsel %vm4257_vm0, %v2115_v45, %v2131_v52  ;;  %v4405_v45 = vld [vmem:[#allocation7 + $0x30] sm:$0xff] }
 0x1a6   : > { %v4368_v15 = vpop.f32.mrf.mxu1  ;;  %2202 = vrot.lane.b32.xlu0 %v4355_v12, %s2942_s1  ;;  %2186 = vrot.lane.b32.xlu1 %v4355_v12, %s2943_s2  ;;  %v2159_v3 = vmul.f32 %v2151_v21, %v4357_v51  ;;  %v1269_v21 = vadd.f32 %v4249_v4, %v1181_v0  ;;  %v2146_v13 = vmul.f32 %v4405_v45, %v4156_v32  ;;  %v4430_v32 = vld [vmem:[#allocation7 + $0x38] sm:$0xff] }
 0x1a7   : > { %v2168_v10 = vadd.f32 %v2160_v20, %v2144_v42  ;;  %v4408_v20 = vld [vmem:[#allocation8 + $0x30] sm:$0xff] }
 0x1a8   : > { %v2167_v52 = vadd.f32 %v2159_v3, %v2143_v54  ;;  %v1349_v4 = vadd.f32 %v4251_v27, %v1269_v21 }
 0x1a9   : > { %2176 = vst [vmem:[%s4283_s3 + $0x20] sm:$0xff] %v2168_v10  ;;  %v1443_v1 = vpop.f32.mrf.mxu2  ;;  %v1185_v10 = vadd.f32 %v4263_v39, %v4245_v50  ;;  %v2147_v39 = vmul.f32 %v4430_v32, %v4168_v30 }
 0x1aa   : > { %2175 = vst [vmem:[%s4283_s3 + $0x18] sm:$0xff] %v2167_v52  ;;  %v1444_v5 = vadd.f32 %v1443_v1, %v1343_v22 }
 0x1ab   : > { %v1504_v35 = vpop.f32.mrf.mxu3  ;;  %v1274_v60 = vadd.f32 %v4269_v40, %v1185_v10 }
 0x1ac   : > { %v4385_v62 = vadd.f32 %v1504_v35, %v1440_v17  ;;  %v2135_v31 = vpop.permute.xlu1 %2134  ;;  %v4432_v35 = vld [vmem:[#allocation8 + $0x38] sm:$0xff] }
 0x1ad   : > { %v4389_v9 = vpop.f32.mrf.mxu0  ;;  %v2153_v8 = vsel %vm4257_vm0, %v2119_v14, %v2135_v31  ;;  %v1355_v40 = vadd.f32 %v4274_v37, %v1274_v60  ;;  %v1715_v37 = vadd.f32 %v4291_v29, %v4289_v43 }
 0x1ae   : > { %v4393_v7 = vpop.f32.mrf.mxu1  ;;  %2188 = vrot.lane.b32.xlu2 %v4385_v62, %s2943_s2  ;;  %2204 = vrot.lane.b32.xlu1 %v4385_v62, %s2942_s1  ;;  %v2161_v24 = vmul.f32 %v2153_v8, %v4387_v63 }
 0x1b0   : > { %v2169_v26 = vadd.f32 %v2161_v24, %v2145_v2 }
 0x1b1   : > { %v1447_v23 = vpop.f32.mrf.mxu2 }
 0x1b2   : > { %2177 = vst [vmem:[%s4283_s3 + $0x28] sm:$0xff] %v2169_v26  ;;  %v1448_v14 = vadd.f32 %v1447_v23, %v1349_v4 }
 0x1b3   : > { %v1508_v42 = vpop.f32.mrf.mxu3  ;;  %v2121_v3 = vpop.permute.xlu0 %2120 }
 0x1b4   : > { %v4411_v54 = vadd.f32 %v1508_v42, %v1444_v5  ;;  %v2154_v58 = vsel %vm4257_vm0, %v2121_v3, %v2137_v48 }
 0x1b5   : > { %v4415_v44 = vpop.f32.mrf.mxu0  ;;  %v2162_v55 = vmul.f32 %v2154_v58, %v4408_v20 }
 0x1b6   : > { %v4420_v16 = vpop.f32.mrf.mxu1  ;;  %2190 = vrot.lane.b32.xlu0 %v4411_v54, %s2943_s2  ;;  %2206 = vrot.lane.b32.xlu2 %v4411_v54, %s2942_s1 }
 0x1b7   : > { %v2170_v52 = vadd.f32 %v2162_v55, %v2146_v13 }
 0x1b9   : > { %2178 = vst [vmem:[%s4283_s3 + $0x30] sm:$0xff] %v2170_v52  ;;  %v1451_v17 = vpop.f32.mrf.mxu2  ;;  %v1719_v52 = vadd.f32 %v4314_v18, %v4309_v34 }
 0x1ba   : > { %v1452_v26 = vadd.f32 %v1451_v17, %v1355_v40 }
 0x1bb   : > { %v1512_v1 = vpop.f32.mrf.mxu3  ;;  %v2139_v8 = vpop.permute.xlu0 %2138 }
 0x1bc   : > { %v4435_v31 = vadd.f32 %v1512_v1, %v1448_v14  ;;  %v2123_v2 = vpop.permute.xlu1 %2122 }
 0x1bd   : > { %v2155_v27 = vsel %vm4257_vm0, %v2123_v2, %v2139_v8  ;;  %v4439_v50 = vpop.f32.mrf.mxu0 }
 0x1be   : > { %v2163_v24 = vmul.f32 %v2155_v27, %v4432_v35  ;;  %v4444_v22 = vpop.f32.mrf.mxu1  ;;  %2208 = vrot.lane.b32.xlu0 %v4435_v31, %s2942_s1  ;;  %2192 = vrot.lane.b32.xlu1 %v4435_v31, %s2943_s2  ;;  %v1723_v27 = vadd.f32 %v4338_v61, %v4333_v59 }
 0x1c0   : > { %v2171_v0 = vadd.f32 %v2163_v24, %v2147_v39 }
 0x1c1   : > { %v1796_v5 = vpop.f32.mrf.mxu2 }
 0x1c2   : > { %2179 = vst [vmem:[%s4283_s3 + $0x38] sm:$0xff] %v2171_v0  ;;  %v1797_v48 = vadd.f32 %v1796_v5, %v1715_v37 }
 0x1c3   : > { %v1516_v23 = vpop.f32.mrf.mxu3 }
 0x1c4   : > { %v4452_v42 = vadd.f32 %v1516_v23, %v1452_v26  ;;  %v1727_v23 = vadd.f32 %v4368_v15, %v4361_v38 }
 0x1c5   : > { %v4454_v30 = vpop.f32.mrf.mxu0 }
 0x1c6   : > { %v4456_v21 = vpop.f32.mrf.mxu1  ;;  %2194 = vrot.lane.b32.xlu2 %v4452_v42, %s2943_s2  ;;  %2210 = vrot.lane.b32.xlu1 %v4452_v42, %s2942_s1 }
 0x1c9   : > { %v1801_v3 = vpop.f32.mrf.mxu2 }
 0x1ca   : > { %v1802_v17 = vadd.f32 %v1801_v3, %v1719_v52 }
 0x1cb   : > { %v1870_v58 = vpop.f32.mrf.mxu3 }
 0x1cc   : > { %v1871_v13 = vadd.f32 %v1870_v58, %v1797_v48 }
 0x1cd   : > { %v1981_v55 = vpop.f32.mrf.mxu0 }
 0x1ce   : > { %v1982_v4 = vadd.f32 %v1981_v55, %v1871_v13  ;;  %v2046_v10 = vpop.f32.mrf.mxu1 }
 0x1d0   : > { %v4466_v14 = vadd.f32 %v2046_v10, %v1982_v4  ;;  %v1731_v4 = vadd.f32 %v4393_v7, %v4389_v9 }
 0x1d1   : > { %v1806_v43 = vpop.f32.mrf.mxu2 }
 0x1d2   : > { %2252 = vrot.lane.b32.xlu2 %v4466_v14, %s2943_s2  ;;  %2268 = vrot.lane.b32.xlu1 %v4466_v14, %s2942_s1  ;;  %v1807_v34 = vadd.f32 %v1806_v43, %v1723_v27 }
 0x1d3   : > { %v1876_v29 = vpop.f32.mrf.mxu3 }
 0x1d4   : > { %v1877_v1 = vadd.f32 %v1876_v29, %v1802_v17 }
 0x1d5   : > { %v1985_v60 = vpop.f32.mrf.mxu0 }
 0x1d6   : > { %v1986_v8 = vadd.f32 %v1985_v60, %v1877_v1  ;;  %v2050_v2 = vpop.f32.mrf.mxu1  ;;  %v1735_v60 = vadd.f32 %v4420_v16, %v4415_v44 }
 0x1d8   : > { %v4474_v39 = vadd.f32 %v2050_v2, %v1986_v8 }
 0x1d9   : > { %v1811_v18 = vpop.f32.mrf.mxu2 }
 0x1da   : > { %2254 = vrot.lane.b32.xlu0 %v4474_v39, %s2943_s2  ;;  %2270 = vrot.lane.b32.xlu2 %v4474_v39, %s2942_s1  ;;  %v1812_v59 = vadd.f32 %v1811_v18, %v1727_v23 }
 0x1db   : > { %v1882_v24 = vpop.f32.mrf.mxu3 }
 0x1dc   : > { %v1883_v40 = vadd.f32 %v1882_v24, %v1807_v34 }
 0x1dd   : > { %v1989_v0 = vpop.f32.mrf.mxu0 }
 0x1de   : > { %v1990_v26 = vadd.f32 %v1989_v0, %v1883_v40  ;;  %v2054_v5 = vpop.f32.mrf.mxu1  ;;  %v1739_v40 = vadd.f32 %v4444_v22, %v4439_v50 }
 0x1e0   : > { %v4482_v37 = vadd.f32 %v2054_v5, %v1990_v26 }
 0x1e1   : > { %v1816_v61 = vpop.f32.mrf.mxu2 }
 0x1e2   : > { %2272 = vrot.lane.b32.xlu0 %v4482_v37, %s2942_s1  ;;  %2256 = vrot.lane.b32.xlu1 %v4482_v37, %s2943_s2  ;;  %v1817_v38 = vadd.f32 %v1816_v61, %v1731_v4 }
 0x1e3   : > { %v1888_v48 = vpop.f32.mrf.mxu3 }
 0x1e4   : > { %v1889_v3 = vadd.f32 %v1888_v48, %v1812_v59  ;;  %v1743_v48 = vadd.f32 %v4456_v21, %v4454_v30 }
 0x1e5   : > { %v1993_v58 = vpop.f32.mrf.mxu0 }
 0x1e6   : > { %v1994_v13 = vadd.f32 %v1993_v58, %v1889_v3  ;;  %v2058_v55 = vpop.f32.mrf.mxu1 }
 0x1e8   : > { %v4490_v10 = vadd.f32 %v2058_v55, %v1994_v13  ;;  %v2212_v13 = vmul.f32 %v4261_v28, %v4287_v19 }
 0x1e9   : > { %v1821_v15 = vpop.f32.mrf.mxu2 }
 0x1ea   : > { %2258 = vrot.lane.b32.xlu2 %v4490_v10, %s2943_s2  ;;  %2274 = vrot.lane.b32.xlu1 %v4490_v10, %s2942_s1  ;;  %v1822_v9 = vadd.f32 %v1821_v15, %v1735_v60  ;;  %v2213_v60 = vmul.f32 %v4300_v6, %v4305_v56 }
 0x1eb   : > { %v1894_v52 = vpop.f32.mrf.mxu3 }
 0x1ec   : > { %v1895_v17 = vadd.f32 %v1894_v52, %v1817_v38 }
 0x1ed   : > { %v1997_v43 = vpop.f32.mrf.mxu0 }
 0x1ee   : > { %v1998_v29 = vadd.f32 %v1997_v43, %v1895_v17  ;;  %v2062_v1 = vpop.f32.mrf.mxu1 }
 0x1f0   : > { %v4498_v8 = vadd.f32 %v2062_v1, %v1998_v29  ;;  %v2183_v52 = vpop.permute.xlu2 %2182 }
 0x1f1   : > { %v1826_v27 = vpop.f32.mrf.mxu2 }
 0x1f2   : > { %2260 = vrot.lane.b32.xlu0 %v4498_v8, %s2943_s2  ;;  %2276 = vrot.lane.b32.xlu2 %v4498_v8, %s2942_s1  ;;  %v1827_v16 = vadd.f32 %v1826_v27, %v1739_v40 }
 0x1f3   : > { %v1900_v7 = vpop.f32.mrf.mxu3 }
 0x1f4   : > { %v1901_v2 = vadd.f32 %v1900_v7, %v1822_v9 }
 0x1f5   : > { %v2001_v34 = vpop.f32.mrf.mxu0 }
 0x1f6   : > { %v2002_v18 = vadd.f32 %v2001_v34, %v1901_v2  ;;  %v2066_v24 = vpop.f32.mrf.mxu1 }
 0x1f8   : > { %v4506_v44 = vadd.f32 %v2066_v24, %v2002_v18 }
 0x1f9   : > { %v1831_v61 = vpop.f32.mrf.mxu2 }
 0x1fa   : > { %2262 = vrot.lane.b32.xlu1 %v4506_v44, %s2943_s2  ;;  %v1832_v55 = vadd.f32 %v1831_v61, %v1743_v48 }
 0x1fb   : > { %v1906_v0 = vpop.f32.mrf.mxu3 }
 0x1fc   : > { %v1907_v26 = vadd.f32 %v1906_v0, %v1827_v16 }
 0x1fd   : > { %v2005_v5 = vpop.f32.mrf.mxu0 }
 0x1fe   : > { %v2006_v23 = vadd.f32 %v2005_v5, %v1907_v26  ;;  %v2070_v59 = vpop.f32.mrf.mxu1 }
 0x200   : > { %v4512_v3 = vadd.f32 %v2070_v59, %v2006_v23  ;;  %v2197_v58 = vpop.permute.xlu0 %2196  ;;  %v2181_v50 = vpop.permute.xlu1 %2180 }
 0x201   : > { %v2220_v22 = vsel %vm4257_vm0, %v2181_v50, %v2197_v58 }
 0x202   : > { %v2228_v4 = vmul.f32 %v2220_v22, %v4265_v41  ;;  %2264 = vrot.lane.b32.xlu2 %v4512_v3, %s2943_s2  ;;  %2280 = vrot.lane.b32.xlu1 %v4512_v3, %s2942_s1 }
 0x203   : > { %v1912_v30 = vpop.f32.mrf.mxu3 }
 0x204   : > { %v2236_v21 = vadd.f32 %v2228_v4, %v2212_v13  ;;  %v1913_v38 = vadd.f32 %v1912_v30, %v1832_v55 }
 0x205   : > { %v2009_v15 = vpop.f32.mrf.mxu0 }
 0x206   : > { %2244 = vst [vmem:[%s4524_s28] sm:$0xff] %v2236_v21  ;;  %v2010_v19 = vadd.f32 %v2009_v15, %v1913_v38  ;;  %v2074_v17 = vpop.f32.mrf.mxu1 }
 0x208   : > { %v4527_v43 = vadd.f32 %v2074_v17, %v2010_v19  ;;  %v2199_v29 = vpop.permute.xlu1 %2198 }
 0x209   : > { %v2221_v1 = vsel %vm4257_vm0, %v2183_v52, %v2199_v29 }
 0x20a   : > { %v2229_v9 = vmul.f32 %v2221_v1, %v4302_v46  ;;  %2266 = vrot.lane.b32.xlu0 %v4527_v43, %s2943_s2  ;;  %2282 = vrot.lane.b32.xlu2 %v4527_v43, %s2942_s1 }
 0x20c   : > { %v2237_v7 = vadd.f32 %v2229_v9, %v2213_v60 }
 0x20e   : > { %2245 = vst [vmem:[%s4524_s28 + $0x10] sm:$0xff] %v2237_v7 }
 0x20f   : > { %2838 = shalt.err (!%p2835_p0)
}
 0x210   : > { %s2944_s3 = smov 128   ;;  %s2945_s8 = smov 8   ;;  %v2201_v56 = vpop.permute.xlu2 %2200  ;;  %v2185_v2 = vpop.permute.xlu0 %2184  ;;  %v2214_v34 = vmul.f32 %v4324_v11, %v4329_v53  ;;  %v2215_v26 = vmul.f32 %v4352_v25, %v4355_v12  ;;  %v2216_v48 = vmul.f32 %v4348_v36, %v4385_v62  ;;  %v2217_v55 = vmul.f32 %v4382_v57, %v4411_v54 }
 0x211   : > { %2597 = dma.vmem_to_hbm [thread:$0]  (%p3073_p3), %s2345_s6, 1024, %s2347_s9, %s2325_s12, %s2944_s3, %s2944_s3, %s2945_s8   ;;  %v2222_v27 = vsel %vm4257_vm0, %v2185_v2, %v2201_v56  ;;  %v2218_v15 = vmul.f32 %v4405_v45, %v4435_v31  ;;  %v2219_v1 = vmul.f32 %v4430_v32, %v4452_v42  ;;  %v2284_v2 = vmul.f32 %v4261_v28, %v4466_v14 }
 0x212   : > { %v2230_v18 = vmul.f32 %v2222_v27, %v4326_v49  ;;  %2278 = vrot.lane.b32.xlu0 %v4506_v44, %s2942_s1  ;;  %v2286_v14 = vmul.f32 %v4324_v11, %v4482_v37  ;;  %v2288_v37 = vmul.f32 %v4348_v36, %v4498_v8  ;;  %s2550_s1 = sshll.u32 %s2925_s21, 7  ;;  %s2364_s6 = sshll.u32 %s4524_s28, 4  ;;  %s2365_s6 = int_to_ptr.vmem [resolvable:$true] %s2364_s6 }
 0x213   : > { %s2363_s16 = scalar_lea.hbm %s4685_s5, %s2550_s1  ;;  %s2330_s21 = scalar_lea.sflag [#allocation12], %s3104_s13 }
 0x214   : > { %v2238_v24 = vadd.f32 %v2230_v18, %v2214_v34  ;;  %s2366_s9 = sshll.u32 %s2363_s16, 4  ;;  %s2859_s24 = scalar_lea.hbm %s4685_s5, 256  ;;  %s2367_s9 = int_to_ptr.hbm [resolvable:$true] %s2366_s9 }
 0x215   : > { %s2853_s12 = sshra.s32 %s2367_s9, 4  ;;  %s2854_s12 = int_to_ptr.hbm [resolvable:$true] %s2853_s12 }
 0x216   : > { %2246 = vst [vmem:[%s4524_s28 + $0x20] sm:$0xff] %v2238_v24  ;;  %s2855_s7 = scalar_lea.hbm %s2854_s12, 128  ;;  %p2860_p2 = scmp.lt.s32.totalorder %s2854_s12, %s4685_s5 }
 0x217   : > { %p2856_p5 = scmp.ne.s32.totalorder %s2854_s12, %s2855_s7  ;;  %p2861_p1 = scmp.lt.s32.totalorder %s2859_s24, %s2855_s7 }
 0x218   : > { %v2203_v40 = vpop.permute.xlu0 %2202  ;;  %v2187_v16 = vpop.permute.xlu1 %2186 }
 0x219   : > { %v2223_v0 = vsel %vm4257_vm0, %v2187_v16, %v2203_v40  ;;  %v2189_v23 = vpop.permute.xlu2 %2188  ;;  %v2285_v40 = vmul.f32 %v4300_v6, %v4474_v39  ;;  %v2287_v39 = vmul.f32 %v4352_v25, %v4490_v10  ;;  %p2857_p7 = pnand %p2856_p5, %p3073_p3  ;;  %p2862_p4 = por %p2861_p1, %p2860_p2 }
 0x21a   : > { %v2231_v5 = vmul.f32 %v2223_v0, %v4357_v51 }
 0x21b   : > { %p2858_p9 = pneg %p2857_p7 }
 0x21c   : > { %v2239_v53 = vadd.f32 %v2231_v5, %v2215_v26 }
 0x21d   : > { %p2863_p8 = pnand %p2862_p4, %p2858_p9 }
 0x21e   : > { %2247 = vst [vmem:[%s4524_s28 + $0x30] sm:$0xff] %v2239_v53 }
 0x220   : > { %v2205_v59 = vpop.permute.xlu1 %2204 }
 0x221   : > { %v2224_v61 = vsel %vm4257_vm0, %v2189_v23, %v2205_v59  ;;  %v2207_v22 = vpop.permute.xlu2 %2206 }
 0x222   : > { %v2232_v58 = vmul.f32 %v2224_v61, %v4350_v33 }
 0x224   : > { %v2240_v50 = vadd.f32 %v2232_v58, %v2216_v48 }
 0x226   : > { %2248 = vst [vmem:[%s4524_s28 + $0x40] sm:$0xff] %v2240_v50 }
 0x228   : > { %v2191_v12 = vpop.permute.xlu0 %2190 }
 0x229   : > { %v2225_v13 = vsel %vm4257_vm0, %v2191_v12, %v2207_v22  ;;  %v2195_v17 = vpop.permute.xlu2 %2194  ;;  %v2290_v12 = vmul.f32 %v4405_v45, %v4512_v3 }
 0x22a   : > { %v2233_v4 = vmul.f32 %v2225_v13, %v4387_v63 }
 0x22c   : > { %v2241_v30 = vadd.f32 %v2233_v4, %v2217_v55  ;;  %v2291_v4 = vmul.f32 %v4430_v32, %v4527_v43  ;;  %v2289_v32 = vmul.f32 %v4382_v57, %v4506_v44 }
 0x22e   : > { %2249 = vst [vmem:[%s4524_s28 + $0x50] sm:$0xff] %v2241_v30 }
 0x230   : > { %v2209_v21 = vpop.permute.xlu0 %2208  ;;  %v2193_v62 = vpop.permute.xlu1 %2192 }
 0x231   : > { %v2226_v38 = vsel %vm4257_vm0, %v2193_v62, %v2209_v21  ;;  %v2253_v7 = vpop.permute.xlu2 %2252 }
 0x232   : > { %v2234_v52 = vmul.f32 %v2226_v38, %v4408_v20 }
 0x234   : > { %v2242_v19 = vadd.f32 %v2234_v52, %v2218_v15 }
 0x236   : > { %2250 = vst [vmem:[%s4524_s28 + $0x60] sm:$0xff] %v2242_v19 }
 0x238   : > { %v2211_v54 = vpop.permute.xlu1 %2210 }
 0x239   : > { %v2227_v29 = vsel %vm4257_vm0, %v2195_v17, %v2211_v54  ;;  %v2271_v18 = vpop.permute.xlu2 %2270 }
 0x23a   : > { %v2235_v60 = vmul.f32 %v2227_v29, %v4432_v35 }
 0x23c   : > { %v2243_v9 = vadd.f32 %v2235_v60, %v2219_v1 }
 0x23e   : > { %2251 = vst [vmem:[%s4524_s28 + $0x70] sm:$0xff] %v2243_v9 }
 0x244   : > { %v2269_v31 = vpop.permute.xlu1 %2268  ;;  %v2259_v23 = vpop.permute.xlu2 %2258 }
 0x245   : > { %v2292_v56 = vsel %vm4257_vm0, %v2253_v7, %v2269_v31 }
 0x246   : > { %v2300_v27 = vmul.f32 %v2292_v56, %v4265_v41 }
 0x248   : > { %v2308_v34 = vadd.f32 %v2300_v27, %v2284_v2 }
 0x24a   : > { %2316 = vst [vmem:[%s4524_s28 + $0x8] sm:$0xff] %v2308_v34 }
 0x24c   : > { %v2255_v42 = vpop.permute.xlu0 %2254  ;;  %v2277_v48 = vpop.permute.xlu2 %2276 }
 0x24d   : > { %v2293_v24 = vsel %vm4257_vm0, %v2255_v42, %v2271_v18 }
 0x24e   : > { %v2301_v16 = vmul.f32 %v2293_v24, %v4302_v46 }
 0x250   : > { %v2309_v0 = vadd.f32 %v2301_v16, %v2285_v40 }
 0x252   : > { %2317 = vst [vmem:[%s4524_s28 + $0x18] sm:$0xff] %v2309_v0 }
 0x254   : > { %v2273_v26 = vpop.permute.xlu0 %2272  ;;  %v2257_v28 = vpop.permute.xlu1 %2256 }
 0x255   : > { %v2294_v41 = vsel %vm4257_vm0, %v2257_v28, %v2273_v26 }
 0x256   : > { %v2302_v5 = vmul.f32 %v2294_v41, %v4326_v49 }
 0x258   : > { %v2310_v53 = vadd.f32 %v2302_v5, %v2286_v14 }
 0x25a   : > { %2318 = vst [vmem:[%s4524_s28 + $0x28] sm:$0xff] %v2310_v53 }
 0x25c   : > { %v2275_v6 = vpop.permute.xlu1 %2274  ;;  %v2265_v25 = vpop.permute.xlu2 %2264 }
 0x25d   : > { %v2295_v46 = vsel %vm4257_vm0, %v2259_v23, %v2275_v6 }
 0x25e   : > { %v2303_v59 = vmul.f32 %v2295_v46, %v4357_v51 }
 0x260   : > { %v2311_v61 = vadd.f32 %v2303_v59, %v2287_v39 }
 0x262   : > { %2319 = vst [vmem:[%s4524_s28 + $0x38] sm:$0xff] %v2311_v61 }
 0x264   : > { %v2261_v11 = vpop.permute.xlu0 %2260  ;;  %v2283_v36 = vpop.permute.xlu2 %2282 }
 0x265   : > { %v2296_v49 = vsel %vm4257_vm0, %v2261_v11, %v2277_v48 }
 0x266   : > { %v2304_v58 = vmul.f32 %v2296_v49, %v4350_v33 }
 0x268   : > { %v2312_v50 = vadd.f32 %v2304_v58, %v2288_v37 }
 0x26a   : > { %2320 = vst [vmem:[%s4524_s28 + $0x48] sm:$0xff] %v2312_v50 }
 0x26c   : > { %v2263_v22 = vpop.permute.xlu1 %2262 }
 0x274   : > { %v2281_v51 = vpop.permute.xlu1 %2280 }
 0x275   : > { %v2298_v10 = vsel %vm4257_vm0, %v2265_v25, %v2281_v51 }
 0x276   : > { %v2306_v13 = vmul.f32 %v2298_v10, %v4408_v20 }
 0x278   : > { %v2314_v55 = vadd.f32 %v2306_v13, %v2290_v12 }
 0x27a   : > { %2322 = vst [vmem:[%s4524_s28 + $0x68] sm:$0xff] %v2314_v55 }
 0x27c   : > { %v2267_v33 = vpop.permute.xlu0 %2266 }
 0x27d   : > { %v2299_v8 = vsel %vm4257_vm0, %v2267_v33, %v2283_v36 }
 0x27e   : > { %v2307_v30 = vmul.f32 %v2299_v8, %v4432_v35 }
 0x280   : > { %v2315_v21 = vadd.f32 %v2307_v30, %v2291_v4 }
 0x282   : > { %2323 = vst [vmem:[%s4524_s28 + $0x78] sm:$0xff] %v2315_v21 }
 0x284   : > { %v2279_v45 = vpop.permute.xlu0 %2278 }
 0x285   : > { %v2297_v20 = vsel %vm4257_vm0, %v2263_v22, %v2279_v45 }
 0x286   : > { %v2305_v3 = vmul.f32 %v2297_v20, %v4387_v63 }
 0x288   : > { %v2313_v35 = vadd.f32 %v2305_v3, %v2289_v32 }
 0x28a   : > { %2321 = vst [vmem:[%s4524_s28 + $0x58] sm:$0xff] %v2313_v35 }
 0x28b   : > { %2866 = shalt.err (!%p2863_p8)
}
 0x28c   : > { %s2946_s13 = smov 256   ;;  %s2947_s28 = smov 16  }
 0x28d   : > { %2598 = dma.vmem_to_hbm [thread:$0]  (%p3073_p3), %s2365_s6, 2048, %s2367_s9, %s2330_s21, %s2946_s13, %s2946_s13, %s2947_s28  }
 0x28e PF: > { %s2381_s26 = sand.u32 1, %s2913_s18   ;;  %p2616_p10 = pnand %p2529_p11, %p3027_p6 }
 0x28f   : > { %s2382_s3 = scalar_lea.sflag [#allocation4], %s2381_s26 }
 0x290   : > { %p2617_p12 = pneg %p2616_p10 }
 0x292   : > { %2904 = dma.done.wait (%p2617_p12), %s2382_s3, 1024  }
 0x293   : > { %2906 = vsyncadd (%p2617_p12), %s2382_s3, 4294966272  ;;  %s2392_s8 = scalar_lea.sflag [#allocation12], %s2381_s26 }
 0x294   : > { %2908 = dma.done.wait (%p2617_p12), %s2392_s8, 2048  }
 0x295   : > { %2910 = vsyncadd (%p2617_p12), %s2392_s8, 4294965248  ;;  %s27_s23 = sadd.s32 1, %s2933_s23   ;;  %s4844_s18 = smov %s2917_s19 }
 0x296   : > { %p24_p13 = scmp.ge.s32.totalorder %s27_s23, 4   ;;  %s4845_s19 = smov %s2921_s20 }
 0x297   : > { %s4846_s20 = smov %s3089_s27  ;;  %s4847_s21 = smov %s2929_s22 }
 0x298   : > { %s4848_s22 = smov %s4850_s15  ;;  %26 = sbr.rel (!%p24_p13) target bundleno = 14 (0xe), region = 112 }
 0x29d   :  { %2398 = vsyncpa [#allocation3], 1 }
 0x29e   :  { %2400 = vsyncpa [#allocation3 + $0x1], 1 }
 0x29f   :  { %2401 = vsyncpa [#allocation6], 1 }
 0x2a0   :  { %2402 = vsyncpa [#allocation9], 1 }
 0x2a1   :  { %2403 = vsyncpa [#allocation4], 1 }
 0x2a2   :  { %2405 = vsyncpa [#allocation4 + $0x1], 1 }
 0x2a3   :  { %2406 = vsyncpa [#allocation12], 1 }
 0x2a4   :  { %2408 = vsyncpa [#allocation12 + $0x1], 1 }

</bundles_post_ra>
